<compile_context>
chip_gen: v7x
topology: tpu7x:2x2x1
jax: 0.10.0
libtpu: 0.0.40
codegen_flags: <defaults>
</compile_context>

<pallas_src>
import functools
import math

import jax
import jax.numpy as jnp
from jax import lax
from jax.experimental import pallas as pl
from jax.experimental.pallas import tpu as pltpu


COMPUTE_DTYPE = jnp.bfloat16      # MXU operand / activation dtype (stats stay f32)
ROW_TILE = 512                    # row tile for the matmul kernels (multiple of 8)
Q_TILE = 256                      # query tile for attention (multiple of 8)
_SUBLANE = 8                      # causal left-pad rounded to one sublane
VMEM_LIMIT_BYTES = 48 * 1024 * 1024   # <= v7x physical 64 MiB, > v5e/v6e scoped default


def _cparams(n_grid_axes):
    return pltpu.CompilerParams(
        dimension_semantics=("parallel",) * n_grid_axes,
        vmem_limit_bytes=VMEM_LIMIT_BYTES,
    )


def _pad_rows(arrs, M, tm):
    """Pad the leading (row) dim of every array in `arrs` to a multiple of tm."""
    Mp = ((M + tm - 1) // tm) * tm
    if Mp == M:
        return arrs, Mp
    return [jnp.pad(a, ((0, Mp - M), (0, 0))) for a in arrs], Mp


def _row_tile(M):
    return ROW_TILE if M > ROW_TILE else M


# ---------------------------------------------------------------------------
# elementwise helpers (used INSIDE kernels, on f32 values)
# ---------------------------------------------------------------------------
def _softplus(x):
    return jnp.maximum(x, 0.0) + jnp.log(1.0 + jnp.exp(-jnp.abs(x)))


def _mish(x):
    return x * jnp.tanh(_softplus(x))


def _silu(x):
    return x * (1.0 / (1.0 + jnp.exp(-x)))      # exact sigmoid (review correctness note)


def _gelu(x):
    # TODO(synk): exact erf GELU in PyTorch; tanh approximation used here.
    return jax.nn.gelu(x, approximate=True)


def _apply_act(y, act):
    if act == "silu":
        return _silu(y)
    if act == "gelu":
        return _gelu(y)
    if act == "mish":
        return _mish(y)
    return y


def _ln_f32(x, g, b, eps=1e-5):
    mu = jnp.mean(x, axis=-1, keepdims=True)
    var = jnp.mean((x - mu) ** 2, axis=-1, keepdims=True)
    return (x - mu) * lax.rsqrt(var + eps) * g + b


# ---------------------------------------------------------------------------
# causal-conv helpers (operate on an 8-row left-padded VMEM scratch)
# ---------------------------------------------------------------------------
def _zero_pad_rows(pad_ref):
    # Re-zeroed every grid step: gating on pl.program_id(0)==0 would break under
    # megacore sharding of the "parallel" batch axis (core 1 never sees id 0).
    pad_ref[0:_SUBLANE, :] = jnp.zeros((_SUBLANE, pad_ref.shape[1]), pad_ref.dtype)


def _fill_pad(pad_ref, xm, col_off=0):
    T, C = xm.shape
    pad_ref[_SUBLANE:_SUBLANE + T, col_off:col_off + C] = xm


def _conv_taps(pad_ref, w_ref):
    """K tap matmuls over the pre-filled pad scratch. Returns f32 (T, Cout)."""
    K = w_ref.shape[0]
    Cout = w_ref.shape[2]
    assert K - 1 <= _SUBLANE, "causal kernel size too large for the 8-row pad scratch"
    T = pad_ref.shape[0] - _SUBLANE
    start = _SUBLANE - (K - 1)
    acc = jnp.zeros((T, Cout), jnp.float32)
    for k in range(K):
        acc = acc + jnp.dot(pad_ref[start + k:start + k + T, :], w_ref[k],
                            preferred_element_type=jnp.float32)
    return acc


# ---------------------------------------------------------------------------
# Pallas kernels
# ---------------------------------------------------------------------------
def _linear_kernel(act, has_res, x_ref, w_ref, b_ref, *rest):
    if has_res:
        res_ref, o_ref = rest
    else:
        (o_ref,) = rest
    y = jnp.dot(x_ref[...], w_ref[...], preferred_element_type=jnp.float32)
    y = y + b_ref[...].astype(jnp.float32)
    y = _apply_act(y, act)
    if has_res:
        y = y + res_ref[...].astype(jnp.float32)          # fused residual add
    o_ref[...] = y.astype(o_ref.dtype)


def _ln_linear_kernel(act, x_ref, g_ref, bln_ref, w_ref, b_ref, o_ref):
    x = x_ref[...].astype(jnp.float32)
    xn = _ln_f32(x, g_ref[...].astype(jnp.float32), bln_ref[...].astype(jnp.float32))
    y = jnp.dot(xn.astype(w_ref.dtype), w_ref[...], preferred_element_type=jnp.float32)
    y = y + b_ref[...].astype(jnp.float32)
    y = _apply_act(y, act)
    o_ref[...] = y.astype(o_ref.dtype)


def _ln_qkv_kernel(x_ref, g_ref, bln_ref, w_ref, b_ref, q_ref, k_ref, v_ref):
    """LayerNorm + packed QKV projection, emitted as three lane-dense outputs."""
    x = x_ref[...].astype(jnp.float32)
    xn = _ln_f32(x, g_ref[...].astype(jnp.float32), bln_ref[...].astype(jnp.float32))
    y = jnp.dot(xn.astype(w_ref.dtype), w_ref[...], preferred_element_type=jnp.float32)
    y = y + b_ref[...].astype(jnp.float32)
    inner = q_ref.shape[-1]
    q_ref[...] = y[:, :inner].astype(q_ref.dtype)
    k_ref[...] = y[:, inner:2 * inner].astype(k_ref.dtype)
    v_ref[...] = y[:, 2 * inner:].astype(v_ref.dtype)


def _mha_kernel(num_heads, scale, q_ref, k_ref, v_ref, bias_ref, o_ref):
    """One (batch, query-tile) grid step; per-head REF slices; single lane-dense store."""
    inner = o_ref.shape[-1]
    Dh = inner // num_heads
    bias = bias_ref[...].astype(jnp.float32)              # (1, T) key-padding bias
    outs = []
    for h in range(num_heads):
        off = h * Dh
        q = q_ref[:, off:off + Dh]                         # static ref slices: only the
        k = k_ref[:, off:off + Dh]                         # needed (T|tq, Dh) is loaded
        v = v_ref[:, off:off + Dh]
        s = lax.dot_general(q, k, (((1,), (1,)), ((), ())),
                            preferred_element_type=jnp.float32) * scale
        s = s + bias
        s = s - jnp.max(s, axis=-1, keepdims=True)
        p = jnp.exp(s)
        p = p * (1.0 / jnp.sum(p, axis=-1, keepdims=True))   # exact division
        outs.append(jnp.dot(p.astype(v.dtype), v, preferred_element_type=jnp.float32))
    # single lane-dense (tq, inner) store instead of per-head sub-128-lane stores
    o_ref[...] = jnp.concatenate(outs, axis=-1).astype(o_ref.dtype)
    # TODO(synk): flash-style online-softmax over a KV grid axis for very long T.


def _resnet_block1_kernel(has_skip, *refs):
    """block1 (CausalConv+LN+Mish+mask) fused with the 1x1 residual projection, the
    time-embedding add and (for up blocks) the skip-channel concatenation."""
    if has_skip:
        (x_ref, s_ref, m_ref, w_ref, b_ref, g_ref, beta_ref,
         rw_ref, rb_ref, tp_ref, h_ref, res_ref, pad_ref) = refs
    else:
        (x_ref, m_ref, w_ref, b_ref, g_ref, beta_ref,
         rw_ref, rb_ref, tp_ref, h_ref, res_ref, pad_ref) = refs
        s_ref = None
    m = m_ref[...]
    x1 = x_ref[...] * m
    C1 = x1.shape[-1]
    _zero_pad_rows(pad_ref)
    _fill_pad(pad_ref, x1, col_off=0)
    # residual path: res_conv([x ; skip] * mask) using the already-loaded tiles
    res = jnp.dot(x1, rw_ref[0:C1, :], preferred_element_type=jnp.float32)
    if has_skip:
        x2 = s_ref[...] * m
        C2 = x2.shape[-1]
        _fill_pad(pad_ref, x2, col_off=C1)
        res = res + jnp.dot(x2, rw_ref[C1:C1 + C2, :], preferred_element_type=jnp.float32)
    res = res + rb_ref[...].astype(jnp.float32)
    res_ref[...] = res.astype(res_ref.dtype)
    # main path: Mish(LN(causal_conv([x ; skip]*mask))) * mask + time_proj
    acc = _conv_taps(pad_ref, w_ref) + b_ref[...].astype(jnp.float32)
    y = _mish(_ln_f32(acc, g_ref[...].astype(jnp.float32), beta_ref[...].astype(jnp.float32)))
    y = y * m.astype(jnp.float32) + tp_ref[...].astype(jnp.float32)
    h_ref[...] = y.astype(h_ref.dtype)


def _resnet_block2_kernel(h_ref, m_ref, w_ref, b_ref, g_ref, beta_ref,
                          res_ref, o_ref, pad_ref):
    """block2 (CausalConv+LN+Mish+mask) fused with the residual add."""
    m = m_ref[...]
    hm = h_ref[...] * m
    _zero_pad_rows(pad_ref)
    _fill_pad(pad_ref, hm)
    acc = _conv_taps(pad_ref, w_ref) + b_ref[...].astype(jnp.float32)
    y = _mish(_ln_f32(acc, g_ref[...].astype(jnp.float32), beta_ref[...].astype(jnp.float32)))
    y = y * m.astype(jnp.float32) + res_ref[...].astype(jnp.float32)
    o_ref[...] = y.astype(o_ref.dtype)


def _causal_conv_kernel(x_ref, m_ref, w_ref, b_ref, o_ref, pad_ref):
    """Plain CausalConv1d (down/up 'sample' convs), mask fused in."""
    xm = x_ref[...] * m_ref[...]
    _zero_pad_rows(pad_ref)
    _fill_pad(pad_ref, xm)
    acc = _conv_taps(pad_ref, w_ref) + b_ref[...].astype(jnp.float32)
    o_ref[...] = acc.astype(o_ref.dtype)


def _final_block_kernel(x_ref, m_ref, w_ref, b_ref, g_ref, beta_ref,
                        pw_ref, pb_ref, o_ref, pad_ref):
    """final CausalBlock1D + final 1x1 projection + final mask, fused."""
    m = m_ref[...]
    mf = m.astype(jnp.float32)
    xm = x_ref[...] * m
    _zero_pad_rows(pad_ref)
    _fill_pad(pad_ref, xm)
    acc = _conv_taps(pad_ref, w_ref) + b_ref[...].astype(jnp.float32)
    y = _mish(_ln_f32(acc, g_ref[...].astype(jnp.float32), beta_ref[...].astype(jnp.float32))) * mf
    out = jnp.dot(y.astype(pw_ref.dtype), pw_ref[...], preferred_element_type=jnp.float32)
    out = out + pb_ref[...].astype(jnp.float32)
    o_ref[...] = (out * mf).astype(o_ref.dtype)


# ---------------------------------------------------------------------------
# pallas_call wrappers
# ---------------------------------------------------------------------------
def pallas_linear(x, w, b=None, act=None, residual=None):
    """x: (M, K) @ w: (K, N) (+ b) (+ act) (+ residual), row-tiled + pipelined."""
    M, Kd = x.shape
    N = w.shape[1]
    if b is None:
        b = jnp.zeros((1, N), w.dtype)
    tm = _row_tile(M)
    has_res = residual is not None
    arrs = [x, residual] if has_res else [x]
    arrs, Mp = _pad_rows(arrs, M, tm)
    x_p = arrs[0]
    in_specs = [
        pl.BlockSpec((tm, Kd), lambda i: (i, 0)),
        pl.BlockSpec((Kd, N), lambda i: (0, 0)),
        pl.BlockSpec((1, N), lambda i: (0, 0)),
    ]
    args = [x_p, w, b]
    if has_res:
        in_specs.append(pl.BlockSpec((tm, N), lambda i: (i, 0)))
        args.append(arrs[1])
    out = pl.pallas_call(
        functools.partial(_linear_kernel, act, has_res),
        grid=(Mp // tm,),
        in_specs=in_specs,
        out_specs=pl.BlockSpec((tm, N), lambda i: (i, 0)),
        out_shape=jax.ShapeDtypeStruct((Mp, N), x.dtype),
        compiler_params=_cparams(1),
    )(*args)
    return out[:M] if Mp != M else out


def pallas_ln_linear(x, g, bln, w, b, act=None):
    """Fused LayerNorm(x) @ w + b (+ act), row-tiled."""
    M, C = x.shape
    N = w.shape[1]
    tm = _row_tile(M)
    (x_p,), Mp = _pad_rows([x], M, tm)
    out = pl.pallas_call(
        functools.partial(_ln_linear_kernel, act),
        grid=(Mp // tm,),
        in_specs=[
            pl.BlockSpec((tm, C), lambda i: (i, 0)),
            pl.BlockSpec((1, C), lambda i: (0, 0)),
            pl.BlockSpec((1, C), lambda i: (0, 0)),
            pl.BlockSpec((C, N), lambda i: (0, 0)),
            pl.BlockSpec((1, N), lambda i: (0, 0)),
        ],
        out_specs=pl.BlockSpec((tm, N), lambda i: (i, 0)),
        out_shape=jax.ShapeDtypeStruct((Mp, N), x.dtype),
        compiler_params=_cparams(1),
    )(x_p, g, bln, w, b)
    return out[:M] if Mp != M else out


def pallas_ln_qkv(x, g, bln, w, b):
    """Fused LayerNorm + QKV projection; returns (q, k, v) each (M, inner)."""
    M, C = x.shape
    N = w.shape[1]
    inner = N // 3
    tm = _row_tile(M)
    (x_p,), Mp = _pad_rows([x], M, tm)
    out_spec = pl.BlockSpec((tm, inner), lambda i: (i, 0))
    q, k, v = pl.pallas_call(
        _ln_qkv_kernel,
        grid=(Mp // tm,),
        in_specs=[
            pl.BlockSpec((tm, C), lambda i: (i, 0)),
            pl.BlockSpec((1, C), lambda i: (0, 0)),
            pl.BlockSpec((1, C), lambda i: (0, 0)),
            pl.BlockSpec((C, N), lambda i: (0, 0)),
            pl.BlockSpec((1, N), lambda i: (0, 0)),
        ],
        out_specs=(out_spec, out_spec, out_spec),
        out_shape=tuple(jax.ShapeDtypeStruct((Mp, inner), x.dtype) for _ in range(3)),
        compiler_params=_cparams(1),
    )(x_p, g, bln, w, b)
    if Mp != M:
        q, k, v = q[:M], k[:M], v[:M]
    return q, k, v


def mha(q, k, v, bias, num_heads, head_dim):
    """q, k, v: (B, T, inner); bias: (B, 1, T) additive key-padding bias.
    Grid = (B, query tiles): query-tiled scores, all heads per grid step."""
    B, T, inner = q.shape
    if T > Q_TILE:
        tq = Q_TILE
        Tp = ((T + tq - 1) // tq) * tq
        if Tp != T:
            q = jnp.pad(q, ((0, 0), (0, Tp - T), (0, 0)))   # zero q rows are harmless
    else:
        tq, Tp = T, T
    out = pl.pallas_call(
        functools.partial(_mha_kernel, num_heads, float(head_dim) ** -0.5),
        grid=(B, Tp // tq),
        in_specs=[
            pl.BlockSpec((None, tq, inner), lambda b, qi: (b, qi, 0)),
            pl.BlockSpec((None, T, inner), lambda b, qi: (b, 0, 0)),
            pl.BlockSpec((None, T, inner), lambda b, qi: (b, 0, 0)),
            pl.BlockSpec((None, 1, T), lambda b, qi: (b, 0, 0)),
        ],
        out_specs=pl.BlockSpec((None, tq, inner), lambda b, qi: (b, qi, 0)),
        out_shape=jax.ShapeDtypeStruct((B, Tp, inner), q.dtype),
        compiler_params=_cparams(2),
    )(q, k, v, bias)
    return out[:, :T] if Tp != T else out


def causal_conv1d(x, m, w, b):
    """CausalConv1d with the mask multiply fused; x (B,T,Cin), w (K,Cin,Cout), m (B,T,1)."""
    B, T, Cin = x.shape
    K, _, Cout = w.shape
    return pl.pallas_call(
        _causal_conv_kernel,
        grid=(B,),
        in_specs=[
            pl.BlockSpec((None, T, Cin), lambda i: (i, 0, 0)),
            pl.BlockSpec((None, T, 1), lambda i: (i, 0, 0)),
            pl.BlockSpec((K, Cin, Cout), lambda i: (0, 0, 0)),
            pl.BlockSpec((1, Cout), lambda i: (0, 0)),
        ],
        out_specs=pl.BlockSpec((None, T, Cout), lambda i: (i, 0, 0)),
        out_shape=jax.ShapeDtypeStruct((B, T, Cout), x.dtype),
        scratch_shapes=[pltpu.VMEM((T + _SUBLANE, Cin), x.dtype)],
        compiler_params=_cparams(1),
    )(x, m, w, b)


def resnet_block(p, x, m, temb_m, skip=None):
    """CausalResnetBlock1D fused into 2 conv kernels + a tiny time-projection matmul.
    When `skip` is given (up blocks) the channel concatenation is fused into block1."""
    B, T, Cx = x.shape
    b1, b2 = p["block1"], p["block2"]
    K, Cin, Cout = b1["conv_w"].shape
    tproj = pallas_linear(temb_m, p["mlp_w"], p["mlp_b"]).reshape(B, 1, Cout)

    has_skip = skip is not None
    in_specs = [pl.BlockSpec((None, T, Cx), lambda b: (b, 0, 0))]
    args = [x]
    if has_skip:
        Cs = skip.shape[-1]
        in_specs.append(pl.BlockSpec((None, T, Cs), lambda b: (b, 0, 0)))
        args.append(skip)
    in_specs += [
        pl.BlockSpec((None, T, 1), lambda b: (b, 0, 0)),
        pl.BlockSpec((K, Cin, Cout), lambda b: (0, 0, 0)),
        pl.BlockSpec((1, Cout), lambda b: (0, 0)),
        pl.BlockSpec((1, Cout), lambda b: (0, 0)),
        pl.BlockSpec((1, Cout), lambda b: (0, 0)),
        pl.BlockSpec((Cin, Cout), lambda b: (0, 0)),
        pl.BlockSpec((1, Cout), lambda b: (0, 0)),
        pl.BlockSpec((None, 1, Cout), lambda b: (b, 0, 0)),
    ]
    args += [m, b1["conv_w"], b1["conv_b"], b1["ln_g"], b1["ln_b"],
             p["res_w"], p["res_b"], tproj]

    h1, res = pl.pallas_call(
        functools.partial(_resnet_block1_kernel, has_skip),
        grid=(B,),
        in_specs=in_specs,
        out_specs=(pl.BlockSpec((None, T, Cout), lambda b: (b, 0, 0)),
                   pl.BlockSpec((None, T, Cout), lambda b: (b, 0, 0))),
        out_shape=(jax.ShapeDtypeStruct((B, T, Cout), x.dtype),
                   jax.ShapeDtypeStruct((B, T, Cout), x.dtype)),
        scratch_shapes=[pltpu.VMEM((T + _SUBLANE, Cin), x.dtype)],
        compiler_params=_cparams(1),
    )(*args)

    h = pl.pallas_call(
        _resnet_block2_kernel,
        grid=(B,),
        in_specs=[
            pl.BlockSpec((None, T, Cout), lambda b: (b, 0, 0)),
            pl.BlockSpec((None, T, 1), lambda b: (b, 0, 0)),
            pl.BlockSpec((K, Cout, Cout), lambda b: (0, 0, 0)),
            pl.BlockSpec((1, Cout), lambda b: (0, 0)),
            pl.BlockSpec((1, Cout), lambda b: (0, 0)),
            pl.BlockSpec((1, Cout), lambda b: (0, 0)),
            pl.BlockSpec((None, T, Cout), lambda b: (b, 0, 0)),
        ],
        out_specs=pl.BlockSpec((None, T, Cout), lambda b: (b, 0, 0)),
        out_shape=jax.ShapeDtypeStruct((B, T, Cout), x.dtype),
        scratch_shapes=[pltpu.VMEM((T + _SUBLANE, Cout), x.dtype)],
        compiler_params=_cparams(1),
    )(h1, m, b2["conv_w"], b2["conv_b"], b2["ln_g"], b2["ln_b"], res)
    return h


def transformer_block(p, x, attn_bias, num_heads, head_dim):
    """BasicTransformerBlock (layer_norm type): 5 fused pallas_calls."""
    B, T, C = x.shape
    xf = x.reshape(B * T, C)
    q, k, v = pallas_ln_qkv(xf, p["ln1_g"], p["ln1_b"], p["wqkv"], p["bqkv"])   # LN1 + QKV
    inner = q.shape[-1]
    attn = mha(q.reshape(B, T, inner), k.reshape(B, T, inner), v.reshape(B, T, inner),
               attn_bias, num_heads, head_dim)
    x1 = pallas_linear(attn.reshape(B * T, inner), p["wo"], p["bo"], residual=xf)
    ff = pallas_ln_linear(x1, p["ln3_g"], p["ln3_b"], p["ff_w1"], p["ff_b1"], act="gelu")
    x2 = pallas_linear(ff, p["ff_w2"], p["ff_b2"], residual=x1)
    return x2.reshape(B, T, C)


def final_block_proj(p_block, p_proj, x, m):
    B, T, C = x.shape
    K, _, Cout = p_block["conv_w"].shape
    Nout = p_proj["w"].shape[1]
    return pl.pallas_call(
        _final_block_kernel,
        grid=(B,),
        in_specs=[
            pl.BlockSpec((None, T, C), lambda b: (b, 0, 0)),
            pl.BlockSpec((None, T, 1), lambda b: (b, 0, 0)),
            pl.BlockSpec((K, C, Cout), lambda b: (0, 0, 0)),
            pl.BlockSpec((1, Cout), lambda b: (0, 0)),
            pl.BlockSpec((1, Cout), lambda b: (0, 0)),
            pl.BlockSpec((1, Cout), lambda b: (0, 0)),
            pl.BlockSpec((Cout, Nout), lambda b: (0, 0)),
            pl.BlockSpec((1, Nout), lambda b: (0, 0)),
        ],
        out_specs=pl.BlockSpec((None, T, Nout), lambda b: (b, 0, 0)),
        out_shape=jax.ShapeDtypeStruct((B, T, Nout), x.dtype),
        scratch_shapes=[pltpu.VMEM((T + _SUBLANE, C), x.dtype)],
        compiler_params=_cparams(1),
    )(x, m, p_block["conv_w"], p_block["conv_b"], p_block["ln_g"], p_block["ln_b"],
      p_proj["w"], p_proj["b"])


# ---------------------------------------------------------------------------
# full forward pass
# ---------------------------------------------------------------------------
def sinusoidal_pos_emb(t, dim, scale=1000.0):
    half = dim // 2
    emb = math.log(10000.0) / (half - 1)
    freqs = jnp.exp(jnp.arange(half, dtype=jnp.float32) * -emb)
    arg = scale * t[:, None] * freqs[None, :]
    return jnp.concatenate([jnp.sin(arg), jnp.cos(arg)], axis=-1)


def conditional_decoder_forward(params, x, mask, mu, t, spks, cond, cfg):
    """PyTorch conventions: x, mu, cond: (B, feat, T); mask: (B, 1, T); t: (B,);
       spks: (B, feat). Returns (B, out_channels, T) in float32."""
    B, Cf, T = x.shape
    dtype = COMPUTE_DTYPE

    # time embedding -> TimestepEmbedding (linear -> silu -> linear).
    # The per-resnet Mish(temb) is identical everywhere, so it is fused once as the
    # output activation of the second linear.
    temb = sinusoidal_pos_emb(t, cfg["in_channels"]).astype(dtype)
    temb = pallas_linear(temb, params["time_mlp"]["w1"], params["time_mlp"]["b1"], act="silu")
    temb_m = pallas_linear(temb, params["time_mlp"]["w2"], params["time_mlp"]["b2"], act="mish")

    # pack([x, mu, spks(broadcast over t), cond]) along channels, go channels-last.
    # bf16 cast happens BEFORE the concat/transpose (halves boundary HBM traffic).
    spks_r = jnp.broadcast_to(spks[:, :, None], (B, spks.shape[1], T))
    h = jnp.concatenate([x.astype(dtype), mu.astype(dtype),
                         spks_r.astype(dtype), cond.astype(dtype)], axis=1)
    h = jnp.transpose(h, (0, 2, 1))                              # (B, T, C)
    m = jnp.transpose(mask, (0, 2, 1)).astype(dtype)             # (B, T, 1)
    # add_optional_chunk_mask(static_chunk_size=0) == mask; mask_to_bias(mask==1)
    attn_bias = ((1.0 - mask) * -10000000000.0).astype(dtype)    # (B, 1, T)

    nh, hd = cfg["num_heads"], cfg["attention_head_dim"]
    hiddens = []
    for blk in params["down_blocks"]:
        h = resnet_block(blk["resnet"], h, m, temb_m)
        for tp in blk["transformers"]:
            h = transformer_block(tp, h, attn_bias, nh, hd)
        hiddens.append(h)
        h = causal_conv1d(h, m, blk["down_w"], blk["down_b"])    # is_last -> CausalConv1d(3)

    for blk in params["mid_blocks"]:
        h = resnet_block(blk["resnet"], h, m, temb_m)
        for tp in blk["transformers"]:
            h = transformer_block(tp, h, attn_bias, nh, hd)

    for blk in params["up_blocks"]:
        skip = hiddens.pop()
        if h.shape[1] != skip.shape[1]:
            h = h[:, :skip.shape[1], :]
        h = resnet_block(blk["resnet"], h, m, temb_m, skip=skip)  # concat fused in-kernel
        for tp in blk["transformers"]:
            h = transformer_block(tp, h, attn_bias, nh, hd)
        h = causal_conv1d(h, m, blk["up_w"], blk["up_b"])        # is_last -> CausalConv1d(3)

    out = final_block_proj(params["final_block"], params["final_proj"], h, m)
    return jnp.transpose(out, (0, 2, 1)).astype(jnp.float32)     # (B, out_channels, T)


# ---------------------------------------------------------------------------
# deterministic parameter construction (kaiming-normal weights, zero bias,
# LayerNorm gamma=1 / beta=0 — matching initialize_weights), stored in bf16
# ---------------------------------------------------------------------------
def init_params(key, cfg, dtype=COMPUTE_DTYPE):
    in_ch = cfg["in_channels"]
    ch = cfg["channels"][0]
    ted = ch * 4
    keys = iter(jax.random.split(key, 4096))

    def dense(shape, fan_in):
        w = jax.random.normal(next(keys), shape, jnp.float32) * math.sqrt(2.0 / fan_in)
        return w.astype(dtype)

    def vec(n, val=0.0):
        return jnp.full((1, n), val, dtype)

    def causal_block_p(cin, cout, k=3):
        return dict(conv_w=dense((k, cin, cout), cin * k), conv_b=vec(cout),
                    ln_g=vec(cout, 1.0), ln_b=vec(cout))

    def resnet_p(cin, cout):
        return dict(block1=causal_block_p(cin, cout),
                    block2=causal_block_p(cout, cout),
                    mlp_w=dense((ted, cout), ted), mlp_b=vec(cout),
                    res_w=dense((cin, cout), cin), res_b=vec(cout))

    def transformer_p(dim):
        inner = cfg["num_heads"] * cfg["attention_head_dim"]
        hidden = dim * 4
        return dict(ln1_g=vec(dim, 1.0), ln1_b=vec(dim),
                    wqkv=dense((dim, 3 * inner), dim), bqkv=vec(3 * inner),  # to_q/k/v: no bias
                    wo=dense((inner, dim), inner), bo=vec(dim),
                    ln3_g=vec(dim, 1.0), ln3_b=vec(dim),
                    ff_w1=dense((dim, hidden), dim), ff_b1=vec(hidden),
                    ff_w2=dense((hidden, dim), hidden), ff_b2=vec(dim))

    return dict(
        time_mlp=dict(w1=dense((in_ch, ted), in_ch), b1=vec(ted),
                      w2=dense((ted, ted), ted), b2=vec(ted)),
        down_blocks=[dict(resnet=resnet_p(in_ch, ch),
                          transformers=[transformer_p(ch) for _ in range(cfg["n_blocks"])],
                          down_w=dense((3, ch, ch), ch * 3), down_b=vec(ch))],
        mid_blocks=[dict(resnet=resnet_p(ch, ch),
                         transformers=[transformer_p(ch) for _ in range(cfg["n_blocks"])])
                    for _ in range(cfg["num_mid_blocks"])],
        up_blocks=[dict(resnet=resnet_p(ch * 2, ch),
                        transformers=[transformer_p(ch) for _ in range(cfg["n_blocks"])],
                        up_w=dense((3, ch, ch), ch * 3), up_b=vec(ch))],
        final_block=causal_block_p(ch, ch),
        final_proj=dict(w=dense((ch, cfg["out_channels"]), ch),
                        b=vec(cfg["out_channels"])),
    )


# ---------------------------------------------------------------------------
if __name__ == "__main__":
    # Small synthetic configuration (same structure as the PyTorch defaults,
    # with channels scaled down: in_channels=320->32, channels=[256]->[32], etc.)
    cfg = dict(in_channels=32, out_channels=8, channels=[32],
               num_heads=4, attention_head_dim=8, n_blocks=1, num_mid_blocks=2)
    B, T = 2, 16
    feat = cfg["in_channels"] // 4     # x, mu, spks, cond each contribute `feat` channels

    key = jax.random.PRNGKey(0)
    kp, kx, kmu, kt, ks, kc = jax.random.split(key, 6)
    params = init_params(kp, cfg)

    x = jax.random.normal(kx, (B, feat, T), jnp.float32)
    mu = jax.random.normal(kmu, (B, feat, T), jnp.float32)
    spks = jax.random.normal(ks, (B, feat), jnp.float32)
    cond = jax.random.normal(kc, (B, feat, T), jnp.float32)
    t = jax.random.uniform(kt, (B,), jnp.float32)
    lengths = jnp.array([T, T - 4])
    mask = (jnp.arange(T)[None, :] < lengths[:, None]).astype(jnp.float32)[:, None, :]  # (B,1,T)

    fwd = jax.jit(functools.partial(conditional_decoder_forward, cfg=cfg))
    out = fwd(params, x, mask, mu, t, spks, cond)
    out = jax.block_until_ready(out)

    assert out.shape == (B, cfg["out_channels"], T), out.shape
    assert bool(jnp.all(jnp.isfinite(out)))
    print("KERNEL_OK")
</pallas_src>

<mosaic_0001>
module attributes {stable_mosaic.version = 11 : i64} {
  func.func @_linear_kernel(%arg0: i32, %arg1: memref<2x128xbf16, #tpu.memory_space<vmem>>, %arg2: memref<128x128xbf16, #tpu.memory_space<vmem>>, %arg3: memref<1x128xbf16, #tpu.memory_space<vmem>>, %arg4: memref<2x128xbf16, #tpu.memory_space<vmem>>) attributes {dimension_semantics = [#tpu.dimension_semantics<parallel>], iteration_bounds = array<i64: 1>, scalar_prefetch = 0 : i64, scratch_operands = 0 : i64, tpu.core_type = #tpu.core_type<tc>, window_params = [{transform_indices = @transform_0, window_bounds = array<i64: 2, 128>}, {pipeline_mode = #tpu.pipeline_mode<synchronous>, transform_indices = @transform_1, window_bounds = array<i64: 128, 128>}, {pipeline_mode = #tpu.pipeline_mode<synchronous>, transform_indices = @transform_2, window_bounds = array<i64: 1, 128>}, {transform_indices = @transform_3, window_bounds = array<i64: 2, 128>}]} {
    %c0 = arith.constant 0 : index
    %c0_0 = arith.constant 0 : index
    %0 = vector.load %arg1[%c0, %c0_0] : memref<2x128xbf16, #tpu.memory_space<vmem>>, vector<2x128xbf16>
    %c0_1 = arith.constant 0 : index
    %c0_2 = arith.constant 0 : index
    %1 = vector.load %arg2[%c0_1, %c0_2] : memref<128x128xbf16, #tpu.memory_space<vmem>>, vector<128x128xbf16>
    %cst = arith.constant dense<0.000000e+00> : vector<2x128xf32>
    %2 = tpu.matmul %0, %1, %cst {dimension_numbers = #tpu.dot_dimension_numbers<[1], [0], [0], [1], [0, 0, 1, 1], [], []>} : vector<2x128xbf16>, vector<128x128xbf16>, vector<2x128xf32> -> vector<2x128xf32>
    %c0_3 = arith.constant 0 : index
    %c0_4 = arith.constant 0 : index
    %3 = vector.load %arg3[%c0_3, %c0_4] : memref<1x128xbf16, #tpu.memory_space<vmem>>, vector<1x128xbf16>
    %4 = arith.extf %3 : vector<1x128xbf16> to vector<1x128xf32>
    %5 = vector.broadcast %4 : vector<1x128xf32> to vector<2x128xf32>
    %6 = arith.addf %2, %5 : vector<2x128xf32>
    %cst_5 = arith.constant 0.000000e+00 : f32
    %7 = vector.broadcast %cst_5 : f32 to vector<2x128xf32>
    %8 = arith.maximumf %6, %7 : vector<2x128xf32>
    %9 = math.absf %6 : vector<2x128xf32>
    %cst_6 = arith.constant 0.000000e+00 : f32
    %10 = vector.broadcast %cst_6 : f32 to vector<2x128xf32>
    %11 = arith.subf %10, %9 : vector<2x128xf32>
    %12 = math.exp %11 : vector<2x128xf32>
    %cst_7 = arith.constant 1.000000e+00 : f32
    %13 = vector.broadcast %cst_7 : f32 to vector<2x128xf32>
    %14 = arith.addf %13, %12 : vector<2x128xf32>
    %15 = math.log %14 : vector<2x128xf32>
    %16 = arith.addf %8, %15 : vector<2x128xf32>
    %17 = math.tanh %16 : vector<2x128xf32>
    %18 = arith.mulf %6, %17 : vector<2x128xf32>
    %19 = arith.truncf %18 : vector<2x128xf32> to vector<2x128xbf16>
    %c0_8 = arith.constant 0 : index
    %c0_9 = arith.constant 0 : index
    %20 = vector.load %arg4[%c0_8, %c0_9] : memref<2x128xbf16, #tpu.memory_space<vmem>>, vector<2x128xbf16>
    tpu.vector_store %arg4[%c0_8, %c0_9], %19 {strides = array<i32>} : memref<2x128xbf16, #tpu.memory_space<vmem>>, vector<2x128xbf16>,
    return
  }
  func.func @transform_0(%arg0: i32) -> (i32, i32) {
    %c0_i32 = arith.constant 0 : i32
    %c0_i32_0 = arith.constant 0 : i32
    return %arg0, %c0_i32 : i32, i32
  }
  func.func @transform_1(%arg0: i32) -> (i32, i32) {
    %c0_i32 = arith.constant 0 : i32
    %c0_i32_0 = arith.constant 0 : i32
    %c0_i32_1 = arith.constant 0 : i32
    return %c0_i32, %c0_i32_0 : i32, i32
  }
  func.func @transform_2(%arg0: i32) -> (i32, i32) {
    %c0_i32 = arith.constant 0 : i32
    %c0_i32_0 = arith.constant 0 : i32
    %c0_i32_1 = arith.constant 0 : i32
    return %c0_i32, %c0_i32_0 : i32, i32
  }
  func.func @transform_3(%arg0: i32) -> (i32, i32) {
    %c0_i32 = arith.constant 0 : i32
    %c0_i32_0 = arith.constant 0 : i32
    return %arg0, %c0_i32 : i32, i32
  }
}

module attributes {stable_mosaic.version = 11 : i64} {
  func.func @_linear_kernel(%arg0: i32, %arg1: memref<2x32xbf16, #tpu.memory_space<vmem>>, %arg2: memref<32x128xbf16, #tpu.memory_space<vmem>>, %arg3: memref<1x128xbf16, #tpu.memory_space<vmem>>, %arg4: memref<2x128xbf16, #tpu.memory_space<vmem>>) attributes {dimension_semantics = [#tpu.dimension_semantics<parallel>], iteration_bounds = array<i64: 1>, scalar_prefetch = 0 : i64, scratch_operands = 0 : i64, tpu.core_type = #tpu.core_type<tc>, window_params = [{transform_indices = @transform_0, window_bounds = array<i64: 2, 32>}, {pipeline_mode = #tpu.pipeline_mode<synchronous>, transform_indices = @transform_1, window_bounds = array<i64: 32, 128>}, {pipeline_mode = #tpu.pipeline_mode<synchronous>, transform_indices = @transform_2, window_bounds = array<i64: 1, 128>}, {transform_indices = @transform_3, window_bounds = array<i64: 2, 128>}]} {
    %c0 = arith.constant 0 : index
    %c0_0 = arith.constant 0 : index
    %0 = vector.load %arg1[%c0, %c0_0] : memref<2x32xbf16, #tpu.memory_space<vmem>>, vector<2x32xbf16>
    %c0_1 = arith.constant 0 : index
    %c0_2 = arith.constant 0 : index
    %1 = vector.load %arg2[%c0_1, %c0_2] : memref<32x128xbf16, #tpu.memory_space<vmem>>, vector<32x128xbf16>
    %cst = arith.constant dense<0.000000e+00> : vector<2x128xf32>
    %2 = tpu.matmul %0, %1, %cst {dimension_numbers = #tpu.dot_dimension_numbers<[1], [0], [0], [1], [0, 0, 1, 1], [], []>} : vector<2x32xbf16>, vector<32x128xbf16>, vector<2x128xf32> -> vector<2x128xf32>
    %c0_3 = arith.constant 0 : index
    %c0_4 = arith.constant 0 : index
    %3 = vector.load %arg3[%c0_3, %c0_4] : memref<1x128xbf16, #tpu.memory_space<vmem>>, vector<1x128xbf16>
    %4 = arith.extf %3 : vector<1x128xbf16> to vector<1x128xf32>
    %5 = vector.broadcast %4 : vector<1x128xf32> to vector<2x128xf32>
    %6 = arith.addf %2, %5 : vector<2x128xf32>
    %cst_5 = arith.constant 0.000000e+00 : f32
    %7 = vector.broadcast %cst_5 : f32 to vector<2x128xf32>
    %8 = arith.subf %7, %6 : vector<2x128xf32>
    %9 = math.exp %8 : vector<2x128xf32>
    %cst_6 = arith.constant 1.000000e+00 : f32
    %10 = vector.broadcast %cst_6 : f32 to vector<2x128xf32>
    %11 = arith.addf %10, %9 : vector<2x128xf32>
    %cst_7 = arith.constant 1.000000e+00 : f32
    %12 = vector.broadcast %cst_7 : f32 to vector<2x128xf32>
    %13 = arith.divf %12, %11 : vector<2x128xf32>
    %14 = arith.mulf %6, %13 : vector<2x128xf32>
    %15 = arith.truncf %14 : vector<2x128xf32> to vector<2x128xbf16>
    %c0_8 = arith.constant 0 : index
    %c0_9 = arith.constant 0 : index
    %16 = vector.load %arg4[%c0_8, %c0_9] : memref<2x128xbf16, #tpu.memory_space<vmem>>, vector<2x128xbf16>
    tpu.vector_store %arg4[%c0_8, %c0_9], %15 {strides = array<i32>} : memref<2x128xbf16, #tpu.memory_space<vmem>>, vector<2x128xbf16>,
    return
  }
  func.func @transform_0(%arg0: i32) -> (i32, i32) {
    %c0_i32 = arith.constant 0 : i32
    %c0_i32_0 = arith.constant 0 : i32
    return %arg0, %c0_i32 : i32, i32
  }
  func.func @transform_1(%arg0: i32) -> (i32, i32) {
    %c0_i32 = arith.constant 0 : i32
    %c0_i32_0 = arith.constant 0 : i32
    %c0_i32_1 = arith.constant 0 : i32
    return %c0_i32, %c0_i32_0 : i32, i32
  }
  func.func @transform_2(%arg0: i32) -> (i32, i32) {
    %c0_i32 = arith.constant 0 : i32
    %c0_i32_0 = arith.constant 0 : i32
    %c0_i32_1 = arith.constant 0 : i32
    return %c0_i32, %c0_i32_0 : i32, i32
  }
  func.func @transform_3(%arg0: i32) -> (i32, i32) {
    %c0_i32 = arith.constant 0 : i32
    %c0_i32_0 = arith.constant 0 : i32
    return %arg0, %c0_i32 : i32, i32
  }
}

module attributes {stable_mosaic.version = 11 : i64} {
  func.func @_linear_kernel(%arg0: i32, %arg1: memref<2x128xbf16, #tpu.memory_space<vmem>>, %arg2: memref<128x32xbf16, #tpu.memory_space<vmem>>, %arg3: memref<1x32xbf16, #tpu.memory_space<vmem>>, %arg4: memref<2x32xbf16, #tpu.memory_space<vmem>>) attributes {dimension_semantics = [#tpu.dimension_semantics<parallel>], iteration_bounds = array<i64: 1>, scalar_prefetch = 0 : i64, scratch_operands = 0 : i64, tpu.core_type = #tpu.core_type<tc>, window_params = [{transform_indices = @transform_0, window_bounds = array<i64: 2, 128>}, {pipeline_mode = #tpu.pipeline_mode<synchronous>, transform_indices = @transform_1, window_bounds = array<i64: 128, 32>}, {pipeline_mode = #tpu.pipeline_mode<synchronous>, transform_indices = @transform_2, window_bounds = array<i64: 1, 32>}, {transform_indices = @transform_3, window_bounds = array<i64: 2, 32>}]} {
    %c0 = arith.constant 0 : index
    %c0_0 = arith.constant 0 : index
    %0 = vector.load %arg1[%c0, %c0_0] : memref<2x128xbf16, #tpu.memory_space<vmem>>, vector<2x128xbf16>
    %c0_1 = arith.constant 0 : index
    %c0_2 = arith.constant 0 : index
    %1 = vector.load %arg2[%c0_1, %c0_2] : memref<128x32xbf16, #tpu.memory_space<vmem>>, vector<128x32xbf16>
    %cst = arith.constant dense<0.000000e+00> : vector<2x32xf32>
    %2 = tpu.matmul %0, %1, %cst {dimension_numbers = #tpu.dot_dimension_numbers<[1], [0], [0], [1], [0, 0, 1, 1], [], []>} : vector<2x128xbf16>, vector<128x32xbf16>, vector<2x32xf32> -> vector<2x32xf32>
    %c0_3 = arith.constant 0 : index
    %c0_4 = arith.constant 0 : index
    %3 = vector.load %arg3[%c0_3, %c0_4] : memref<1x32xbf16, #tpu.memory_space<vmem>>, vector<1x32xbf16>
    %4 = arith.extf %3 : vector<1x32xbf16> to vector<1x32xf32>
    %5 = vector.broadcast %4 : vector<1x32xf32> to vector<2x32xf32>
    %6 = arith.addf %2, %5 : vector<2x32xf32>
    %7 = arith.truncf %6 : vector<2x32xf32> to vector<2x32xbf16>
    %c0_5 = arith.constant 0 : index
    %c0_6 = arith.constant 0 : index
    %8 = vector.load %arg4[%c0_5, %c0_6] : memref<2x32xbf16, #tpu.memory_space<vmem>>, vector<2x32xbf16>
    tpu.vector_store %arg4[%c0_5, %c0_6], %7 {strides = array<i32>} : memref<2x32xbf16, #tpu.memory_space<vmem>>, vector<2x32xbf16>,
    return
  }
  func.func @transform_0(%arg0: i32) -> (i32, i32) {
    %c0_i32 = arith.constant 0 : i32
    %c0_i32_0 = arith.constant 0 : i32
    return %arg0, %c0_i32 : i32, i32
  }
  func.func @transform_1(%arg0: i32) -> (i32, i32) {
    %c0_i32 = arith.constant 0 : i32
    %c0_i32_0 = arith.constant 0 : i32
    %c0_i32_1 = arith.constant 0 : i32
    return %c0_i32, %c0_i32_0 : i32, i32
  }
  func.func @transform_2(%arg0: i32) -> (i32, i32) {
    %c0_i32 = arith.constant 0 : i32
    %c0_i32_0 = arith.constant 0 : i32
    %c0_i32_1 = arith.constant 0 : i32
    return %c0_i32, %c0_i32_0 : i32, i32
  }
  func.func @transform_3(%arg0: i32) -> (i32, i32) {
    %c0_i32 = arith.constant 0 : i32
    %c0_i32_0 = arith.constant 0 : i32
    return %arg0, %c0_i32 : i32, i32
  }
}

module attributes {stable_mosaic.version = 11 : i64} {
  func.func @_resnet_block1_kernel(%arg0: i32, %arg1: memref<1x16x32xbf16, #tpu.memory_space<vmem>>, %arg2: memref<1x16x1xbf16, #tpu.memory_space<vmem>>, %arg3: memref<3x32x32xbf16, #tpu.memory_space<vmem>>, %arg4: memref<1x32xbf16, #tpu.memory_space<vmem>>, %arg5: memref<1x32xbf16, #tpu.memory_space<vmem>>, %arg6: memref<1x32xbf16, #tpu.memory_space<vmem>>, %arg7: memref<32x32xbf16, #tpu.memory_space<vmem>>, %arg8: memref<1x32xbf16, #tpu.memory_space<vmem>>, %arg9: memref<1x1x32xbf16, #tpu.memory_space<vmem>>, %arg10: memref<1x16x32xbf16, #tpu.memory_space<vmem>>, %arg11: memref<1x16x32xbf16, #tpu.memory_space<vmem>>, %arg12: memref<24x32xbf16, #tpu.memory_space<vmem>>) attributes {dimension_semantics = [#tpu.dimension_semantics<parallel>], iteration_bounds = array<i64: 2>, scalar_prefetch = 0 : i64, scratch_operands = 1 : i64, tpu.core_type = #tpu.core_type<tc>, window_params = [{transform_indices = @transform_0, window_bounds = array<i64: 1, 16, 32>}, {transform_indices = @transform_1, window_bounds = array<i64: 1, 16, 1>}, {pipeline_mode = #tpu.pipeline_mode<synchronous>, transform_indices = @transform_2, window_bounds = array<i64: 3, 32, 32>}, {pipeline_mode = #tpu.pipeline_mode<synchronous>, transform_indices = @transform_3, window_bounds = array<i64: 1, 32>}, {pipeline_mode = #tpu.pipeline_mode<synchronous>, transform_indices = @transform_4, window_bounds = array<i64: 1, 32>}, {pipeline_mode = #tpu.pipeline_mode<synchronous>, transform_indices = @transform_5, window_bounds = array<i64: 1, 32>}, {pipeline_mode = #tpu.pipeline_mode<synchronous>, transform_indices = @transform_6, window_bounds = array<i64: 32, 32>}, {pipeline_mode = #tpu.pipeline_mode<synchronous>, transform_indices = @transform_7, window_bounds = array<i64: 1, 32>}, {transform_indices = @transform_8, window_bounds = array<i64: 1, 1, 32>}, {transform_indices = @transform_9, window_bounds = array<i64: 1, 16, 32>}, {transform_indices = @transform_10, window_bounds = array<i64: 1, 16, 32>}]} {
    %c0 = arith.constant 0 : index
    %c0_0 = arith.constant 0 : index
    %c0_1 = arith.constant 0 : index
    %0 = vector.load %arg2[%c0, %c0_0, %c0_1] : memref<1x16x1xbf16, #tpu.memory_space<vmem>>, vector<1x16x1xbf16>
    %1 = vector.shape_cast %0 : vector<1x16x1xbf16> to vector<16x1xbf16>
    %c0_2 = arith.constant 0 : index
    %c0_3 = arith.constant 0 : index
    %c0_4 = arith.constant 0 : index
    %2 = vector.load %arg1[%c0_2, %c0_3, %c0_4] : memref<1x16x32xbf16, #tpu.memory_space<vmem>>, vector<1x16x32xbf16>
    %3 = vector.shape_cast %2 : vector<1x16x32xbf16> to vector<16x32xbf16>
    %4 = vector.broadcast %1 : vector<16x1xbf16> to vector<16x32xbf16>
    %5 = arith.mulf %3, %4 : vector<16x32xbf16>
    %cst = arith.constant 0.000000e+00 : bf16
    %6 = vector.broadcast %cst : bf16 to vector<8x32xbf16>
    %c0_5 = arith.constant 0 : index
    %c0_6 = arith.constant 0 : index
    %7 = vector.load %arg12[%c0_5, %c0_6] : memref<24x32xbf16, #tpu.memory_space<vmem>>, vector<8x32xbf16>
    tpu.vector_store %arg12[%c0_5, %c0_6], %6 {strides = array<i32>} : memref<24x32xbf16, #tpu.memory_space<vmem>>, vector<8x32xbf16>,
    %c8 = arith.constant 8 : index
    %c0_7 = arith.constant 0 : index
    %8 = vector.load %arg12[%c8, %c0_7] : memref<24x32xbf16, #tpu.memory_space<vmem>>, vector<16x32xbf16>
    tpu.vector_store %arg12[%c8, %c0_7], %5 {strides = array<i32>} : memref<24x32xbf16, #tpu.memory_space<vmem>>, vector<16x32xbf16>,
    %c0_8 = arith.constant 0 : index
    %c0_9 = arith.constant 0 : index
    %9 = vector.load %arg7[%c0_8, %c0_9] : memref<32x32xbf16, #tpu.memory_space<vmem>>, vector<32x32xbf16>
    %cst_10 = arith.constant dense<0.000000e+00> : vector<16x32xf32>
    %10 = tpu.matmul %5, %9, %cst_10 {dimension_numbers = #tpu.dot_dimension_numbers<[1], [0], [0], [1], [0, 0, 1, 1], [], []>} : vector<16x32xbf16>, vector<32x32xbf16>, vector<16x32xf32> -> vector<16x32xf32>
    %c0_11 = arith.constant 0 : index
    %c0_12 = arith.constant 0 : index
    %11 = vector.load %arg8[%c0_11, %c0_12] : memref<1x32xbf16, #tpu.memory_space<vmem>>, vector<1x32xbf16>
    %12 = arith.extf %11 : vector<1x32xbf16> to vector<1x32xf32>
    %13 = vector.broadcast %12 : vector<1x32xf32> to vector<16x32xf32>
    %14 = arith.addf %10, %13 : vector<16x32xf32>
    %15 = arith.truncf %14 : vector<16x32xf32> to vector<16x32xbf16>
    %c0_13 = arith.constant 0 : index
    %c0_14 = arith.constant 0 : index
    %c0_15 = arith.constant 0 : index
    %16 = vector.load %arg11[%c0_13, %c0_14, %c0_15] : memref<1x16x32xbf16, #tpu.memory_space<vmem>>, vector<1x16x32xbf16>
    %17 = vector.shape_cast %16 : vector<1x16x32xbf16> to vector<16x32xbf16>
    %18 = vector.shape_cast %15 : vector<16x32xbf16> to vector<1x16x32xbf16>
    tpu.vector_store %arg11[%c0_13, %c0_14, %c0_15], %18 {strides = array<i32>} : memref<1x16x32xbf16, #tpu.memory_space<vmem>>, vector<1x16x32xbf16>,
    %cst_16 = arith.constant 0.000000e+00 : f32
    %19 = vector.broadcast %cst_16 : f32 to vector<16x32xf32>
    %c6 = arith.constant 6 : index
    %c0_17 = arith.constant 0 : index
    %20 = vector.load %arg12[%c6, %c0_17] : memref<24x32xbf16, #tpu.memory_space<vmem>>, vector<16x32xbf16>
    %c0_18 = arith.constant 0 : index
    %c0_19 = arith.constant 0 : index
    %c0_20 = arith.constant 0 : index
    %21 = vector.load %arg3[%c0_18, %c0_19, %c0_20] : memref<3x32x32xbf16, #tpu.memory_space<vmem>>, vector<1x32x32xbf16>
    %22 = vector.shape_cast %21 : vector<1x32x32xbf16> to vector<32x32xbf16>
    %cst_21 = arith.constant dense<0.000000e+00> : vector<16x32xf32>
    %23 = tpu.matmul %20, %22, %cst_21 {dimension_numbers = #tpu.dot_dimension_numbers<[1], [0], [0], [1], [0, 0, 1, 1], [], []>} : vector<16x32xbf16>, vector<32x32xbf16>, vector<16x32xf32> -> vector<16x32xf32>
    %24 = arith.addf %19, %23 : vector<16x32xf32>
    %c7 = arith.constant 7 : index
    %c0_22 = arith.constant 0 : index
    %25 = vector.load %arg12[%c7, %c0_22] : memref<24x32xbf16, #tpu.memory_space<vmem>>, vector<16x32xbf16>
    %c1 = arith.constant 1 : index
    %c0_23 = arith.constant 0 : index
    %c0_24 = arith.constant 0 : index
    %26 = vector.load %arg3[%c1, %c0_23, %c0_24] : memref<3x32x32xbf16, #tpu.memory_space<vmem>>, vector<1x32x32xbf16>
    %27 = vector.shape_cast %26 : vector<1x32x32xbf16> to vector<32x32xbf16>
    %cst_25 = arith.constant dense<0.000000e+00> : vector<16x32xf32>
    %28 = tpu.matmul %25, %27, %cst_25 {dimension_numbers = #tpu.dot_dimension_numbers<[1], [0], [0], [1], [0, 0, 1, 1], [], []>} : vector<16x32xbf16>, vector<32x32xbf16>, vector<16x32xf32> -> vector<16x32xf32>
    %29 = arith.addf %24, %28 : vector<16x32xf32>
    %c8_26 = arith.constant 8 : index
    %c0_27 = arith.constant 0 : index
    %30 = vector.load %arg12[%c8_26, %c0_27] : memref<24x32xbf16, #tpu.memory_space<vmem>>, vector<16x32xbf16>
    %c2 = arith.constant 2 : index
    %c0_28 = arith.constant 0 : index
    %c0_29 = arith.constant 0 : index
    %31 = vector.load %arg3[%c2, %c0_28, %c0_29] : memref<3x32x32xbf16, #tpu.memory_space<vmem>>, vector<1x32x32xbf16>
    %32 = vector.shape_cast %31 : vector<1x32x32xbf16> to vector<32x32xbf16>
    %cst_30 = arith.constant dense<0.000000e+00> : vector<16x32xf32>
    %33 = tpu.matmul %30, %32, %cst_30 {dimension_numbers = #tpu.dot_dimension_numbers<[1], [0], [0], [1], [0, 0, 1, 1], [], []>} : vector<16x32xbf16>, vector<32x32xbf16>, vector<16x32xf32> -> vector<16x32xf32>
    %34 = arith.addf %29, %33 : vector<16x32xf32>
    %c0_31 = arith.constant 0 : index
    %c0_32 = arith.constant 0 : index
    %35 = vector.load %arg4[%c0_31, %c0_32] : memref<1x32xbf16, #tpu.memory_space<vmem>>, vector<1x32xbf16>
    %36 = arith.extf %35 : vector<1x32xbf16> to vector<1x32xf32>
    %37 = vector.broadcast %36 : vector<1x32xf32> to vector<16x32xf32>
    %38 = arith.addf %34, %37 : vector<16x32xf32>
    %c0_33 = arith.constant 0 : index
    %c0_34 = arith.constant 0 : index
    %39 = vector.load %arg5[%c0_33, %c0_34] : memref<1x32xbf16, #tpu.memory_space<vmem>>, vector<1x32xbf16>
    %40 = arith.extf %39 : vector<1x32xbf16> to vector<1x32xf32>
    %c0_35 = arith.constant 0 : index
    %c0_36 = arith.constant 0 : index
    %41 = vector.load %arg6[%c0_35, %c0_36] : memref<1x32xbf16, #tpu.memory_space<vmem>>, vector<1x32xbf16>
    %42 = arith.extf %41 : vector<1x32xbf16> to vector<1x32xf32>
    %cst_37 = arith.constant dense<0.000000e+00> : vector<16xf32>
    %43 = vector.multi_reduction <add>, %38, %cst_37 [1] : vector<16x32xf32> to vector<16xf32>
    %44 = vector.shape_cast %43 : vector<16xf32> to vector<16x1xf32>
    %cst_38 = arith.constant 3.200000e+01 : f32
    %45 = vector.broadcast %cst_38 : f32 to vector<16x1xf32>
    %46 = arith.divf %44, %45 : vector<16x1xf32>
    %47 = vector.broadcast %46 : vector<16x1xf32> to vector<16x32xf32>
    %48 = arith.subf %38, %47 : vector<16x32xf32>
    %49 = arith.mulf %48, %48 : vector<16x32xf32>
    %cst_39 = arith.constant dense<0.000000e+00> : vector<16xf32>
    %50 = vector.multi_reduction <add>, %49, %cst_39 [1] : vector<16x32xf32> to vector<16xf32>
    %51 = vector.shape_cast %50 : vector<16xf32> to vector<16x1xf32>
    %cst_40 = arith.constant 3.200000e+01 : f32
    %52 = vector.broadcast %cst_40 : f32 to vector<16x1xf32>
    %53 = arith.divf %51, %52 : vector<16x1xf32>
    %54 = vector.broadcast %46 : vector<16x1xf32> to vector<16x32xf32>
    %55 = arith.subf %38, %54 : vector<16x32xf32>
    %cst_41 = arith.constant 9.99999974E-6 : f32
    %56 = vector.broadcast %cst_41 : f32 to vector<16x1xf32>
    %57 = arith.addf %53, %56 : vector<16x1xf32>
    %58 = math.rsqrt %57 : vector<16x1xf32>
    %59 = vector.broadcast %58 : vector<16x1xf32> to vector<16x32xf32>
    %60 = arith.mulf %55, %59 : vector<16x32xf32>
    %61 = vector.broadcast %40 : vector<1x32xf32> to vector<16x32xf32>
    %62 = arith.mulf %60, %61 : vector<16x32xf32>
    %63 = vector.broadcast %42 : vector<1x32xf32> to vector<16x32xf32>
    %64 = arith.addf %62, %63 : vector<16x32xf32>
    %cst_42 = arith.constant 0.000000e+00 : f32
    %65 = vector.broadcast %cst_42 : f32 to vector<16x32xf32>
    %66 = arith.maximumf %64, %65 : vector<16x32xf32>
    %67 = math.absf %64 : vector<16x32xf32>
    %cst_43 = arith.constant 0.000000e+00 : f32
    %68 = vector.broadcast %cst_43 : f32 to vector<16x32xf32>
    %69 = arith.subf %68, %67 : vector<16x32xf32>
    %70 = math.exp %69 : vector<16x32xf32>
    %cst_44 = arith.constant 1.000000e+00 : f32
    %71 = vector.broadcast %cst_44 : f32 to vector<16x32xf32>
    %72 = arith.addf %71, %70 : vector<16x32xf32>
    %73 = math.log %72 : vector<16x32xf32>
    %74 = arith.addf %66, %73 : vector<16x32xf32>
    %75 = math.tanh %74 : vector<16x32xf32>
    %76 = arith.mulf %64, %75 : vector<16x32xf32>
    %77 = arith.extf %1 : vector<16x1xbf16> to vector<16x1xf32>
    %78 = vector.broadcast %77 : vector<16x1xf32> to vector<16x32xf32>
    %79 = arith.mulf %76, %78 : vector<16x32xf32>
    %c0_45 = arith.constant 0 : index
    %c0_46 = arith.constant 0 : index
    %c0_47 = arith.constant 0 : index
    %80 = vector.load %arg9[%c0_45, %c0_46, %c0_47] : memref<1x1x32xbf16, #tpu.memory_space<vmem>>, vector<1x1x32xbf16>
    %81 = vector.shape_cast %80 : vector<1x1x32xbf16> to vector<1x32xbf16>
    %82 = arith.extf %81 : vector<1x32xbf16> to vector<1x32xf32>
    %83 = vector.broadcast %82 : vector<1x32xf32> to vector<16x32xf32>
    %84 = arith.addf %79, %83 : vector<16x32xf32>
    %85 = arith.truncf %84 : vector<16x32xf32> to vector<16x32xbf16>
    %c0_48 = arith.constant 0 : index
    %c0_49 = arith.constant 0 : index
    %c0_50 = arith.constant 0 : index
    %86 = vector.load %arg10[%c0_48, %c0_49, %c0_50] : memref<1x16x32xbf16, #tpu.memory_space<vmem>>, vector<1x16x32xbf16>
    %87 = vector.shape_cast %86 : vector<1x16x32xbf16> to vector<16x32xbf16>
    %88 = vector.shape_cast %85 : vector<16x32xbf16> to vector<1x16x32xbf16>
    tpu.vector_store %arg10[%c0_48, %c0_49, %c0_50], %88 {strides = array<i32>} : memref<1x16x32xbf16, #tpu.memory_space<vmem>>, vector<1x16x32xbf16>,
    return
  }
  func.func @transform_0(%arg0: i32) -> (i32, i32, i32) {
    %c0_i32 = arith.constant 0 : i32
    %c0_i32_0 = arith.constant 0 : i32
    %c0_i32_1 = arith.constant 0 : i32
    return %arg0, %c0_i32, %c0_i32_0 : i32, i32, i32
  }
  func.func @transform_1(%arg0: i32) -> (i32, i32, i32) {
    %c0_i32 = arith.constant 0 : i32
    %c0_i32_0 = arith.constant 0 : i32
    %c0_i32_1 = arith.constant 0 : i32
    return %arg0, %c0_i32, %c0_i32_0 : i32, i32, i32
  }
  func.func @transform_2(%arg0: i32) -> (i32, i32, i32) {
    %c0_i32 = arith.constant 0 : i32
    %c0_i32_0 = arith.constant 0 : i32
    %c0_i32_1 = arith.constant 0 : i32
    %c0_i32_2 = arith.constant 0 : i32
    return %c0_i32, %c0_i32_0, %c0_i32_1 : i32, i32, i32
  }
  func.func @transform_3(%arg0: i32) -> (i32, i32) {
    %c0_i32 = arith.constant 0 : i32
    %c0_i32_0 = arith.constant 0 : i32
    %c0_i32_1 = arith.constant 0 : i32
    return %c0_i32, %c0_i32_0 : i32, i32
  }
  func.func @transform_4(%arg0: i32) -> (i32, i32) {
    %c0_i32 = arith.constant 0 : i32
    %c0_i32_0 = arith.constant 0 : i32
    %c0_i32_1 = arith.constant 0 : i32
    return %c0_i32, %c0_i32_0 : i32, i32
  }
  func.func @transform_5(%arg0: i32) -> (i32, i32) {
    %c0_i32 = arith.constant 0 : i32
    %c0_i32_0 = arith.constant 0 : i32
    %c0_i32_1 = arith.constant 0 : i32
    return %c0_i32, %c0_i32_0 : i32, i32
  }
  func.func @transform_6(%arg0: i32) -> (i32, i32) {
    %c0_i32 = arith.constant 0 : i32
    %c0_i32_0 = arith.constant 0 : i32
    %c0_i32_1 = arith.constant 0 : i32
    return %c0_i32, %c0_i32_0 : i32, i32
  }
  func.func @transform_7(%arg0: i32) -> (i32, i32) {
    %c0_i32 = arith.constant 0 : i32
    %c0_i32_0 = arith.constant 0 : i32
    %c0_i32_1 = arith.constant 0 : i32
    return %c0_i32, %c0_i32_0 : i32, i32
  }
  func.func @transform_8(%arg0: i32) -> (i32, i32, i32) {
    %c0_i32 = arith.constant 0 : i32
    %c0_i32_0 = arith.constant 0 : i32
    %c0_i32_1 = arith.constant 0 : i32
    return %arg0, %c0_i32, %c0_i32_0 : i32, i32, i32
  }
  func.func @transform_9(%arg0: i32) -> (i32, i32, i32) {
    %c0_i32 = arith.constant 0 : i32
    %c0_i32_0 = arith.constant 0 : i32
    %c0_i32_1 = arith.constant 0 : i32
    return %arg0, %c0_i32, %c0_i32_0 : i32, i32, i32
  }
  func.func @transform_10(%arg0: i32) -> (i32, i32, i32) {
    %c0_i32 = arith.constant 0 : i32
    %c0_i32_0 = arith.constant 0 : i32
    %c0_i32_1 = arith.constant 0 : i32
    return %arg0, %c0_i32, %c0_i32_0 : i32, i32, i32
  }
}

module attributes {stable_mosaic.version = 11 : i64} {
  func.func @_ln_qkv_kernel(%arg0: i32, %arg1: memref<32x32xbf16, #tpu.memory_space<vmem>>, %arg2: memref<1x32xbf16, #tpu.memory_space<vmem>>, %arg3: memref<1x32xbf16, #tpu.memory_space<vmem>>, %arg4: memref<32x96xbf16, #tpu.memory_space<vmem>>, %arg5: memref<1x96xbf16, #tpu.memory_space<vmem>>, %arg6: memref<32x32xbf16, #tpu.memory_space<vmem>>, %arg7: memref<32x32xbf16, #tpu.memory_space<vmem>>, %arg8: memref<32x32xbf16, #tpu.memory_space<vmem>>) attributes {dimension_semantics = [#tpu.dimension_semantics<parallel>], iteration_bounds = array<i64: 1>, scalar_prefetch = 0 : i64, scratch_operands = 0 : i64, tpu.core_type = #tpu.core_type<tc>, window_params = [{transform_indices = @transform_0, window_bounds = array<i64: 32, 32>}, {pipeline_mode = #tpu.pipeline_mode<synchronous>, transform_indices = @transform_1, window_bounds = array<i64: 1, 32>}, {pipeline_mode = #tpu.pipeline_mode<synchronous>, transform_indices = @transform_2, window_bounds = array<i64: 1, 32>}, {pipeline_mode = #tpu.pipeline_mode<synchronous>, transform_indices = @transform_3, window_bounds = array<i64: 32, 96>}, {pipeline_mode = #tpu.pipeline_mode<synchronous>, transform_indices = @transform_4, window_bounds = array<i64: 1, 96>}, {transform_indices = @transform_5, window_bounds = array<i64: 32, 32>}, {transform_indices = @transform_6, window_bounds = array<i64: 32, 32>}, {transform_indices = @transform_7, window_bounds = array<i64: 32, 32>}]} {
    %c0 = arith.constant 0 : index
    %c0_0 = arith.constant 0 : index
    %0 = vector.load %arg1[%c0, %c0_0] : memref<32x32xbf16, #tpu.memory_space<vmem>>, vector<32x32xbf16>
    %1 = arith.extf %0 : vector<32x32xbf16> to vector<32x32xf32>
    %c0_1 = arith.constant 0 : index
    %c0_2 = arith.constant 0 : index
    %2 = vector.load %arg2[%c0_1, %c0_2] : memref<1x32xbf16, #tpu.memory_space<vmem>>, vector<1x32xbf16>
    %3 = arith.extf %2 : vector<1x32xbf16> to vector<1x32xf32>
    %c0_3 = arith.constant 0 : index
    %c0_4 = arith.constant 0 : index
    %4 = vector.load %arg3[%c0_3, %c0_4] : memref<1x32xbf16, #tpu.memory_space<vmem>>, vector<1x32xbf16>
    %5 = arith.extf %4 : vector<1x32xbf16> to vector<1x32xf32>
    %cst = arith.constant dense<0.000000e+00> : vector<32xf32>
    %6 = vector.multi_reduction <add>, %1, %cst [1] : vector<32x32xf32> to vector<32xf32>
    %7 = vector.shape_cast %6 : vector<32xf32> to vector<32x1xf32>
    %cst_5 = arith.constant 3.200000e+01 : f32
    %8 = vector.broadcast %cst_5 : f32 to vector<32x1xf32>
    %9 = arith.divf %7, %8 : vector<32x1xf32>
    %10 = vector.broadcast %9 : vector<32x1xf32> to vector<32x32xf32>
    %11 = arith.subf %1, %10 : vector<32x32xf32>
    %12 = arith.mulf %11, %11 : vector<32x32xf32>
    %cst_6 = arith.constant dense<0.000000e+00> : vector<32xf32>
    %13 = vector.multi_reduction <add>, %12, %cst_6 [1] : vector<32x32xf32> to vector<32xf32>
    %14 = vector.shape_cast %13 : vector<32xf32> to vector<32x1xf32>
    %cst_7 = arith.constant 3.200000e+01 : f32
    %15 = vector.broadcast %cst_7 : f32 to vector<32x1xf32>
    %16 = arith.divf %14, %15 : vector<32x1xf32>
    %17 = vector.broadcast %9 : vector<32x1xf32> to vector<32x32xf32>
    %18 = arith.subf %1, %17 : vector<32x32xf32>
    %cst_8 = arith.constant 9.99999974E-6 : f32
    %19 = vector.broadcast %cst_8 : f32 to vector<32x1xf32>
    %20 = arith.addf %16, %19 : vector<32x1xf32>
    %21 = math.rsqrt %20 : vector<32x1xf32>
    %22 = vector.broadcast %21 : vector<32x1xf32> to vector<32x32xf32>
    %23 = arith.mulf %18, %22 : vector<32x32xf32>
    %24 = vector.broadcast %3 : vector<1x32xf32> to vector<32x32xf32>
    %25 = arith.mulf %23, %24 : vector<32x32xf32>
    %26 = vector.broadcast %5 : vector<1x32xf32> to vector<32x32xf32>
    %27 = arith.addf %25, %26 : vector<32x32xf32>
    %28 = arith.truncf %27 : vector<32x32xf32> to vector<32x32xbf16>
    %c0_9 = arith.constant 0 : index
    %c0_10 = arith.constant 0 : index
    %29 = vector.load %arg4[%c0_9, %c0_10] : memref<32x96xbf16, #tpu.memory_space<vmem>>, vector<32x96xbf16>
    %cst_11 = arith.constant dense<0.000000e+00> : vector<32x96xf32>
    %30 = tpu.matmul %28, %29, %cst_11 {dimension_numbers = #tpu.dot_dimension_numbers<[1], [0], [0], [1], [0, 0, 1, 1], [], []>} : vector<32x32xbf16>, vector<32x96xbf16>, vector<32x96xf32> -> vector<32x96xf32>
    %c0_12 = arith.constant 0 : index
    %c0_13 = arith.constant 0 : index
    %31 = vector.load %arg5[%c0_12, %c0_13] : memref<1x96xbf16, #tpu.memory_space<vmem>>, vector<1x96xbf16>
    %32 = arith.extf %31 : vector<1x96xbf16> to vector<1x96xf32>
    %33 = vector.broadcast %32 : vector<1x96xf32> to vector<32x96xf32>
    %34 = arith.addf %30, %33 : vector<32x96xf32>
    %35 = vector.extract_strided_slice %34 {offsets = [0, 0], sizes = [32, 32], strides = [1, 1]} : vector<32x96xf32> to vector<32x32xf32>
    %36 = arith.truncf %35 : vector<32x32xf32> to vector<32x32xbf16>
    %c0_14 = arith.constant 0 : index
    %c0_15 = arith.constant 0 : index
    %37 = vector.load %arg6[%c0_14, %c0_15] : memref<32x32xbf16, #tpu.memory_space<vmem>>, vector<32x32xbf16>
    tpu.vector_store %arg6[%c0_14, %c0_15], %36 {strides = array<i32>} : memref<32x32xbf16, #tpu.memory_space<vmem>>, vector<32x32xbf16>,
    %38 = vector.extract_strided_slice %34 {offsets = [0, 32], sizes = [32, 32], strides = [1, 1]} : vector<32x96xf32> to vector<32x32xf32>
    %39 = arith.truncf %38 : vector<32x32xf32> to vector<32x32xbf16>
    %c0_16 = arith.constant 0 : index
    %c0_17 = arith.constant 0 : index
    %40 = vector.load %arg7[%c0_16, %c0_17] : memref<32x32xbf16, #tpu.memory_space<vmem>>, vector<32x32xbf16>
    tpu.vector_store %arg7[%c0_16, %c0_17], %39 {strides = array<i32>} : memref<32x32xbf16, #tpu.memory_space<vmem>>, vector<32x32xbf16>,
    %41 = vector.extract_strided_slice %34 {offsets = [0, 64], sizes = [32, 32], strides = [1, 1]} : vector<32x96xf32> to vector<32x32xf32>
    %42 = arith.truncf %41 : vector<32x32xf32> to vector<32x32xbf16>
    %c0_18 = arith.constant 0 : index
    %c0_19 = arith.constant 0 : index
    %43 = vector.load %arg8[%c0_18, %c0_19] : memref<32x32xbf16, #tpu.memory_space<vmem>>, vector<32x32xbf16>
    tpu.vector_store %arg8[%c0_18, %c0_19], %42 {strides = array<i32>} : memref<32x32xbf16, #tpu.memory_space<vmem>>, vector<32x32xbf16>,
    return
  }
  func.func @transform_0(%arg0: i32) -> (i32, i32) {
    %c0_i32 = arith.constant 0 : i32
    %c0_i32_0 = arith.constant 0 : i32
    return %arg0, %c0_i32 : i32, i32
  }
  func.func @transform_1(%arg0: i32) -> (i32, i32) {
    %c0_i32 = arith.constant 0 : i32
    %c0_i32_0 = arith.constant 0 : i32
    %c0_i32_1 = arith.constant 0 : i32
    return %c0_i32, %c0_i32_0 : i32, i32
  }
  func.func @transform_2(%arg0: i32) -> (i32, i32) {
    %c0_i32 = arith.constant 0 : i32
    %c0_i32_0 = arith.constant 0 : i32
    %c0_i32_1 = arith.constant 0 : i32
    return %c0_i32, %c0_i32_0 : i32, i32
  }
  func.func @transform_3(%arg0: i32) -> (i32, i32) {
    %c0_i32 = arith.constant 0 : i32
    %c0_i32_0 = arith.constant 0 : i32
    %c0_i32_1 = arith.constant 0 : i32
    return %c0_i32, %c0_i32_0 : i32, i32
  }
  func.func @transform_4(%arg0: i32) -> (i32, i32) {
    %c0_i32 = arith.constant 0 : i32
    %c0_i32_0 = arith.constant 0 : i32
    %c0_i32_1 = arith.constant 0 : i32
    return %c0_i32, %c0_i32_0 : i32, i32
  }
  func.func @transform_5(%arg0: i32) -> (i32, i32) {
    %c0_i32 = arith.constant 0 : i32
    %c0_i32_0 = arith.constant 0 : i32
    return %arg0, %c0_i32 : i32, i32
  }
  func.func @transform_6(%arg0: i32) -> (i32, i32) {
    %c0_i32 = arith.constant 0 : i32
    %c0_i32_0 = arith.constant 0 : i32
    return %arg0, %c0_i32 : i32, i32
  }
  func.func @transform_7(%arg0: i32) -> (i32, i32) {
    %c0_i32 = arith.constant 0 : i32
    %c0_i32_0 = arith.constant 0 : i32
    return %arg0, %c0_i32 : i32, i32
  }
}

module attributes {stable_mosaic.version = 11 : i64} {
  func.func @_resnet_block2_kernel(%arg0: i32, %arg1: memref<1x16x32xbf16, #tpu.memory_space<vmem>>, %arg2: memref<1x16x1xbf16, #tpu.memory_space<vmem>>, %arg3: memref<3x32x32xbf16, #tpu.memory_space<vmem>>, %arg4: memref<1x32xbf16, #tpu.memory_space<vmem>>, %arg5: memref<1x32xbf16, #tpu.memory_space<vmem>>, %arg6: memref<1x32xbf16, #tpu.memory_space<vmem>>, %arg7: memref<1x16x32xbf16, #tpu.memory_space<vmem>>, %arg8: memref<1x16x32xbf16, #tpu.memory_space<vmem>>, %arg9: memref<24x32xbf16, #tpu.memory_space<vmem>>) attributes {dimension_semantics = [#tpu.dimension_semantics<parallel>], iteration_bounds = array<i64: 2>, scalar_prefetch = 0 : i64, scratch_operands = 1 : i64, tpu.core_type = #tpu.core_type<tc>, window_params = [{transform_indices = @transform_0, window_bounds = array<i64: 1, 16, 32>}, {transform_indices = @transform_1, window_bounds = array<i64: 1, 16, 1>}, {pipeline_mode = #tpu.pipeline_mode<synchronous>, transform_indices = @transform_2, window_bounds = array<i64: 3, 32, 32>}, {pipeline_mode = #tpu.pipeline_mode<synchronous>, transform_indices = @transform_3, window_bounds = array<i64: 1, 32>}, {pipeline_mode = #tpu.pipeline_mode<synchronous>, transform_indices = @transform_4, window_bounds = array<i64: 1, 32>}, {pipeline_mode = #tpu.pipeline_mode<synchronous>, transform_indices = @transform_5, window_bounds = array<i64: 1, 32>}, {transform_indices = @transform_6, window_bounds = array<i64: 1, 16, 32>}, {transform_indices = @transform_7, window_bounds = array<i64: 1, 16, 32>}]} {
    %c0 = arith.constant 0 : index
    %c0_0 = arith.constant 0 : index
    %c0_1 = arith.constant 0 : index
    %0 = vector.load %arg2[%c0, %c0_0, %c0_1] : memref<1x16x1xbf16, #tpu.memory_space<vmem>>, vector<1x16x1xbf16>
    %1 = vector.shape_cast %0 : vector<1x16x1xbf16> to vector<16x1xbf16>
    %c0_2 = arith.constant 0 : index
    %c0_3 = arith.constant 0 : index
    %c0_4 = arith.constant 0 : index
    %2 = vector.load %arg1[%c0_2, %c0_3, %c0_4] : memref<1x16x32xbf16, #tpu.memory_space<vmem>>, vector<1x16x32xbf16>
    %3 = vector.shape_cast %2 : vector<1x16x32xbf16> to vector<16x32xbf16>
    %4 = vector.broadcast %1 : vector<16x1xbf16> to vector<16x32xbf16>
    %5 = arith.mulf %3, %4 : vector<16x32xbf16>
    %cst = arith.constant 0.000000e+00 : bf16
    %6 = vector.broadcast %cst : bf16 to vector<8x32xbf16>
    %c0_5 = arith.constant 0 : index
    %c0_6 = arith.constant 0 : index
    %7 = vector.load %arg9[%c0_5, %c0_6] : memref<24x32xbf16, #tpu.memory_space<vmem>>, vector<8x32xbf16>
    tpu.vector_store %arg9[%c0_5, %c0_6], %6 {strides = array<i32>} : memref<24x32xbf16, #tpu.memory_space<vmem>>, vector<8x32xbf16>,
    %c8 = arith.constant 8 : index
    %c0_7 = arith.constant 0 : index
    %8 = vector.load %arg9[%c8, %c0_7] : memref<24x32xbf16, #tpu.memory_space<vmem>>, vector<16x32xbf16>
    tpu.vector_store %arg9[%c8, %c0_7], %5 {strides = array<i32>} : memref<24x32xbf16, #tpu.memory_space<vmem>>, vector<16x32xbf16>,
    %cst_8 = arith.constant 0.000000e+00 : f32
    %9 = vector.broadcast %cst_8 : f32 to vector<16x32xf32>
    %c6 = arith.constant 6 : index
    %c0_9 = arith.constant 0 : index
    %10 = vector.load %arg9[%c6, %c0_9] : memref<24x32xbf16, #tpu.memory_space<vmem>>, vector<16x32xbf16>
    %c0_10 = arith.constant 0 : index
    %c0_11 = arith.constant 0 : index
    %c0_12 = arith.constant 0 : index
    %11 = vector.load %arg3[%c0_10, %c0_11, %c0_12] : memref<3x32x32xbf16, #tpu.memory_space<vmem>>, vector<1x32x32xbf16>
    %12 = vector.shape_cast %11 : vector<1x32x32xbf16> to vector<32x32xbf16>
    %cst_13 = arith.constant dense<0.000000e+00> : vector<16x32xf32>
    %13 = tpu.matmul %10, %12, %cst_13 {dimension_numbers = #tpu.dot_dimension_numbers<[1], [0], [0], [1], [0, 0, 1, 1], [], []>} : vector<16x32xbf16>, vector<32x32xbf16>, vector<16x32xf32> -> vector<16x32xf32>
    %14 = arith.addf %9, %13 : vector<16x32xf32>
    %c7 = arith.constant 7 : index
    %c0_14 = arith.constant 0 : index
    %15 = vector.load %arg9[%c7, %c0_14] : memref<24x32xbf16, #tpu.memory_space<vmem>>, vector<16x32xbf16>
    %c1 = arith.constant 1 : index
    %c0_15 = arith.constant 0 : index
    %c0_16 = arith.constant 0 : index
    %16 = vector.load %arg3[%c1, %c0_15, %c0_16] : memref<3x32x32xbf16, #tpu.memory_space<vmem>>, vector<1x32x32xbf16>
    %17 = vector.shape_cast %16 : vector<1x32x32xbf16> to vector<32x32xbf16>
    %cst_17 = arith.constant dense<0.000000e+00> : vector<16x32xf32>
    %18 = tpu.matmul %15, %17, %cst_17 {dimension_numbers = #tpu.dot_dimension_numbers<[1], [0], [0], [1], [0, 0, 1, 1], [], []>} : vector<16x32xbf16>, vector<32x32xbf16>, vector<16x32xf32> -> vector<16x32xf32>
    %19 = arith.addf %14, %18 : vector<16x32xf32>
    %c8_18 = arith.constant 8 : index
    %c0_19 = arith.constant 0 : index
    %20 = vector.load %arg9[%c8_18, %c0_19] : memref<24x32xbf16, #tpu.memory_space<vmem>>, vector<16x32xbf16>
    %c2 = arith.constant 2 : index
    %c0_20 = arith.constant 0 : index
    %c0_21 = arith.constant 0 : index
    %21 = vector.load %arg3[%c2, %c0_20, %c0_21] : memref<3x32x32xbf16, #tpu.memory_space<vmem>>, vector<1x32x32xbf16>
    %22 = vector.shape_cast %21 : vector<1x32x32xbf16> to vector<32x32xbf16>
    %cst_22 = arith.constant dense<0.000000e+00> : vector<16x32xf32>
    %23 = tpu.matmul %20, %22, %cst_22 {dimension_numbers = #tpu.dot_dimension_numbers<[1], [0], [0], [1], [0, 0, 1, 1], [], []>} : vector<16x32xbf16>, vector<32x32xbf16>, vector<16x32xf32> -> vector<16x32xf32>
    %24 = arith.addf %19, %23 : vector<16x32xf32>
    %c0_23 = arith.constant 0 : index
    %c0_24 = arith.constant 0 : index
    %25 = vector.load %arg4[%c0_23, %c0_24] : memref<1x32xbf16, #tpu.memory_space<vmem>>, vector<1x32xbf16>
    %26 = arith.extf %25 : vector<1x32xbf16> to vector<1x32xf32>
    %27 = vector.broadcast %26 : vector<1x32xf32> to vector<16x32xf32>
    %28 = arith.addf %24, %27 : vector<16x32xf32>
    %c0_25 = arith.constant 0 : index
    %c0_26 = arith.constant 0 : index
    %29 = vector.load %arg5[%c0_25, %c0_26] : memref<1x32xbf16, #tpu.memory_space<vmem>>, vector<1x32xbf16>
    %30 = arith.extf %29 : vector<1x32xbf16> to vector<1x32xf32>
    %c0_27 = arith.constant 0 : index
    %c0_28 = arith.constant 0 : index
    %31 = vector.load %arg6[%c0_27, %c0_28] : memref<1x32xbf16, #tpu.memory_space<vmem>>, vector<1x32xbf16>
    %32 = arith.extf %31 : vector<1x32xbf16> to vector<1x32xf32>
    %cst_29 = arith.constant dense<0.000000e+00> : vector<16xf32>
    %33 = vector.multi_reduction <add>, %28, %cst_29 [1] : vector<16x32xf32> to vector<16xf32>
    %34 = vector.shape_cast %33 : vector<16xf32> to vector<16x1xf32>
    %cst_30 = arith.constant 3.200000e+01 : f32
    %35 = vector.broadcast %cst_30 : f32 to vector<16x1xf32>
    %36 = arith.divf %34, %35 : vector<16x1xf32>
    %37 = vector.broadcast %36 : vector<16x1xf32> to vector<16x32xf32>
    %38 = arith.subf %28, %37 : vector<16x32xf32>
    %39 = arith.mulf %38, %38 : vector<16x32xf32>
    %cst_31 = arith.constant dense<0.000000e+00> : vector<16xf32>
    %40 = vector.multi_reduction <add>, %39, %cst_31 [1] : vector<16x32xf32> to vector<16xf32>
    %41 = vector.shape_cast %40 : vector<16xf32> to vector<16x1xf32>
    %cst_32 = arith.constant 3.200000e+01 : f32
    %42 = vector.broadcast %cst_32 : f32 to vector<16x1xf32>
    %43 = arith.divf %41, %42 : vector<16x1xf32>
    %44 = vector.broadcast %36 : vector<16x1xf32> to vector<16x32xf32>
    %45 = arith.subf %28, %44 : vector<16x32xf32>
    %cst_33 = arith.constant 9.99999974E-6 : f32
    %46 = vector.broadcast %cst_33 : f32 to vector<16x1xf32>
    %47 = arith.addf %43, %46 : vector<16x1xf32>
    %48 = math.rsqrt %47 : vector<16x1xf32>
    %49 = vector.broadcast %48 : vector<16x1xf32> to vector<16x32xf32>
    %50 = arith.mulf %45, %49 : vector<16x32xf32>
    %51 = vector.broadcast %30 : vector<1x32xf32> to vector<16x32xf32>
    %52 = arith.mulf %50, %51 : vector<16x32xf32>
    %53 = vector.broadcast %32 : vector<1x32xf32> to vector<16x32xf32>
    %54 = arith.addf %52, %53 : vector<16x32xf32>
    %cst_34 = arith.constant 0.000000e+00 : f32
    %55 = vector.broadcast %cst_34 : f32 to vector<16x32xf32>
    %56 = arith.maximumf %54, %55 : vector<16x32xf32>
    %57 = math.absf %54 : vector<16x32xf32>
    %cst_35 = arith.constant 0.000000e+00 : f32
    %58 = vector.broadcast %cst_35 : f32 to vector<16x32xf32>
    %59 = arith.subf %58, %57 : vector<16x32xf32>
    %60 = math.exp %59 : vector<16x32xf32>
    %cst_36 = arith.constant 1.000000e+00 : f32
    %61 = vector.broadcast %cst_36 : f32 to vector<16x32xf32>
    %62 = arith.addf %61, %60 : vector<16x32xf32>
    %63 = math.log %62 : vector<16x32xf32>
    %64 = arith.addf %56, %63 : vector<16x32xf32>
    %65 = math.tanh %64 : vector<16x32xf32>
    %66 = arith.mulf %54, %65 : vector<16x32xf32>
    %67 = arith.extf %1 : vector<16x1xbf16> to vector<16x1xf32>
    %68 = vector.broadcast %67 : vector<16x1xf32> to vector<16x32xf32>
    %69 = arith.mulf %66, %68 : vector<16x32xf32>
    %c0_37 = arith.constant 0 : index
    %c0_38 = arith.constant 0 : index
    %c0_39 = arith.constant 0 : index
    %70 = vector.load %arg7[%c0_37, %c0_38, %c0_39] : memref<1x16x32xbf16, #tpu.memory_space<vmem>>, vector<1x16x32xbf16>
    %71 = vector.shape_cast %70 : vector<1x16x32xbf16> to vector<16x32xbf16>
    %72 = arith.extf %71 : vector<16x32xbf16> to vector<16x32xf32>
    %73 = arith.addf %69, %72 : vector<16x32xf32>
    %74 = arith.truncf %73 : vector<16x32xf32> to vector<16x32xbf16>
    %c0_40 = arith.constant 0 : index
    %c0_41 = arith.constant 0 : index
    %c0_42 = arith.constant 0 : index
    %75 = vector.load %arg8[%c0_40, %c0_41, %c0_42] : memref<1x16x32xbf16, #tpu.memory_space<vmem>>, vector<1x16x32xbf16>
    %76 = vector.shape_cast %75 : vector<1x16x32xbf16> to vector<16x32xbf16>
    %77 = vector.shape_cast %74 : vector<16x32xbf16> to vector<1x16x32xbf16>
    tpu.vector_store %arg8[%c0_40, %c0_41, %c0_42], %77 {strides = array<i32>} : memref<1x16x32xbf16, #tpu.memory_space<vmem>>, vector<1x16x32xbf16>,
    return
  }
  func.func @transform_0(%arg0: i32) -> (i32, i32, i32) {
    %c0_i32 = arith.constant 0 : i32
    %c0_i32_0 = arith.constant 0 : i32
    %c0_i32_1 = arith.constant 0 : i32
    return %arg0, %c0_i32, %c0_i32_0 : i32, i32, i32
  }
  func.func @transform_1(%arg0: i32) -> (i32, i32, i32) {
    %c0_i32 = arith.constant 0 : i32
    %c0_i32_0 = arith.constant 0 : i32
    %c0_i32_1 = arith.constant 0 : i32
    return %arg0, %c0_i32, %c0_i32_0 : i32, i32, i32
  }
  func.func @transform_2(%arg0: i32) -> (i32, i32, i32) {
    %c0_i32 = arith.constant 0 : i32
    %c0_i32_0 = arith.constant 0 : i32
    %c0_i32_1 = arith.constant 0 : i32
    %c0_i32_2 = arith.constant 0 : i32
    return %c0_i32, %c0_i32_0, %c0_i32_1 : i32, i32, i32
  }
  func.func @transform_3(%arg0: i32) -> (i32, i32) {
    %c0_i32 = arith.constant 0 : i32
    %c0_i32_0 = arith.constant 0 : i32
    %c0_i32_1 = arith.constant 0 : i32
    return %c0_i32, %c0_i32_0 : i32, i32
  }
  func.func @transform_4(%arg0: i32) -> (i32, i32) {
    %c0_i32 = arith.constant 0 : i32
    %c0_i32_0 = arith.constant 0 : i32
    %c0_i32_1 = arith.constant 0 : i32
    return %c0_i32, %c0_i32_0 : i32, i32
  }
  func.func @transform_5(%arg0: i32) -> (i32, i32) {
    %c0_i32 = arith.constant 0 : i32
    %c0_i32_0 = arith.constant 0 : i32
    %c0_i32_1 = arith.constant 0 : i32
    return %c0_i32, %c0_i32_0 : i32, i32
  }
  func.func @transform_6(%arg0: i32) -> (i32, i32, i32) {
    %c0_i32 = arith.constant 0 : i32
    %c0_i32_0 = arith.constant 0 : i32
    %c0_i32_1 = arith.constant 0 : i32
    return %arg0, %c0_i32, %c0_i32_0 : i32, i32, i32
  }
  func.func @transform_7(%arg0: i32) -> (i32, i32, i32) {
    %c0_i32 = arith.constant 0 : i32
    %c0_i32_0 = arith.constant 0 : i32
    %c0_i32_1 = arith.constant 0 : i32
    return %arg0, %c0_i32, %c0_i32_0 : i32, i32, i32
  }
}

module attributes {stable_mosaic.version = 11 : i64} {
  func.func @_mha_kernel(%arg0: i32, %arg1: i32, %arg2: memref<1x16x32xbf16, #tpu.memory_space<vmem>>, %arg3: memref<1x16x32xbf16, #tpu.memory_space<vmem>>, %arg4: memref<1x16x32xbf16, #tpu.memory_space<vmem>>, %arg5: memref<1x1x16xbf16, #tpu.memory_space<vmem>>, %arg6: memref<1x16x32xbf16, #tpu.memory_space<vmem>>) attributes {dimension_semantics = [#tpu.dimension_semantics<parallel>, #tpu.dimension_semantics<parallel>], iteration_bounds = array<i64: 2, 1>, scalar_prefetch = 0 : i64, scratch_operands = 0 : i64, tpu.core_type = #tpu.core_type<tc>, window_params = [{transform_indices = @transform_0, window_bounds = array<i64: 1, 16, 32>}, {transform_indices = @transform_1, window_bounds = array<i64: 1, 16, 32>}, {transform_indices = @transform_2, window_bounds = array<i64: 1, 16, 32>}, {transform_indices = @transform_3, window_bounds = array<i64: 1, 1, 16>}, {transform_indices = @transform_4, window_bounds = array<i64: 1, 16, 32>}]} {
    %c0 = arith.constant 0 : index
    %c0_0 = arith.constant 0 : index
    %c0_1 = arith.constant 0 : index
    %0 = vector.load %arg5[%c0, %c0_0, %c0_1] : memref<1x1x16xbf16, #tpu.memory_space<vmem>>, vector<1x1x16xbf16>
    %1 = vector.shape_cast %0 : vector<1x1x16xbf16> to vector<1x16xbf16>
    %2 = arith.extf %1 : vector<1x16xbf16> to vector<1x16xf32>
    %c0_2 = arith.constant 0 : index
    %c0_3 = arith.constant 0 : index
    %c0_4 = arith.constant 0 : index
    %3 = vector.load %arg2[%c0_2, %c0_3, %c0_4] : memref<1x16x32xbf16, #tpu.memory_space<vmem>>, vector<1x16x8xbf16>
    %4 = vector.shape_cast %3 : vector<1x16x8xbf16> to vector<16x8xbf16>
    %c0_5 = arith.constant 0 : index
    %c0_6 = arith.constant 0 : index
    %c0_7 = arith.constant 0 : index
    %5 = vector.load %arg3[%c0_5, %c0_6, %c0_7] : memref<1x16x32xbf16, #tpu.memory_space<vmem>>, vector<1x16x8xbf16>
    %6 = vector.shape_cast %5 : vector<1x16x8xbf16> to vector<16x8xbf16>
    %c0_8 = arith.constant 0 : index
    %c0_9 = arith.constant 0 : index
    %c0_10 = arith.constant 0 : index
    %7 = vector.load %arg4[%c0_8, %c0_9, %c0_10] : memref<1x16x32xbf16, #tpu.memory_space<vmem>>, vector<1x16x8xbf16>
    %8 = vector.shape_cast %7 : vector<1x16x8xbf16> to vector<16x8xbf16>
    %cst = arith.constant dense<0.000000e+00> : vector<16x16xf32>
    %9 = tpu.matmul %4, %6, %cst {dimension_numbers = #tpu.dot_dimension_numbers<[1], [1], [0], [0], [0, 0, 1, 0], [], []>} : vector<16x8xbf16>, vector<16x8xbf16>, vector<16x16xf32> -> vector<16x16xf32>
    %cst_11 = arith.constant 0.353553385 : f32
    %10 = vector.broadcast %cst_11 : f32 to vector<16x16xf32>
    %11 = arith.mulf %9, %10 : vector<16x16xf32>
    %12 = vector.broadcast %2 : vector<1x16xf32> to vector<16x16xf32>
    %13 = arith.addf %11, %12 : vector<16x16xf32>
    %cst_12 = arith.constant dense<0xFF800000> : vector<16xf32>
    %14 = vector.multi_reduction <maximumf>, %13, %cst_12 [1] : vector<16x16xf32> to vector<16xf32>
    %15 = vector.shape_cast %14 : vector<16xf32> to vector<16x1xf32>
    %16 = vector.broadcast %15 : vector<16x1xf32> to vector<16x16xf32>
    %17 = arith.subf %13, %16 : vector<16x16xf32>
    %18 = math.exp %17 : vector<16x16xf32>
    %cst_13 = arith.constant dense<0.000000e+00> : vector<16xf32>
    %19 = vector.multi_reduction <add>, %18, %cst_13 [1] : vector<16x16xf32> to vector<16xf32>
    %20 = vector.shape_cast %19 : vector<16xf32> to vector<16x1xf32>
    %cst_14 = arith.constant 1.000000e+00 : f32
    %21 = vector.broadcast %cst_14 : f32 to vector<16x1xf32>
    %22 = arith.divf %21, %20 : vector<16x1xf32>
    %23 = vector.broadcast %22 : vector<16x1xf32> to vector<16x16xf32>
    %24 = arith.mulf %18, %23 : vector<16x16xf32>
    %25 = arith.truncf %24 : vector<16x16xf32> to vector<16x16xbf16>
    %cst_15 = arith.constant dense<0.000000e+00> : vector<16x8xf32>
    %26 = tpu.matmul %25, %8, %cst_15 {dimension_numbers = #tpu.dot_dimension_numbers<[1], [0], [0], [1], [0, 0, 1, 1], [], []>} : vector<16x16xbf16>, vector<16x8xbf16>, vector<16x8xf32> -> vector<16x8xf32>
    %c0_16 = arith.constant 0 : index
    %c0_17 = arith.constant 0 : index
    %c8 = arith.constant 8 : index
    %27 = vector.load %arg2[%c0_16, %c0_17, %c8] : memref<1x16x32xbf16, #tpu.memory_space<vmem>>, vector<1x16x8xbf16>
    %28 = vector.shape_cast %27 : vector<1x16x8xbf16> to vector<16x8xbf16>
    %c0_18 = arith.constant 0 : index
    %c0_19 = arith.constant 0 : index
    %c8_20 = arith.constant 8 : index
    %29 = vector.load %arg3[%c0_18, %c0_19, %c8_20] : memref<1x16x32xbf16, #tpu.memory_space<vmem>>, vector<1x16x8xbf16>
    %30 = vector.shape_cast %29 : vector<1x16x8xbf16> to vector<16x8xbf16>
    %c0_21 = arith.constant 0 : index
    %c0_22 = arith.constant 0 : index
    %c8_23 = arith.constant 8 : index
    %31 = vector.load %arg4[%c0_21, %c0_22, %c8_23] : memref<1x16x32xbf16, #tpu.memory_space<vmem>>, vector<1x16x8xbf16>
    %32 = vector.shape_cast %31 : vector<1x16x8xbf16> to vector<16x8xbf16>
    %cst_24 = arith.constant dense<0.000000e+00> : vector<16x16xf32>
    %33 = tpu.matmul %28, %30, %cst_24 {dimension_numbers = #tpu.dot_dimension_numbers<[1], [1], [0], [0], [0, 0, 1, 0], [], []>} : vector<16x8xbf16>, vector<16x8xbf16>, vector<16x16xf32> -> vector<16x16xf32>
    %cst_25 = arith.constant 0.353553385 : f32
    %34 = vector.broadcast %cst_25 : f32 to vector<16x16xf32>
    %35 = arith.mulf %33, %34 : vector<16x16xf32>
    %36 = vector.broadcast %2 : vector<1x16xf32> to vector<16x16xf32>
    %37 = arith.addf %35, %36 : vector<16x16xf32>
    %cst_26 = arith.constant dense<0xFF800000> : vector<16xf32>
    %38 = vector.multi_reduction <maximumf>, %37, %cst_26 [1] : vector<16x16xf32> to vector<16xf32>
    %39 = vector.shape_cast %38 : vector<16xf32> to vector<16x1xf32>
    %40 = vector.broadcast %39 : vector<16x1xf32> to vector<16x16xf32>
    %41 = arith.subf %37, %40 : vector<16x16xf32>
    %42 = math.exp %41 : vector<16x16xf32>
    %cst_27 = arith.constant dense<0.000000e+00> : vector<16xf32>
    %43 = vector.multi_reduction <add>, %42, %cst_27 [1] : vector<16x16xf32> to vector<16xf32>
    %44 = vector.shape_cast %43 : vector<16xf32> to vector<16x1xf32>
    %cst_28 = arith.constant 1.000000e+00 : f32
    %45 = vector.broadcast %cst_28 : f32 to vector<16x1xf32>
    %46 = arith.divf %45, %44 : vector<16x1xf32>
    %47 = vector.broadcast %46 : vector<16x1xf32> to vector<16x16xf32>
    %48 = arith.mulf %42, %47 : vector<16x16xf32>
    %49 = arith.truncf %48 : vector<16x16xf32> to vector<16x16xbf16>
    %cst_29 = arith.constant dense<0.000000e+00> : vector<16x8xf32>
    %50 = tpu.matmul %49, %32, %cst_29 {dimension_numbers = #tpu.dot_dimension_numbers<[1], [0], [0], [1], [0, 0, 1, 1], [], []>} : vector<16x16xbf16>, vector<16x8xbf16>, vector<16x8xf32> -> vector<16x8xf32>
    %c0_30 = arith.constant 0 : index
    %c0_31 = arith.constant 0 : index
    %c16 = arith.constant 16 : index
    %51 = vector.load %arg2[%c0_30, %c0_31, %c16] : memref<1x16x32xbf16, #tpu.memory_space<vmem>>, vector<1x16x8xbf16>
    %52 = vector.shape_cast %51 : vector<1x16x8xbf16> to vector<16x8xbf16>
    %c0_32 = arith.constant 0 : index
    %c0_33 = arith.constant 0 : index
    %c16_34 = arith.constant 16 : index
    %53 = vector.load %arg3[%c0_32, %c0_33, %c16_34] : memref<1x16x32xbf16, #tpu.memory_space<vmem>>, vector<1x16x8xbf16>
    %54 = vector.shape_cast %53 : vector<1x16x8xbf16> to vector<16x8xbf16>
    %c0_35 = arith.constant 0 : index
    %c0_36 = arith.constant 0 : index
    %c16_37 = arith.constant 16 : index
    %55 = vector.load %arg4[%c0_35, %c0_36, %c16_37] : memref<1x16x32xbf16, #tpu.memory_space<vmem>>, vector<1x16x8xbf16>
    %56 = vector.shape_cast %55 : vector<1x16x8xbf16> to vector<16x8xbf16>
    %cst_38 = arith.constant dense<0.000000e+00> : vector<16x16xf32>
    %57 = tpu.matmul %52, %54, %cst_38 {dimension_numbers = #tpu.dot_dimension_numbers<[1], [1], [0], [0], [0, 0, 1, 0], [], []>} : vector<16x8xbf16>, vector<16x8xbf16>, vector<16x16xf32> -> vector<16x16xf32>
    %cst_39 = arith.constant 0.353553385 : f32
    %58 = vector.broadcast %cst_39 : f32 to vector<16x16xf32>
    %59 = arith.mulf %57, %58 : vector<16x16xf32>
    %60 = vector.broadcast %2 : vector<1x16xf32> to vector<16x16xf32>
    %61 = arith.addf %59, %60 : vector<16x16xf32>
    %cst_40 = arith.constant dense<0xFF800000> : vector<16xf32>
    %62 = vector.multi_reduction <maximumf>, %61, %cst_40 [1] : vector<16x16xf32> to vector<16xf32>
    %63 = vector.shape_cast %62 : vector<16xf32> to vector<16x1xf32>
    %64 = vector.broadcast %63 : vector<16x1xf32> to vector<16x16xf32>
    %65 = arith.subf %61, %64 : vector<16x16xf32>
    %66 = math.exp %65 : vector<16x16xf32>
    %cst_41 = arith.constant dense<0.000000e+00> : vector<16xf32>
    %67 = vector.multi_reduction <add>, %66, %cst_41 [1] : vector<16x16xf32> to vector<16xf32>
    %68 = vector.shape_cast %67 : vector<16xf32> to vector<16x1xf32>
    %cst_42 = arith.constant 1.000000e+00 : f32
    %69 = vector.broadcast %cst_42 : f32 to vector<16x1xf32>
    %70 = arith.divf %69, %68 : vector<16x1xf32>
    %71 = vector.broadcast %70 : vector<16x1xf32> to vector<16x16xf32>
    %72 = arith.mulf %66, %71 : vector<16x16xf32>
    %73 = arith.truncf %72 : vector<16x16xf32> to vector<16x16xbf16>
    %cst_43 = arith.constant dense<0.000000e+00> : vector<16x8xf32>
    %74 = tpu.matmul %73, %56, %cst_43 {dimension_numbers = #tpu.dot_dimension_numbers<[1], [0], [0], [1], [0, 0, 1, 1], [], []>} : vector<16x16xbf16>, vector<16x8xbf16>, vector<16x8xf32> -> vector<16x8xf32>
    %c0_44 = arith.constant 0 : index
    %c0_45 = arith.constant 0 : index
    %c24 = arith.constant 24 : index
    %75 = vector.load %arg2[%c0_44, %c0_45, %c24] : memref<1x16x32xbf16, #tpu.memory_space<vmem>>, vector<1x16x8xbf16>
    %76 = vector.shape_cast %75 : vector<1x16x8xbf16> to vector<16x8xbf16>
    %c0_46 = arith.constant 0 : index
    %c0_47 = arith.constant 0 : index
    %c24_48 = arith.constant 24 : index
    %77 = vector.load %arg3[%c0_46, %c0_47, %c24_48] : memref<1x16x32xbf16, #tpu.memory_space<vmem>>, vector<1x16x8xbf16>
    %78 = vector.shape_cast %77 : vector<1x16x8xbf16> to vector<16x8xbf16>
    %c0_49 = arith.constant 0 : index
    %c0_50 = arith.constant 0 : index
    %c24_51 = arith.constant 24 : index
    %79 = vector.load %arg4[%c0_49, %c0_50, %c24_51] : memref<1x16x32xbf16, #tpu.memory_space<vmem>>, vector<1x16x8xbf16>
    %80 = vector.shape_cast %79 : vector<1x16x8xbf16> to vector<16x8xbf16>
    %cst_52 = arith.constant dense<0.000000e+00> : vector<16x16xf32>
    %81 = tpu.matmul %76, %78, %cst_52 {dimension_numbers = #tpu.dot_dimension_numbers<[1], [1], [0], [0], [0, 0, 1, 0], [], []>} : vector<16x8xbf16>, vector<16x8xbf16>, vector<16x16xf32> -> vector<16x16xf32>
    %cst_53 = arith.constant 0.353553385 : f32
    %82 = vector.broadcast %cst_53 : f32 to vector<16x16xf32>
    %83 = arith.mulf %81, %82 : vector<16x16xf32>
    %84 = vector.broadcast %2 : vector<1x16xf32> to vector<16x16xf32>
    %85 = arith.addf %83, %84 : vector<16x16xf32>
    %cst_54 = arith.constant dense<0xFF800000> : vector<16xf32>
    %86 = vector.multi_reduction <maximumf>, %85, %cst_54 [1] : vector<16x16xf32> to vector<16xf32>
    %87 = vector.shape_cast %86 : vector<16xf32> to vector<16x1xf32>
    %88 = vector.broadcast %87 : vector<16x1xf32> to vector<16x16xf32>
    %89 = arith.subf %85, %88 : vector<16x16xf32>
    %90 = math.exp %89 : vector<16x16xf32>
    %cst_55 = arith.constant dense<0.000000e+00> : vector<16xf32>
    %91 = vector.multi_reduction <add>, %90, %cst_55 [1] : vector<16x16xf32> to vector<16xf32>
    %92 = vector.shape_cast %91 : vector<16xf32> to vector<16x1xf32>
    %cst_56 = arith.constant 1.000000e+00 : f32
    %93 = vector.broadcast %cst_56 : f32 to vector<16x1xf32>
    %94 = arith.divf %93, %92 : vector<16x1xf32>
    %95 = vector.broadcast %94 : vector<16x1xf32> to vector<16x16xf32>
    %96 = arith.mulf %90, %95 : vector<16x16xf32>
    %97 = arith.truncf %96 : vector<16x16xf32> to vector<16x16xbf16>
    %cst_57 = arith.constant dense<0.000000e+00> : vector<16x8xf32>
    %98 = tpu.matmul %97, %80, %cst_57 {dimension_numbers = #tpu.dot_dimension_numbers<[1], [0], [0], [1], [0, 0, 1, 1], [], []>} : vector<16x16xbf16>, vector<16x8xbf16>, vector<16x8xf32> -> vector<16x8xf32>
    %99 = tpu.concatenate %26, %50, %74, %98 in 1 : vector<16x8xf32>, vector<16x8xf32>, vector<16x8xf32>, vector<16x8xf32> -> vector<16x32xf32>
    %100 = arith.truncf %99 : vector<16x32xf32> to vector<16x32xbf16>
    %c0_58 = arith.constant 0 : index
    %c0_59 = arith.constant 0 : index
    %c0_60 = arith.constant 0 : index
    %101 = vector.load %arg6[%c0_58, %c0_59, %c0_60] : memref<1x16x32xbf16, #tpu.memory_space<vmem>>, vector<1x16x32xbf16>
    %102 = vector.shape_cast %101 : vector<1x16x32xbf16> to vector<16x32xbf16>
    %103 = vector.shape_cast %100 : vector<16x32xbf16> to vector<1x16x32xbf16>
    tpu.vector_store %arg6[%c0_58, %c0_59, %c0_60], %103 {strides = array<i32>} : memref<1x16x32xbf16, #tpu.memory_space<vmem>>, vector<1x16x32xbf16>,
    return
  }
  func.func @transform_0(%arg0: i32, %arg1: i32) -> (i32, i32, i32) {
    %c0_i32 = arith.constant 0 : i32
    %c0_i32_0 = arith.constant 0 : i32
    return %arg0, %arg1, %c0_i32 : i32, i32, i32
  }
  func.func @transform_1(%arg0: i32, %arg1: i32) -> (i32, i32, i32) {
    %c0_i32 = arith.constant 0 : i32
    %c0_i32_0 = arith.constant 0 : i32
    %c0_i32_1 = arith.constant 0 : i32
    return %arg0, %c0_i32, %c0_i32_0 : i32, i32, i32
  }
  func.func @transform_2(%arg0: i32, %arg1: i32) -> (i32, i32, i32) {
    %c0_i32 = arith.constant 0 : i32
    %c0_i32_0 = arith.constant 0 : i32
    %c0_i32_1 = arith.constant 0 : i32
    return %arg0, %c0_i32, %c0_i32_0 : i32, i32, i32
  }
  func.func @transform_3(%arg0: i32, %arg1: i32) -> (i32, i32, i32) {
    %c0_i32 = arith.constant 0 : i32
    %c0_i32_0 = arith.constant 0 : i32
    %c0_i32_1 = arith.constant 0 : i32
    return %arg0, %c0_i32, %c0_i32_0 : i32, i32, i32
  }
  func.func @transform_4(%arg0: i32, %arg1: i32) -> (i32, i32, i32) {
    %c0_i32 = arith.constant 0 : i32
    %c0_i32_0 = arith.constant 0 : i32
    return %arg0, %arg1, %c0_i32 : i32, i32, i32
  }
}

module attributes {stable_mosaic.version = 11 : i64} {
  func.func @_linear_kernel(%arg0: i32, %arg1: memref<32x32xbf16, #tpu.memory_space<vmem>>, %arg2: memref<32x32xbf16, #tpu.memory_space<vmem>>, %arg3: memref<1x32xbf16, #tpu.memory_space<vmem>>, %arg4: memref<32x32xbf16, #tpu.memory_space<vmem>>, %arg5: memref<32x32xbf16, #tpu.memory_space<vmem>>) attributes {dimension_semantics = [#tpu.dimension_semantics<parallel>], iteration_bounds = array<i64: 1>, scalar_prefetch = 0 : i64, scratch_operands = 0 : i64, tpu.core_type = #tpu.core_type<tc>, window_params = [{transform_indices = @transform_0, window_bounds = array<i64: 32, 32>}, {pipeline_mode = #tpu.pipeline_mode<synchronous>, transform_indices = @transform_1, window_bounds = array<i64: 32, 32>}, {pipeline_mode = #tpu.pipeline_mode<synchronous>, transform_indices = @transform_2, window_bounds = array<i64: 1, 32>}, {transform_indices = @transform_3, window_bounds = array<i64: 32, 32>}, {transform_indices = @transform_4, window_bounds = array<i64: 32, 32>}]} {
    %c0 = arith.constant 0 : index
    %c0_0 = arith.constant 0 : index
    %0 = vector.load %arg1[%c0, %c0_0] : memref<32x32xbf16, #tpu.memory_space<vmem>>, vector<32x32xbf16>
    %c0_1 = arith.constant 0 : index
    %c0_2 = arith.constant 0 : index
    %1 = vector.load %arg2[%c0_1, %c0_2] : memref<32x32xbf16, #tpu.memory_space<vmem>>, vector<32x32xbf16>
    %cst = arith.constant dense<0.000000e+00> : vector<32x32xf32>
    %2 = tpu.matmul %0, %1, %cst {dimension_numbers = #tpu.dot_dimension_numbers<[1], [0], [0], [1], [0, 0, 1, 1], [], []>} : vector<32x32xbf16>, vector<32x32xbf16>, vector<32x32xf32> -> vector<32x32xf32>
    %c0_3 = arith.constant 0 : index
    %c0_4 = arith.constant 0 : index
    %3 = vector.load %arg3[%c0_3, %c0_4] : memref<1x32xbf16, #tpu.memory_space<vmem>>, vector<1x32xbf16>
    %4 = arith.extf %3 : vector<1x32xbf16> to vector<1x32xf32>
    %5 = vector.broadcast %4 : vector<1x32xf32> to vector<32x32xf32>
    %6 = arith.addf %2, %5 : vector<32x32xf32>
    %c0_5 = arith.constant 0 : index
    %c0_6 = arith.constant 0 : index
    %7 = vector.load %arg4[%c0_5, %c0_6] : memref<32x32xbf16, #tpu.memory_space<vmem>>, vector<32x32xbf16>
    %8 = arith.extf %7 : vector<32x32xbf16> to vector<32x32xf32>
    %9 = arith.addf %6, %8 : vector<32x32xf32>
    %10 = arith.truncf %9 : vector<32x32xf32> to vector<32x32xbf16>
    %c0_7 = arith.constant 0 : index
    %c0_8 = arith.constant 0 : index
    %11 = vector.load %arg5[%c0_7, %c0_8] : memref<32x32xbf16, #tpu.memory_space<vmem>>, vector<32x32xbf16>
    tpu.vector_store %arg5[%c0_7, %c0_8], %10 {strides = array<i32>} : memref<32x32xbf16, #tpu.memory_space<vmem>>, vector<32x32xbf16>,
    return
  }
  func.func @transform_0(%arg0: i32) -> (i32, i32) {
    %c0_i32 = arith.constant 0 : i32
    %c0_i32_0 = arith.constant 0 : i32
    return %arg0, %c0_i32 : i32, i32
  }
  func.func @transform_1(%arg0: i32) -> (i32, i32) {
    %c0_i32 = arith.constant 0 : i32
    %c0_i32_0 = arith.constant 0 : i32
    %c0_i32_1 = arith.constant 0 : i32
    return %c0_i32, %c0_i32_0 : i32, i32
  }
  func.func @transform_2(%arg0: i32) -> (i32, i32) {
    %c0_i32 = arith.constant 0 : i32
    %c0_i32_0 = arith.constant 0 : i32
    %c0_i32_1 = arith.constant 0 : i32
    return %c0_i32, %c0_i32_0 : i32, i32
  }
  func.func @transform_3(%arg0: i32) -> (i32, i32) {
    %c0_i32 = arith.constant 0 : i32
    %c0_i32_0 = arith.constant 0 : i32
    return %arg0, %c0_i32 : i32, i32
  }
  func.func @transform_4(%arg0: i32) -> (i32, i32) {
    %c0_i32 = arith.constant 0 : i32
    %c0_i32_0 = arith.constant 0 : i32
    return %arg0, %c0_i32 : i32, i32
  }
}

module attributes {stable_mosaic.version = 11 : i64} {
  func.func @_ln_linear_kernel(%arg0: i32, %arg1: memref<32x32xbf16, #tpu.memory_space<vmem>>, %arg2: memref<1x32xbf16, #tpu.memory_space<vmem>>, %arg3: memref<1x32xbf16, #tpu.memory_space<vmem>>, %arg4: memref<32x128xbf16, #tpu.memory_space<vmem>>, %arg5: memref<1x128xbf16, #tpu.memory_space<vmem>>, %arg6: memref<32x128xbf16, #tpu.memory_space<vmem>>) attributes {dimension_semantics = [#tpu.dimension_semantics<parallel>], iteration_bounds = array<i64: 1>, scalar_prefetch = 0 : i64, scratch_operands = 0 : i64, tpu.core_type = #tpu.core_type<tc>, window_params = [{transform_indices = @transform_0, window_bounds = array<i64: 32, 32>}, {pipeline_mode = #tpu.pipeline_mode<synchronous>, transform_indices = @transform_1, window_bounds = array<i64: 1, 32>}, {pipeline_mode = #tpu.pipeline_mode<synchronous>, transform_indices = @transform_2, window_bounds = array<i64: 1, 32>}, {pipeline_mode = #tpu.pipeline_mode<synchronous>, transform_indices = @transform_3, window_bounds = array<i64: 32, 128>}, {pipeline_mode = #tpu.pipeline_mode<synchronous>, transform_indices = @transform_4, window_bounds = array<i64: 1, 128>}, {transform_indices = @transform_5, window_bounds = array<i64: 32, 128>}]} {
    %c0 = arith.constant 0 : index
    %c0_0 = arith.constant 0 : index
    %0 = vector.load %arg1[%c0, %c0_0] : memref<32x32xbf16, #tpu.memory_space<vmem>>, vector<32x32xbf16>
    %1 = arith.extf %0 : vector<32x32xbf16> to vector<32x32xf32>
    %c0_1 = arith.constant 0 : index
    %c0_2 = arith.constant 0 : index
    %2 = vector.load %arg2[%c0_1, %c0_2] : memref<1x32xbf16, #tpu.memory_space<vmem>>, vector<1x32xbf16>
    %3 = arith.extf %2 : vector<1x32xbf16> to vector<1x32xf32>
    %c0_3 = arith.constant 0 : index
    %c0_4 = arith.constant 0 : index
    %4 = vector.load %arg3[%c0_3, %c0_4] : memref<1x32xbf16, #tpu.memory_space<vmem>>, vector<1x32xbf16>
    %5 = arith.extf %4 : vector<1x32xbf16> to vector<1x32xf32>
    %cst = arith.constant dense<0.000000e+00> : vector<32xf32>
    %6 = vector.multi_reduction <add>, %1, %cst [1] : vector<32x32xf32> to vector<32xf32>
    %7 = vector.shape_cast %6 : vector<32xf32> to vector<32x1xf32>
    %cst_5 = arith.constant 3.200000e+01 : f32
    %8 = vector.broadcast %cst_5 : f32 to vector<32x1xf32>
    %9 = arith.divf %7, %8 : vector<32x1xf32>
    %10 = vector.broadcast %9 : vector<32x1xf32> to vector<32x32xf32>
    %11 = arith.subf %1, %10 : vector<32x32xf32>
    %12 = arith.mulf %11, %11 : vector<32x32xf32>
    %cst_6 = arith.constant dense<0.000000e+00> : vector<32xf32>
    %13 = vector.multi_reduction <add>, %12, %cst_6 [1] : vector<32x32xf32> to vector<32xf32>
    %14 = vector.shape_cast %13 : vector<32xf32> to vector<32x1xf32>
    %cst_7 = arith.constant 3.200000e+01 : f32
    %15 = vector.broadcast %cst_7 : f32 to vector<32x1xf32>
    %16 = arith.divf %14, %15 : vector<32x1xf32>
    %17 = vector.broadcast %9 : vector<32x1xf32> to vector<32x32xf32>
    %18 = arith.subf %1, %17 : vector<32x32xf32>
    %cst_8 = arith.constant 9.99999974E-6 : f32
    %19 = vector.broadcast %cst_8 : f32 to vector<32x1xf32>
    %20 = arith.addf %16, %19 : vector<32x1xf32>
    %21 = math.rsqrt %20 : vector<32x1xf32>
    %22 = vector.broadcast %21 : vector<32x1xf32> to vector<32x32xf32>
    %23 = arith.mulf %18, %22 : vector<32x32xf32>
    %24 = vector.broadcast %3 : vector<1x32xf32> to vector<32x32xf32>
    %25 = arith.mulf %23, %24 : vector<32x32xf32>
    %26 = vector.broadcast %5 : vector<1x32xf32> to vector<32x32xf32>
    %27 = arith.addf %25, %26 : vector<32x32xf32>
    %28 = arith.truncf %27 : vector<32x32xf32> to vector<32x32xbf16>
    %c0_9 = arith.constant 0 : index
    %c0_10 = arith.constant 0 : index
    %29 = vector.load %arg4[%c0_9, %c0_10] : memref<32x128xbf16, #tpu.memory_space<vmem>>, vector<32x128xbf16>
    %cst_11 = arith.constant dense<0.000000e+00> : vector<32x128xf32>
    %30 = tpu.matmul %28, %29, %cst_11 {dimension_numbers = #tpu.dot_dimension_numbers<[1], [0], [0], [1], [0, 0, 1, 1], [], []>} : vector<32x32xbf16>, vector<32x128xbf16>, vector<32x128xf32> -> vector<32x128xf32>
    %c0_12 = arith.constant 0 : index
    %c0_13 = arith.constant 0 : index
    %31 = vector.load %arg5[%c0_12, %c0_13] : memref<1x128xbf16, #tpu.memory_space<vmem>>, vector<1x128xbf16>
    %32 = arith.extf %31 : vector<1x128xbf16> to vector<1x128xf32>
    %33 = vector.broadcast %32 : vector<1x128xf32> to vector<32x128xf32>
    %34 = arith.addf %30, %33 : vector<32x128xf32>
    %35 = arith.mulf %34, %34 : vector<32x128xf32>
    %36 = arith.mulf %34, %35 : vector<32x128xf32>
    %cst_14 = arith.constant 4.471500e-02 : f32
    %37 = vector.broadcast %cst_14 : f32 to vector<32x128xf32>
    %38 = arith.mulf %37, %36 : vector<32x128xf32>
    %39 = arith.addf %34, %38 : vector<32x128xf32>
    %cst_15 = arith.constant 0.797884583 : f32
    %40 = vector.broadcast %cst_15 : f32 to vector<32x128xf32>
    %41 = arith.mulf %40, %39 : vector<32x128xf32>
    %42 = math.tanh %41 : vector<32x128xf32>
    %cst_16 = arith.constant 1.000000e+00 : f32
    %43 = vector.broadcast %cst_16 : f32 to vector<32x128xf32>
    %44 = arith.addf %43, %42 : vector<32x128xf32>
    %cst_17 = arith.constant 5.000000e-01 : f32
    %45 = vector.broadcast %cst_17 : f32 to vector<32x128xf32>
    %46 = arith.mulf %45, %44 : vector<32x128xf32>
    %47 = arith.mulf %34, %46 : vector<32x128xf32>
    %48 = arith.truncf %47 : vector<32x128xf32> to vector<32x128xbf16>
    %c0_18 = arith.constant 0 : index
    %c0_19 = arith.constant 0 : index
    %49 = vector.load %arg6[%c0_18, %c0_19] : memref<32x128xbf16, #tpu.memory_space<vmem>>, vector<32x128xbf16>
    tpu.vector_store %arg6[%c0_18, %c0_19], %48 {strides = array<i32>} : memref<32x128xbf16, #tpu.memory_space<vmem>>, vector<32x128xbf16>,
    return
  }
  func.func @transform_0(%arg0: i32) -> (i32, i32) {
    %c0_i32 = arith.constant 0 : i32
    %c0_i32_0 = arith.constant 0 : i32
    return %arg0, %c0_i32 : i32, i32
  }
  func.func @transform_1(%arg0: i32) -> (i32, i32) {
    %c0_i32 = arith.constant 0 : i32
    %c0_i32_0 = arith.constant 0 : i32
    %c0_i32_1 = arith.constant 0 : i32
    return %c0_i32, %c0_i32_0 : i32, i32
  }
  func.func @transform_2(%arg0: i32) -> (i32, i32) {
    %c0_i32 = arith.constant 0 : i32
    %c0_i32_0 = arith.constant 0 : i32
    %c0_i32_1 = arith.constant 0 : i32
    return %c0_i32, %c0_i32_0 : i32, i32
  }
  func.func @transform_3(%arg0: i32) -> (i32, i32) {
    %c0_i32 = arith.constant 0 : i32
    %c0_i32_0 = arith.constant 0 : i32
    %c0_i32_1 = arith.constant 0 : i32
    return %c0_i32, %c0_i32_0 : i32, i32
  }
  func.func @transform_4(%arg0: i32) -> (i32, i32) {
    %c0_i32 = arith.constant 0 : i32
    %c0_i32_0 = arith.constant 0 : i32
    %c0_i32_1 = arith.constant 0 : i32
    return %c0_i32, %c0_i32_0 : i32, i32
  }
  func.func @transform_5(%arg0: i32) -> (i32, i32) {
    %c0_i32 = arith.constant 0 : i32
    %c0_i32_0 = arith.constant 0 : i32
    return %arg0, %c0_i32 : i32, i32
  }
}

module attributes {stable_mosaic.version = 11 : i64} {
  func.func @_linear_kernel(%arg0: i32, %arg1: memref<32x128xbf16, #tpu.memory_space<vmem>>, %arg2: memref<128x32xbf16, #tpu.memory_space<vmem>>, %arg3: memref<1x32xbf16, #tpu.memory_space<vmem>>, %arg4: memref<32x32xbf16, #tpu.memory_space<vmem>>, %arg5: memref<32x32xbf16, #tpu.memory_space<vmem>>) attributes {dimension_semantics = [#tpu.dimension_semantics<parallel>], iteration_bounds = array<i64: 1>, scalar_prefetch = 0 : i64, scratch_operands = 0 : i64, tpu.core_type = #tpu.core_type<tc>, window_params = [{transform_indices = @transform_0, window_bounds = array<i64: 32, 128>}, {pipeline_mode = #tpu.pipeline_mode<synchronous>, transform_indices = @transform_1, window_bounds = array<i64: 128, 32>}, {pipeline_mode = #tpu.pipeline_mode<synchronous>, transform_indices = @transform_2, window_bounds = array<i64: 1, 32>}, {transform_indices = @transform_3, window_bounds = array<i64: 32, 32>}, {transform_indices = @transform_4, window_bounds = array<i64: 32, 32>}]} {
    %c0 = arith.constant 0 : index
    %c0_0 = arith.constant 0 : index
    %0 = vector.load %arg1[%c0, %c0_0] : memref<32x128xbf16, #tpu.memory_space<vmem>>, vector<32x128xbf16>
    %c0_1 = arith.constant 0 : index
    %c0_2 = arith.constant 0 : index
    %1 = vector.load %arg2[%c0_1, %c0_2] : memref<128x32xbf16, #tpu.memory_space<vmem>>, vector<128x32xbf16>
    %cst = arith.constant dense<0.000000e+00> : vector<32x32xf32>
    %2 = tpu.matmul %0, %1, %cst {dimension_numbers = #tpu.dot_dimension_numbers<[1], [0], [0], [1], [0, 0, 1, 1], [], []>} : vector<32x128xbf16>, vector<128x32xbf16>, vector<32x32xf32> -> vector<32x32xf32>
    %c0_3 = arith.constant 0 : index
    %c0_4 = arith.constant 0 : index
    %3 = vector.load %arg3[%c0_3, %c0_4] : memref<1x32xbf16, #tpu.memory_space<vmem>>, vector<1x32xbf16>
    %4 = arith.extf %3 : vector<1x32xbf16> to vector<1x32xf32>
    %5 = vector.broadcast %4 : vector<1x32xf32> to vector<32x32xf32>
    %6 = arith.addf %2, %5 : vector<32x32xf32>
    %c0_5 = arith.constant 0 : index
    %c0_6 = arith.constant 0 : index
    %7 = vector.load %arg4[%c0_5, %c0_6] : memref<32x32xbf16, #tpu.memory_space<vmem>>, vector<32x32xbf16>
    %8 = arith.extf %7 : vector<32x32xbf16> to vector<32x32xf32>
    %9 = arith.addf %6, %8 : vector<32x32xf32>
    %10 = arith.truncf %9 : vector<32x32xf32> to vector<32x32xbf16>
    %c0_7 = arith.constant 0 : index
    %c0_8 = arith.constant 0 : index
    %11 = vector.load %arg5[%c0_7, %c0_8] : memref<32x32xbf16, #tpu.memory_space<vmem>>, vector<32x32xbf16>
    tpu.vector_store %arg5[%c0_7, %c0_8], %10 {strides = array<i32>} : memref<32x32xbf16, #tpu.memory_space<vmem>>, vector<32x32xbf16>,
    return
  }
  func.func @transform_0(%arg0: i32) -> (i32, i32) {
    %c0_i32 = arith.constant 0 : i32
    %c0_i32_0 = arith.constant 0 : i32
    return %arg0, %c0_i32 : i32, i32
  }
  func.func @transform_1(%arg0: i32) -> (i32, i32) {
    %c0_i32 = arith.constant 0 : i32
    %c0_i32_0 = arith.constant 0 : i32
    %c0_i32_1 = arith.constant 0 : i32
    return %c0_i32, %c0_i32_0 : i32, i32
  }
  func.func @transform_2(%arg0: i32) -> (i32, i32) {
    %c0_i32 = arith.constant 0 : i32
    %c0_i32_0 = arith.constant 0 : i32
    %c0_i32_1 = arith.constant 0 : i32
    return %c0_i32, %c0_i32_0 : i32, i32
  }
  func.func @transform_3(%arg0: i32) -> (i32, i32) {
    %c0_i32 = arith.constant 0 : i32
    %c0_i32_0 = arith.constant 0 : i32
    return %arg0, %c0_i32 : i32, i32
  }
  func.func @transform_4(%arg0: i32) -> (i32, i32) {
    %c0_i32 = arith.constant 0 : i32
    %c0_i32_0 = arith.constant 0 : i32
    return %arg0, %c0_i32 : i32, i32
  }
}

module attributes {stable_mosaic.version = 11 : i64} {
  func.func @_causal_conv_kernel(%arg0: i32, %arg1: memref<1x16x32xbf16, #tpu.memory_space<vmem>>, %arg2: memref<1x16x1xbf16, #tpu.memory_space<vmem>>, %arg3: memref<3x32x32xbf16, #tpu.memory_space<vmem>>, %arg4: memref<1x32xbf16, #tpu.memory_space<vmem>>, %arg5: memref<1x16x32xbf16, #tpu.memory_space<vmem>>, %arg6: memref<24x32xbf16, #tpu.memory_space<vmem>>) attributes {dimension_semantics = [#tpu.dimension_semantics<parallel>], iteration_bounds = array<i64: 2>, scalar_prefetch = 0 : i64, scratch_operands = 1 : i64, tpu.core_type = #tpu.core_type<tc>, window_params = [{transform_indices = @transform_0, window_bounds = array<i64: 1, 16, 32>}, {transform_indices = @transform_1, window_bounds = array<i64: 1, 16, 1>}, {pipeline_mode = #tpu.pipeline_mode<synchronous>, transform_indices = @transform_2, window_bounds = array<i64: 3, 32, 32>}, {pipeline_mode = #tpu.pipeline_mode<synchronous>, transform_indices = @transform_3, window_bounds = array<i64: 1, 32>}, {transform_indices = @transform_4, window_bounds = array<i64: 1, 16, 32>}]} {
    %c0 = arith.constant 0 : index
    %c0_0 = arith.constant 0 : index
    %c0_1 = arith.constant 0 : index
    %0 = vector.load %arg1[%c0, %c0_0, %c0_1] : memref<1x16x32xbf16, #tpu.memory_space<vmem>>, vector<1x16x32xbf16>
    %1 = vector.shape_cast %0 : vector<1x16x32xbf16> to vector<16x32xbf16>
    %c0_2 = arith.constant 0 : index
    %c0_3 = arith.constant 0 : index
    %c0_4 = arith.constant 0 : index
    %2 = vector.load %arg2[%c0_2, %c0_3, %c0_4] : memref<1x16x1xbf16, #tpu.memory_space<vmem>>, vector<1x16x1xbf16>
    %3 = vector.shape_cast %2 : vector<1x16x1xbf16> to vector<16x1xbf16>
    %4 = vector.broadcast %3 : vector<16x1xbf16> to vector<16x32xbf16>
    %5 = arith.mulf %1, %4 : vector<16x32xbf16>
    %cst = arith.constant 0.000000e+00 : bf16
    %6 = vector.broadcast %cst : bf16 to vector<8x32xbf16>
    %c0_5 = arith.constant 0 : index
    %c0_6 = arith.constant 0 : index
    %7 = vector.load %arg6[%c0_5, %c0_6] : memref<24x32xbf16, #tpu.memory_space<vmem>>, vector<8x32xbf16>
    tpu.vector_store %arg6[%c0_5, %c0_6], %6 {strides = array<i32>} : memref<24x32xbf16, #tpu.memory_space<vmem>>, vector<8x32xbf16>,
    %c8 = arith.constant 8 : index
    %c0_7 = arith.constant 0 : index
    %8 = vector.load %arg6[%c8, %c0_7] : memref<24x32xbf16, #tpu.memory_space<vmem>>, vector<16x32xbf16>
    tpu.vector_store %arg6[%c8, %c0_7], %5 {strides = array<i32>} : memref<24x32xbf16, #tpu.memory_space<vmem>>, vector<16x32xbf16>,
    %cst_8 = arith.constant 0.000000e+00 : f32
    %9 = vector.broadcast %cst_8 : f32 to vector<16x32xf32>
    %c6 = arith.constant 6 : index
    %c0_9 = arith.constant 0 : index
    %10 = vector.load %arg6[%c6, %c0_9] : memref<24x32xbf16, #tpu.memory_space<vmem>>, vector<16x32xbf16>
    %c0_10 = arith.constant 0 : index
    %c0_11 = arith.constant 0 : index
    %c0_12 = arith.constant 0 : index
    %11 = vector.load %arg3[%c0_10, %c0_11, %c0_12] : memref<3x32x32xbf16, #tpu.memory_space<vmem>>, vector<1x32x32xbf16>
    %12 = vector.shape_cast %11 : vector<1x32x32xbf16> to vector<32x32xbf16>
    %cst_13 = arith.constant dense<0.000000e+00> : vector<16x32xf32>
    %13 = tpu.matmul %10, %12, %cst_13 {dimension_numbers = #tpu.dot_dimension_numbers<[1], [0], [0], [1], [0, 0, 1, 1], [], []>} : vector<16x32xbf16>, vector<32x32xbf16>, vector<16x32xf32> -> vector<16x32xf32>
    %14 = arith.addf %9, %13 : vector<16x32xf32>
    %c7 = arith.constant 7 : index
    %c0_14 = arith.constant 0 : index
    %15 = vector.load %arg6[%c7, %c0_14] : memref<24x32xbf16, #tpu.memory_space<vmem>>, vector<16x32xbf16>
    %c1 = arith.constant 1 : index
    %c0_15 = arith.constant 0 : index
    %c0_16 = arith.constant 0 : index
    %16 = vector.load %arg3[%c1, %c0_15, %c0_16] : memref<3x32x32xbf16, #tpu.memory_space<vmem>>, vector<1x32x32xbf16>
    %17 = vector.shape_cast %16 : vector<1x32x32xbf16> to vector<32x32xbf16>
    %cst_17 = arith.constant dense<0.000000e+00> : vector<16x32xf32>
    %18 = tpu.matmul %15, %17, %cst_17 {dimension_numbers = #tpu.dot_dimension_numbers<[1], [0], [0], [1], [0, 0, 1, 1], [], []>} : vector<16x32xbf16>, vector<32x32xbf16>, vector<16x32xf32> -> vector<16x32xf32>
    %19 = arith.addf %14, %18 : vector<16x32xf32>
    %c8_18 = arith.constant 8 : index
    %c0_19 = arith.constant 0 : index
    %20 = vector.load %arg6[%c8_18, %c0_19] : memref<24x32xbf16, #tpu.memory_space<vmem>>, vector<16x32xbf16>
    %c2 = arith.constant 2 : index
    %c0_20 = arith.constant 0 : index
    %c0_21 = arith.constant 0 : index
    %21 = vector.load %arg3[%c2, %c0_20, %c0_21] : memref<3x32x32xbf16, #tpu.memory_space<vmem>>, vector<1x32x32xbf16>
    %22 = vector.shape_cast %21 : vector<1x32x32xbf16> to vector<32x32xbf16>
    %cst_22 = arith.constant dense<0.000000e+00> : vector<16x32xf32>
    %23 = tpu.matmul %20, %22, %cst_22 {dimension_numbers = #tpu.dot_dimension_numbers<[1], [0], [0], [1], [0, 0, 1, 1], [], []>} : vector<16x32xbf16>, vector<32x32xbf16>, vector<16x32xf32> -> vector<16x32xf32>
    %24 = arith.addf %19, %23 : vector<16x32xf32>
    %c0_23 = arith.constant 0 : index
    %c0_24 = arith.constant 0 : index
    %25 = vector.load %arg4[%c0_23, %c0_24] : memref<1x32xbf16, #tpu.memory_space<vmem>>, vector<1x32xbf16>
    %26 = arith.extf %25 : vector<1x32xbf16> to vector<1x32xf32>
    %27 = vector.broadcast %26 : vector<1x32xf32> to vector<16x32xf32>
    %28 = arith.addf %24, %27 : vector<16x32xf32>
    %29 = arith.truncf %28 : vector<16x32xf32> to vector<16x32xbf16>
    %c0_25 = arith.constant 0 : index
    %c0_26 = arith.constant 0 : index
    %c0_27 = arith.constant 0 : index
    %30 = vector.load %arg5[%c0_25, %c0_26, %c0_27] : memref<1x16x32xbf16, #tpu.memory_space<vmem>>, vector<1x16x32xbf16>
    %31 = vector.shape_cast %30 : vector<1x16x32xbf16> to vector<16x32xbf16>
    %32 = vector.shape_cast %29 : vector<16x32xbf16> to vector<1x16x32xbf16>
    tpu.vector_store %arg5[%c0_25, %c0_26, %c0_27], %32 {strides = array<i32>} : memref<1x16x32xbf16, #tpu.memory_space<vmem>>, vector<1x16x32xbf16>,
    return
  }
  func.func @transform_0(%arg0: i32) -> (i32, i32, i32) {
    %c0_i32 = arith.constant 0 : i32
    %c0_i32_0 = arith.constant 0 : i32
    %c0_i32_1 = arith.constant 0 : i32
    return %arg0, %c0_i32, %c0_i32_0 : i32, i32, i32
  }
  func.func @transform_1(%arg0: i32) -> (i32, i32, i32) {
    %c0_i32 = arith.constant 0 : i32
    %c0_i32_0 = arith.constant 0 : i32
    %c0_i32_1 = arith.constant 0 : i32
    return %arg0, %c0_i32, %c0_i32_0 : i32, i32, i32
  }
  func.func @transform_2(%arg0: i32) -> (i32, i32, i32) {
    %c0_i32 = arith.constant 0 : i32
    %c0_i32_0 = arith.constant 0 : i32
    %c0_i32_1 = arith.constant 0 : i32
    %c0_i32_2 = arith.constant 0 : i32
    return %c0_i32, %c0_i32_0, %c0_i32_1 : i32, i32, i32
  }
  func.func @transform_3(%arg0: i32) -> (i32, i32) {
    %c0_i32 = arith.constant 0 : i32
    %c0_i32_0 = arith.constant 0 : i32
    %c0_i32_1 = arith.constant 0 : i32
    return %c0_i32, %c0_i32_0 : i32, i32
  }
  func.func @transform_4(%arg0: i32) -> (i32, i32, i32) {
    %c0_i32 = arith.constant 0 : i32
    %c0_i32_0 = arith.constant 0 : i32
    %c0_i32_1 = arith.constant 0 : i32
    return %arg0, %c0_i32, %c0_i32_0 : i32, i32, i32
  }
}

module attributes {stable_mosaic.version = 11 : i64} {
  func.func @_resnet_block1_kernel(%arg0: i32, %arg1: memref<1x16x32xbf16, #tpu.memory_space<vmem>>, %arg2: memref<1x16x32xbf16, #tpu.memory_space<vmem>>, %arg3: memref<1x16x1xbf16, #tpu.memory_space<vmem>>, %arg4: memref<3x64x32xbf16, #tpu.memory_space<vmem>>, %arg5: memref<1x32xbf16, #tpu.memory_space<vmem>>, %arg6: memref<1x32xbf16, #tpu.memory_space<vmem>>, %arg7: memref<1x32xbf16, #tpu.memory_space<vmem>>, %arg8: memref<64x32xbf16, #tpu.memory_space<vmem>>, %arg9: memref<1x32xbf16, #tpu.memory_space<vmem>>, %arg10: memref<1x1x32xbf16, #tpu.memory_space<vmem>>, %arg11: memref<1x16x32xbf16, #tpu.memory_space<vmem>>, %arg12: memref<1x16x32xbf16, #tpu.memory_space<vmem>>, %arg13: memref<24x64xbf16, #tpu.memory_space<vmem>>) attributes {dimension_semantics = [#tpu.dimension_semantics<parallel>], iteration_bounds = array<i64: 2>, scalar_prefetch = 0 : i64, scratch_operands = 1 : i64, tpu.core_type = #tpu.core_type<tc>, window_params = [{transform_indices = @transform_0, window_bounds = array<i64: 1, 16, 32>}, {transform_indices = @transform_1, window_bounds = array<i64: 1, 16, 32>}, {transform_indices = @transform_2, window_bounds = array<i64: 1, 16, 1>}, {pipeline_mode = #tpu.pipeline_mode<synchronous>, transform_indices = @transform_3, window_bounds = array<i64: 3, 64, 32>}, {pipeline_mode = #tpu.pipeline_mode<synchronous>, transform_indices = @transform_4, window_bounds = array<i64: 1, 32>}, {pipeline_mode = #tpu.pipeline_mode<synchronous>, transform_indices = @transform_5, window_bounds = array<i64: 1, 32>}, {pipeline_mode = #tpu.pipeline_mode<synchronous>, transform_indices = @transform_6, window_bounds = array<i64: 1, 32>}, {pipeline_mode = #tpu.pipeline_mode<synchronous>, transform_indices = @transform_7, window_bounds = array<i64: 64, 32>}, {pipeline_mode = #tpu.pipeline_mode<synchronous>, transform_indices = @transform_8, window_bounds = array<i64: 1, 32>}, {transform_indices = @transform_9, window_bounds = array<i64: 1, 1, 32>}, {transform_indices = @transform_10, window_bounds = array<i64: 1, 16, 32>}, {transform_indices = @transform_11, window_bounds = array<i64: 1, 16, 32>}]} {
    %c0 = arith.constant 0 : index
    %c0_0 = arith.constant 0 : index
    %c0_1 = arith.constant 0 : index
    %0 = vector.load %arg3[%c0, %c0_0, %c0_1] : memref<1x16x1xbf16, #tpu.memory_space<vmem>>, vector<1x16x1xbf16>
    %1 = vector.shape_cast %0 : vector<1x16x1xbf16> to vector<16x1xbf16>
    %c0_2 = arith.constant 0 : index
    %c0_3 = arith.constant 0 : index
    %c0_4 = arith.constant 0 : index
    %2 = vector.load %arg1[%c0_2, %c0_3, %c0_4] : memref<1x16x32xbf16, #tpu.memory_space<vmem>>, vector<1x16x32xbf16>
    %3 = vector.shape_cast %2 : vector<1x16x32xbf16> to vector<16x32xbf16>
    %4 = vector.broadcast %1 : vector<16x1xbf16> to vector<16x32xbf16>
    %5 = arith.mulf %3, %4 : vector<16x32xbf16>
    %cst = arith.constant 0.000000e+00 : bf16
    %6 = vector.broadcast %cst : bf16 to vector<8x64xbf16>
    %c0_5 = arith.constant 0 : index
    %c0_6 = arith.constant 0 : index
    %7 = vector.load %arg13[%c0_5, %c0_6] : memref<24x64xbf16, #tpu.memory_space<vmem>>, vector<8x64xbf16>
    tpu.vector_store %arg13[%c0_5, %c0_6], %6 {strides = array<i32>} : memref<24x64xbf16, #tpu.memory_space<vmem>>, vector<8x64xbf16>,
    %c8 = arith.constant 8 : index
    %c0_7 = arith.constant 0 : index
    %8 = vector.load %arg13[%c8, %c0_7] : memref<24x64xbf16, #tpu.memory_space<vmem>>, vector<16x32xbf16>
    tpu.vector_store %arg13[%c8, %c0_7], %5 {strides = array<i32>} : memref<24x64xbf16, #tpu.memory_space<vmem>>, vector<16x32xbf16>,
    %c0_8 = arith.constant 0 : index
    %c0_9 = arith.constant 0 : index
    %9 = vector.load %arg8[%c0_8, %c0_9] : memref<64x32xbf16, #tpu.memory_space<vmem>>, vector<32x32xbf16>
    %cst_10 = arith.constant dense<0.000000e+00> : vector<16x32xf32>
    %10 = tpu.matmul %5, %9, %cst_10 {dimension_numbers = #tpu.dot_dimension_numbers<[1], [0], [0], [1], [0, 0, 1, 1], [], []>} : vector<16x32xbf16>, vector<32x32xbf16>, vector<16x32xf32> -> vector<16x32xf32>
    %c0_11 = arith.constant 0 : index
    %c0_12 = arith.constant 0 : index
    %c0_13 = arith.constant 0 : index
    %11 = vector.load %arg2[%c0_11, %c0_12, %c0_13] : memref<1x16x32xbf16, #tpu.memory_space<vmem>>, vector<1x16x32xbf16>
    %12 = vector.shape_cast %11 : vector<1x16x32xbf16> to vector<16x32xbf16>
    %13 = vector.broadcast %1 : vector<16x1xbf16> to vector<16x32xbf16>
    %14 = arith.mulf %12, %13 : vector<16x32xbf16>
    %c8_14 = arith.constant 8 : index
    %c32 = arith.constant 32 : index
    %15 = vector.load %arg13[%c8_14, %c32] : memref<24x64xbf16, #tpu.memory_space<vmem>>, vector<16x32xbf16>
    tpu.vector_store %arg13[%c8_14, %c32], %14 {strides = array<i32>} : memref<24x64xbf16, #tpu.memory_space<vmem>>, vector<16x32xbf16>,
    %c32_15 = arith.constant 32 : index
    %c0_16 = arith.constant 0 : index
    %16 = vector.load %arg8[%c32_15, %c0_16] : memref<64x32xbf16, #tpu.memory_space<vmem>>, vector<32x32xbf16>
    %cst_17 = arith.constant dense<0.000000e+00> : vector<16x32xf32>
    %17 = tpu.matmul %14, %16, %cst_17 {dimension_numbers = #tpu.dot_dimension_numbers<[1], [0], [0], [1], [0, 0, 1, 1], [], []>} : vector<16x32xbf16>, vector<32x32xbf16>, vector<16x32xf32> -> vector<16x32xf32>
    %18 = arith.addf %10, %17 : vector<16x32xf32>
    %c0_18 = arith.constant 0 : index
    %c0_19 = arith.constant 0 : index
    %19 = vector.load %arg9[%c0_18, %c0_19] : memref<1x32xbf16, #tpu.memory_space<vmem>>, vector<1x32xbf16>
    %20 = arith.extf %19 : vector<1x32xbf16> to vector<1x32xf32>
    %21 = vector.broadcast %20 : vector<1x32xf32> to vector<16x32xf32>
    %22 = arith.addf %18, %21 : vector<16x32xf32>
    %23 = arith.truncf %22 : vector<16x32xf32> to vector<16x32xbf16>
    %c0_20 = arith.constant 0 : index
    %c0_21 = arith.constant 0 : index
    %c0_22 = arith.constant 0 : index
    %24 = vector.load %arg12[%c0_20, %c0_21, %c0_22] : memref<1x16x32xbf16, #tpu.memory_space<vmem>>, vector<1x16x32xbf16>
    %25 = vector.shape_cast %24 : vector<1x16x32xbf16> to vector<16x32xbf16>
    %26 = vector.shape_cast %23 : vector<16x32xbf16> to vector<1x16x32xbf16>
    tpu.vector_store %arg12[%c0_20, %c0_21, %c0_22], %26 {strides = array<i32>} : memref<1x16x32xbf16, #tpu.memory_space<vmem>>, vector<1x16x32xbf16>,
    %cst_23 = arith.constant 0.000000e+00 : f32
    %27 = vector.broadcast %cst_23 : f32 to vector<16x32xf32>
    %c6 = arith.constant 6 : index
    %c0_24 = arith.constant 0 : index
    %28 = vector.load %arg13[%c6, %c0_24] : memref<24x64xbf16, #tpu.memory_space<vmem>>, vector<16x64xbf16>
    %c0_25 = arith.constant 0 : index
    %c0_26 = arith.constant 0 : index
    %c0_27 = arith.constant 0 : index
    %29 = vector.load %arg4[%c0_25, %c0_26, %c0_27] : memref<3x64x32xbf16, #tpu.memory_space<vmem>>, vector<1x64x32xbf16>
    %30 = vector.shape_cast %29 : vector<1x64x32xbf16> to vector<64x32xbf16>
    %cst_28 = arith.constant dense<0.000000e+00> : vector<16x32xf32>
    %31 = tpu.matmul %28, %30, %cst_28 {dimension_numbers = #tpu.dot_dimension_numbers<[1], [0], [0], [1], [0, 0, 1, 1], [], []>} : vector<16x64xbf16>, vector<64x32xbf16>, vector<16x32xf32> -> vector<16x32xf32>
    %32 = arith.addf %27, %31 : vector<16x32xf32>
    %c7 = arith.constant 7 : index
    %c0_29 = arith.constant 0 : index
    %33 = vector.load %arg13[%c7, %c0_29] : memref<24x64xbf16, #tpu.memory_space<vmem>>, vector<16x64xbf16>
    %c1 = arith.constant 1 : index
    %c0_30 = arith.constant 0 : index
    %c0_31 = arith.constant 0 : index
    %34 = vector.load %arg4[%c1, %c0_30, %c0_31] : memref<3x64x32xbf16, #tpu.memory_space<vmem>>, vector<1x64x32xbf16>
    %35 = vector.shape_cast %34 : vector<1x64x32xbf16> to vector<64x32xbf16>
    %cst_32 = arith.constant dense<0.000000e+00> : vector<16x32xf32>
    %36 = tpu.matmul %33, %35, %cst_32 {dimension_numbers = #tpu.dot_dimension_numbers<[1], [0], [0], [1], [0, 0, 1, 1], [], []>} : vector<16x64xbf16>, vector<64x32xbf16>, vector<16x32xf32> -> vector<16x32xf32>
    %37 = arith.addf %32, %36 : vector<16x32xf32>
    %c8_33 = arith.constant 8 : index
    %c0_34 = arith.constant 0 : index
    %38 = vector.load %arg13[%c8_33, %c0_34] : memref<24x64xbf16, #tpu.memory_space<vmem>>, vector<16x64xbf16>
    %c2 = arith.constant 2 : index
    %c0_35 = arith.constant 0 : index
    %c0_36 = arith.constant 0 : index
    %39 = vector.load %arg4[%c2, %c0_35, %c0_36] : memref<3x64x32xbf16, #tpu.memory_space<vmem>>, vector<1x64x32xbf16>
    %40 = vector.shape_cast %39 : vector<1x64x32xbf16> to vector<64x32xbf16>
    %cst_37 = arith.constant dense<0.000000e+00> : vector<16x32xf32>
    %41 = tpu.matmul %38, %40, %cst_37 {dimension_numbers = #tpu.dot_dimension_numbers<[1], [0], [0], [1], [0, 0, 1, 1], [], []>} : vector<16x64xbf16>, vector<64x32xbf16>, vector<16x32xf32> -> vector<16x32xf32>
    %42 = arith.addf %37, %41 : vector<16x32xf32>
    %c0_38 = arith.constant 0 : index
    %c0_39 = arith.constant 0 : index
    %43 = vector.load %arg5[%c0_38, %c0_39] : memref<1x32xbf16, #tpu.memory_space<vmem>>, vector<1x32xbf16>
    %44 = arith.extf %43 : vector<1x32xbf16> to vector<1x32xf32>
    %45 = vector.broadcast %44 : vector<1x32xf32> to vector<16x32xf32>
    %46 = arith.addf %42, %45 : vector<16x32xf32>
    %c0_40 = arith.constant 0 : index
    %c0_41 = arith.constant 0 : index
    %47 = vector.load %arg6[%c0_40, %c0_41] : memref<1x32xbf16, #tpu.memory_space<vmem>>, vector<1x32xbf16>
    %48 = arith.extf %47 : vector<1x32xbf16> to vector<1x32xf32>
    %c0_42 = arith.constant 0 : index
    %c0_43 = arith.constant 0 : index
    %49 = vector.load %arg7[%c0_42, %c0_43] : memref<1x32xbf16, #tpu.memory_space<vmem>>, vector<1x32xbf16>
    %50 = arith.extf %49 : vector<1x32xbf16> to vector<1x32xf32>
    %cst_44 = arith.constant dense<0.000000e+00> : vector<16xf32>
    %51 = vector.multi_reduction <add>, %46, %cst_44 [1] : vector<16x32xf32> to vector<16xf32>
    %52 = vector.shape_cast %51 : vector<16xf32> to vector<16x1xf32>
    %cst_45 = arith.constant 3.200000e+01 : f32
    %53 = vector.broadcast %cst_45 : f32 to vector<16x1xf32>
    %54 = arith.divf %52, %53 : vector<16x1xf32>
    %55 = vector.broadcast %54 : vector<16x1xf32> to vector<16x32xf32>
    %56 = arith.subf %46, %55 : vector<16x32xf32>
    %57 = arith.mulf %56, %56 : vector<16x32xf32>
    %cst_46 = arith.constant dense<0.000000e+00> : vector<16xf32>
    %58 = vector.multi_reduction <add>, %57, %cst_46 [1] : vector<16x32xf32> to vector<16xf32>
    %59 = vector.shape_cast %58 : vector<16xf32> to vector<16x1xf32>
    %cst_47 = arith.constant 3.200000e+01 : f32
    %60 = vector.broadcast %cst_47 : f32 to vector<16x1xf32>
    %61 = arith.divf %59, %60 : vector<16x1xf32>
    %62 = vector.broadcast %54 : vector<16x1xf32> to vector<16x32xf32>
    %63 = arith.subf %46, %62 : vector<16x32xf32>
    %cst_48 = arith.constant 9.99999974E-6 : f32
    %64 = vector.broadcast %cst_48 : f32 to vector<16x1xf32>
    %65 = arith.addf %61, %64 : vector<16x1xf32>
    %66 = math.rsqrt %65 : vector<16x1xf32>
    %67 = vector.broadcast %66 : vector<16x1xf32> to vector<16x32xf32>
    %68 = arith.mulf %63, %67 : vector<16x32xf32>
    %69 = vector.broadcast %48 : vector<1x32xf32> to vector<16x32xf32>
    %70 = arith.mulf %68, %69 : vector<16x32xf32>
    %71 = vector.broadcast %50 : vector<1x32xf32> to vector<16x32xf32>
    %72 = arith.addf %70, %71 : vector<16x32xf32>
    %cst_49 = arith.constant 0.000000e+00 : f32
    %73 = vector.broadcast %cst_49 : f32 to vector<16x32xf32>
    %74 = arith.maximumf %72, %73 : vector<16x32xf32>
    %75 = math.absf %72 : vector<16x32xf32>
    %cst_50 = arith.constant 0.000000e+00 : f32
    %76 = vector.broadcast %cst_50 : f32 to vector<16x32xf32>
    %77 = arith.subf %76, %75 : vector<16x32xf32>
    %78 = math.exp %77 : vector<16x32xf32>
    %cst_51 = arith.constant 1.000000e+00 : f32
    %79 = vector.broadcast %cst_51 : f32 to vector<16x32xf32>
    %80 = arith.addf %79, %78 : vector<16x32xf32>
    %81 = math.log %80 : vector<16x32xf32>
    %82 = arith.addf %74, %81 : vector<16x32xf32>
    %83 = math.tanh %82 : vector<16x32xf32>
    %84 = arith.mulf %72, %83 : vector<16x32xf32>
    %85 = arith.extf %1 : vector<16x1xbf16> to vector<16x1xf32>
    %86 = vector.broadcast %85 : vector<16x1xf32> to vector<16x32xf32>
    %87 = arith.mulf %84, %86 : vector<16x32xf32>
    %c0_52 = arith.constant 0 : index
    %c0_53 = arith.constant 0 : index
    %c0_54 = arith.constant 0 : index
    %88 = vector.load %arg10[%c0_52, %c0_53, %c0_54] : memref<1x1x32xbf16, #tpu.memory_space<vmem>>, vector<1x1x32xbf16>
    %89 = vector.shape_cast %88 : vector<1x1x32xbf16> to vector<1x32xbf16>
    %90 = arith.extf %89 : vector<1x32xbf16> to vector<1x32xf32>
    %91 = vector.broadcast %90 : vector<1x32xf32> to vector<16x32xf32>
    %92 = arith.addf %87, %91 : vector<16x32xf32>
    %93 = arith.truncf %92 : vector<16x32xf32> to vector<16x32xbf16>
    %c0_55 = arith.constant 0 : index
    %c0_56 = arith.constant 0 : index
    %c0_57 = arith.constant 0 : index
    %94 = vector.load %arg11[%c0_55, %c0_56, %c0_57] : memref<1x16x32xbf16, #tpu.memory_space<vmem>>, vector<1x16x32xbf16>
    %95 = vector.shape_cast %94 : vector<1x16x32xbf16> to vector<16x32xbf16>
    %96 = vector.shape_cast %93 : vector<16x32xbf16> to vector<1x16x32xbf16>
    tpu.vector_store %arg11[%c0_55, %c0_56, %c0_57], %96 {strides = array<i32>} : memref<1x16x32xbf16, #tpu.memory_space<vmem>>, vector<1x16x32xbf16>,
    return
  }
  func.func @transform_0(%arg0: i32) -> (i32, i32, i32) {
    %c0_i32 = arith.constant 0 : i32
    %c0_i32_0 = arith.constant 0 : i32
    %c0_i32_1 = arith.constant 0 : i32
    return %arg0, %c0_i32, %c0_i32_0 : i32, i32, i32
  }
  func.func @transform_1(%arg0: i32) -> (i32, i32, i32) {
    %c0_i32 = arith.constant 0 : i32
    %c0_i32_0 = arith.constant 0 : i32
    %c0_i32_1 = arith.constant 0 : i32
    return %arg0, %c0_i32, %c0_i32_0 : i32, i32, i32
  }
  func.func @transform_2(%arg0: i32) -> (i32, i32, i32) {
    %c0_i32 = arith.constant 0 : i32
    %c0_i32_0 = arith.constant 0 : i32
    %c0_i32_1 = arith.constant 0 : i32
    return %arg0, %c0_i32, %c0_i32_0 : i32, i32, i32
  }
  func.func @transform_3(%arg0: i32) -> (i32, i32, i32) {
    %c0_i32 = arith.constant 0 : i32
    %c0_i32_0 = arith.constant 0 : i32
    %c0_i32_1 = arith.constant 0 : i32
    %c0_i32_2 = arith.constant 0 : i32
    return %c0_i32, %c0_i32_0, %c0_i32_1 : i32, i32, i32
  }
  func.func @transform_4(%arg0: i32) -> (i32, i32) {
    %c0_i32 = arith.constant 0 : i32
    %c0_i32_0 = arith.constant 0 : i32
    %c0_i32_1 = arith.constant 0 : i32
    return %c0_i32, %c0_i32_0 : i32, i32
  }
  func.func @transform_5(%arg0: i32) -> (i32, i32) {
    %c0_i32 = arith.constant 0 : i32
    %c0_i32_0 = arith.constant 0 : i32
    %c0_i32_1 = arith.constant 0 : i32
    return %c0_i32, %c0_i32_0 : i32, i32
  }
  func.func @transform_6(%arg0: i32) -> (i32, i32) {
    %c0_i32 = arith.constant 0 : i32
    %c0_i32_0 = arith.constant 0 : i32
    %c0_i32_1 = arith.constant 0 : i32
    return %c0_i32, %c0_i32_0 : i32, i32
  }
  func.func @transform_7(%arg0: i32) -> (i32, i32) {
    %c0_i32 = arith.constant 0 : i32
    %c0_i32_0 = arith.constant 0 : i32
    %c0_i32_1 = arith.constant 0 : i32
    return %c0_i32, %c0_i32_0 : i32, i32
  }
  func.func @transform_8(%arg0: i32) -> (i32, i32) {
    %c0_i32 = arith.constant 0 : i32
    %c0_i32_0 = arith.constant 0 : i32
    %c0_i32_1 = arith.constant 0 : i32
    return %c0_i32, %c0_i32_0 : i32, i32
  }
  func.func @transform_9(%arg0: i32) -> (i32, i32, i32) {
    %c0_i32 = arith.constant 0 : i32
    %c0_i32_0 = arith.constant 0 : i32
    %c0_i32_1 = arith.constant 0 : i32
    return %arg0, %c0_i32, %c0_i32_0 : i32, i32, i32
  }
  func.func @transform_10(%arg0: i32) -> (i32, i32, i32) {
    %c0_i32 = arith.constant 0 : i32
    %c0_i32_0 = arith.constant 0 : i32
    %c0_i32_1 = arith.constant 0 : i32
    return %arg0, %c0_i32, %c0_i32_0 : i32, i32, i32
  }
  func.func @transform_11(%arg0: i32) -> (i32, i32, i32) {
    %c0_i32 = arith.constant 0 : i32
    %c0_i32_0 = arith.constant 0 : i32
    %c0_i32_1 = arith.constant 0 : i32
    return %arg0, %c0_i32, %c0_i32_0 : i32, i32, i32
  }
}

module attributes {stable_mosaic.version = 11 : i64} {
  func.func @_final_block_kernel(%arg0: i32, %arg1: memref<1x16x32xbf16, #tpu.memory_space<vmem>>, %arg2: memref<1x16x1xbf16, #tpu.memory_space<vmem>>, %arg3: memref<3x32x32xbf16, #tpu.memory_space<vmem>>, %arg4: memref<1x32xbf16, #tpu.memory_space<vmem>>, %arg5: memref<1x32xbf16, #tpu.memory_space<vmem>>, %arg6: memref<1x32xbf16, #tpu.memory_space<vmem>>, %arg7: memref<32x8xbf16, #tpu.memory_space<vmem>>, %arg8: memref<1x8xbf16, #tpu.memory_space<vmem>>, %arg9: memref<1x16x8xbf16, #tpu.memory_space<vmem>>, %arg10: memref<24x32xbf16, #tpu.memory_space<vmem>>) attributes {dimension_semantics = [#tpu.dimension_semantics<parallel>], iteration_bounds = array<i64: 2>, scalar_prefetch = 0 : i64, scratch_operands = 1 : i64, tpu.core_type = #tpu.core_type<tc>, window_params = [{transform_indices = @transform_0, window_bounds = array<i64: 1, 16, 32>}, {transform_indices = @transform_1, window_bounds = array<i64: 1, 16, 1>}, {pipeline_mode = #tpu.pipeline_mode<synchronous>, transform_indices = @transform_2, window_bounds = array<i64: 3, 32, 32>}, {pipeline_mode = #tpu.pipeline_mode<synchronous>, transform_indices = @transform_3, window_bounds = array<i64: 1, 32>}, {pipeline_mode = #tpu.pipeline_mode<synchronous>, transform_indices = @transform_4, window_bounds = array<i64: 1, 32>}, {pipeline_mode = #tpu.pipeline_mode<synchronous>, transform_indices = @transform_5, window_bounds = array<i64: 1, 32>}, {pipeline_mode = #tpu.pipeline_mode<synchronous>, transform_indices = @transform_6, window_bounds = array<i64: 32, 8>}, {pipeline_mode = #tpu.pipeline_mode<synchronous>, transform_indices = @transform_7, window_bounds = array<i64: 1, 8>}, {transform_indices = @transform_8, window_bounds = array<i64: 1, 16, 8>}]} {
    %c0 = arith.constant 0 : index
    %c0_0 = arith.constant 0 : index
    %c0_1 = arith.constant 0 : index
    %0 = vector.load %arg2[%c0, %c0_0, %c0_1] : memref<1x16x1xbf16, #tpu.memory_space<vmem>>, vector<1x16x1xbf16>
    %1 = vector.shape_cast %0 : vector<1x16x1xbf16> to vector<16x1xbf16>
    %2 = arith.extf %1 : vector<16x1xbf16> to vector<16x1xf32>
    %c0_2 = arith.constant 0 : index
    %c0_3 = arith.constant 0 : index
    %c0_4 = arith.constant 0 : index
    %3 = vector.load %arg1[%c0_2, %c0_3, %c0_4] : memref<1x16x32xbf16, #tpu.memory_space<vmem>>, vector<1x16x32xbf16>
    %4 = vector.shape_cast %3 : vector<1x16x32xbf16> to vector<16x32xbf16>
    %5 = vector.broadcast %1 : vector<16x1xbf16> to vector<16x32xbf16>
    %6 = arith.mulf %4, %5 : vector<16x32xbf16>
    %cst = arith.constant 0.000000e+00 : bf16
    %7 = vector.broadcast %cst : bf16 to vector<8x32xbf16>
    %c0_5 = arith.constant 0 : index
    %c0_6 = arith.constant 0 : index
    %8 = vector.load %arg10[%c0_5, %c0_6] : memref<24x32xbf16, #tpu.memory_space<vmem>>, vector<8x32xbf16>
    tpu.vector_store %arg10[%c0_5, %c0_6], %7 {strides = array<i32>} : memref<24x32xbf16, #tpu.memory_space<vmem>>, vector<8x32xbf16>,
    %c8 = arith.constant 8 : index
    %c0_7 = arith.constant 0 : index
    %9 = vector.load %arg10[%c8, %c0_7] : memref<24x32xbf16, #tpu.memory_space<vmem>>, vector<16x32xbf16>
    tpu.vector_store %arg10[%c8, %c0_7], %6 {strides = array<i32>} : memref<24x32xbf16, #tpu.memory_space<vmem>>, vector<16x32xbf16>,
    %cst_8 = arith.constant 0.000000e+00 : f32
    %10 = vector.broadcast %cst_8 : f32 to vector<16x32xf32>
    %c6 = arith.constant 6 : index
    %c0_9 = arith.constant 0 : index
    %11 = vector.load %arg10[%c6, %c0_9] : memref<24x32xbf16, #tpu.memory_space<vmem>>, vector<16x32xbf16>
    %c0_10 = arith.constant 0 : index
    %c0_11 = arith.constant 0 : index
    %c0_12 = arith.constant 0 : index
    %12 = vector.load %arg3[%c0_10, %c0_11, %c0_12] : memref<3x32x32xbf16, #tpu.memory_space<vmem>>, vector<1x32x32xbf16>
    %13 = vector.shape_cast %12 : vector<1x32x32xbf16> to vector<32x32xbf16>
    %cst_13 = arith.constant dense<0.000000e+00> : vector<16x32xf32>
    %14 = tpu.matmul %11, %13, %cst_13 {dimension_numbers = #tpu.dot_dimension_numbers<[1], [0], [0], [1], [0, 0, 1, 1], [], []>} : vector<16x32xbf16>, vector<32x32xbf16>, vector<16x32xf32> -> vector<16x32xf32>
    %15 = arith.addf %10, %14 : vector<16x32xf32>
    %c7 = arith.constant 7 : index
    %c0_14 = arith.constant 0 : index
    %16 = vector.load %arg10[%c7, %c0_14] : memref<24x32xbf16, #tpu.memory_space<vmem>>, vector<16x32xbf16>
    %c1 = arith.constant 1 : index
    %c0_15 = arith.constant 0 : index
    %c0_16 = arith.constant 0 : index
    %17 = vector.load %arg3[%c1, %c0_15, %c0_16] : memref<3x32x32xbf16, #tpu.memory_space<vmem>>, vector<1x32x32xbf16>
    %18 = vector.shape_cast %17 : vector<1x32x32xbf16> to vector<32x32xbf16>
    %cst_17 = arith.constant dense<0.000000e+00> : vector<16x32xf32>
    %19 = tpu.matmul %16, %18, %cst_17 {dimension_numbers = #tpu.dot_dimension_numbers<[1], [0], [0], [1], [0, 0, 1, 1], [], []>} : vector<16x32xbf16>, vector<32x32xbf16>, vector<16x32xf32> -> vector<16x32xf32>
    %20 = arith.addf %15, %19 : vector<16x32xf32>
    %c8_18 = arith.constant 8 : index
    %c0_19 = arith.constant 0 : index
    %21 = vector.load %arg10[%c8_18, %c0_19] : memref<24x32xbf16, #tpu.memory_space<vmem>>, vector<16x32xbf16>
    %c2 = arith.constant 2 : index
    %c0_20 = arith.constant 0 : index
    %c0_21 = arith.constant 0 : index
    %22 = vector.load %arg3[%c2, %c0_20, %c0_21] : memref<3x32x32xbf16, #tpu.memory_space<vmem>>, vector<1x32x32xbf16>
    %23 = vector.shape_cast %22 : vector<1x32x32xbf16> to vector<32x32xbf16>
    %cst_22 = arith.constant dense<0.000000e+00> : vector<16x32xf32>
    %24 = tpu.matmul %21, %23, %cst_22 {dimension_numbers = #tpu.dot_dimension_numbers<[1], [0], [0], [1], [0, 0, 1, 1], [], []>} : vector<16x32xbf16>, vector<32x32xbf16>, vector<16x32xf32> -> vector<16x32xf32>
    %25 = arith.addf %20, %24 : vector<16x32xf32>
    %c0_23 = arith.constant 0 : index
    %c0_24 = arith.constant 0 : index
    %26 = vector.load %arg4[%c0_23, %c0_24] : memref<1x32xbf16, #tpu.memory_space<vmem>>, vector<1x32xbf16>
    %27 = arith.extf %26 : vector<1x32xbf16> to vector<1x32xf32>
    %28 = vector.broadcast %27 : vector<1x32xf32> to vector<16x32xf32>
    %29 = arith.addf %25, %28 : vector<16x32xf32>
    %c0_25 = arith.constant 0 : index
    %c0_26 = arith.constant 0 : index
    %30 = vector.load %arg5[%c0_25, %c0_26] : memref<1x32xbf16, #tpu.memory_space<vmem>>, vector<1x32xbf16>
    %31 = arith.extf %30 : vector<1x32xbf16> to vector<1x32xf32>
    %c0_27 = arith.constant 0 : index
    %c0_28 = arith.constant 0 : index
    %32 = vector.load %arg6[%c0_27, %c0_28] : memref<1x32xbf16, #tpu.memory_space<vmem>>, vector<1x32xbf16>
    %33 = arith.extf %32 : vector<1x32xbf16> to vector<1x32xf32>
    %cst_29 = arith.constant dense<0.000000e+00> : vector<16xf32>
    %34 = vector.multi_reduction <add>, %29, %cst_29 [1] : vector<16x32xf32> to vector<16xf32>
    %35 = vector.shape_cast %34 : vector<16xf32> to vector<16x1xf32>
    %cst_30 = arith.constant 3.200000e+01 : f32
    %36 = vector.broadcast %cst_30 : f32 to vector<16x1xf32>
    %37 = arith.divf %35, %36 : vector<16x1xf32>
    %38 = vector.broadcast %37 : vector<16x1xf32> to vector<16x32xf32>
    %39 = arith.subf %29, %38 : vector<16x32xf32>
    %40 = arith.mulf %39, %39 : vector<16x32xf32>
    %cst_31 = arith.constant dense<0.000000e+00> : vector<16xf32>
    %41 = vector.multi_reduction <add>, %40, %cst_31 [1] : vector<16x32xf32> to vector<16xf32>
    %42 = vector.shape_cast %41 : vector<16xf32> to vector<16x1xf32>
    %cst_32 = arith.constant 3.200000e+01 : f32
    %43 = vector.broadcast %cst_32 : f32 to vector<16x1xf32>
    %44 = arith.divf %42, %43 : vector<16x1xf32>
    %45 = vector.broadcast %37 : vector<16x1xf32> to vector<16x32xf32>
    %46 = arith.subf %29, %45 : vector<16x32xf32>
    %cst_33 = arith.constant 9.99999974E-6 : f32
    %47 = vector.broadcast %cst_33 : f32 to vector<16x1xf32>
    %48 = arith.addf %44, %47 : vector<16x1xf32>
    %49 = math.rsqrt %48 : vector<16x1xf32>
    %50 = vector.broadcast %49 : vector<16x1xf32> to vector<16x32xf32>
    %51 = arith.mulf %46, %50 : vector<16x32xf32>
    %52 = vector.broadcast %31 : vector<1x32xf32> to vector<16x32xf32>
    %53 = arith.mulf %51, %52 : vector<16x32xf32>
    %54 = vector.broadcast %33 : vector<1x32xf32> to vector<16x32xf32>
    %55 = arith.addf %53, %54 : vector<16x32xf32>
    %cst_34 = arith.constant 0.000000e+00 : f32
    %56 = vector.broadcast %cst_34 : f32 to vector<16x32xf32>
    %57 = arith.maximumf %55, %56 : vector<16x32xf32>
    %58 = math.absf %55 : vector<16x32xf32>
    %cst_35 = arith.constant 0.000000e+00 : f32
    %59 = vector.broadcast %cst_35 : f32 to vector<16x32xf32>
    %60 = arith.subf %59, %58 : vector<16x32xf32>
    %61 = math.exp %60 : vector<16x32xf32>
    %cst_36 = arith.constant 1.000000e+00 : f32
    %62 = vector.broadcast %cst_36 : f32 to vector<16x32xf32>
    %63 = arith.addf %62, %61 : vector<16x32xf32>
    %64 = math.log %63 : vector<16x32xf32>
    %65 = arith.addf %57, %64 : vector<16x32xf32>
    %66 = math.tanh %65 : vector<16x32xf32>
    %67 = arith.mulf %55, %66 : vector<16x32xf32>
    %68 = vector.broadcast %2 : vector<16x1xf32> to vector<16x32xf32>
    %69 = arith.mulf %67, %68 : vector<16x32xf32>
    %70 = arith.truncf %69 : vector<16x32xf32> to vector<16x32xbf16>
    %c0_37 = arith.constant 0 : index
    %c0_38 = arith.constant 0 : index
    %71 = vector.load %arg7[%c0_37, %c0_38] : memref<32x8xbf16, #tpu.memory_space<vmem>>, vector<32x8xbf16>
    %cst_39 = arith.constant dense<0.000000e+00> : vector<16x8xf32>
    %72 = tpu.matmul %70, %71, %cst_39 {dimension_numbers = #tpu.dot_dimension_numbers<[1], [0], [0], [1], [0, 0, 1, 1], [], []>} : vector<16x32xbf16>, vector<32x8xbf16>, vector<16x8xf32> -> vector<16x8xf32>
    %c0_40 = arith.constant 0 : index
    %c0_41 = arith.constant 0 : index
    %73 = vector.load %arg8[%c0_40, %c0_41] : memref<1x8xbf16, #tpu.memory_space<vmem>>, vector<1x8xbf16>
    %74 = arith.extf %73 : vector<1x8xbf16> to vector<1x8xf32>
    %75 = vector.broadcast %74 : vector<1x8xf32> to vector<16x8xf32>
    %76 = arith.addf %72, %75 : vector<16x8xf32>
    %77 = vector.broadcast %2 : vector<16x1xf32> to vector<16x8xf32>
    %78 = arith.mulf %76, %77 : vector<16x8xf32>
    %79 = arith.truncf %78 : vector<16x8xf32> to vector<16x8xbf16>
    %c0_42 = arith.constant 0 : index
    %c0_43 = arith.constant 0 : index
    %c0_44 = arith.constant 0 : index
    %80 = vector.load %arg9[%c0_42, %c0_43, %c0_44] : memref<1x16x8xbf16, #tpu.memory_space<vmem>>, vector<1x16x8xbf16>
    %81 = vector.shape_cast %80 : vector<1x16x8xbf16> to vector<16x8xbf16>
    %82 = vector.shape_cast %79 : vector<16x8xbf16> to vector<1x16x8xbf16>
    tpu.vector_store %arg9[%c0_42, %c0_43, %c0_44], %82 {strides = array<i32>} : memref<1x16x8xbf16, #tpu.memory_space<vmem>>, vector<1x16x8xbf16>,
    return
  }
  func.func @transform_0(%arg0: i32) -> (i32, i32, i32) {
    %c0_i32 = arith.constant 0 : i32
    %c0_i32_0 = arith.constant 0 : i32
    %c0_i32_1 = arith.constant 0 : i32
    return %arg0, %c0_i32, %c0_i32_0 : i32, i32, i32
  }
  func.func @transform_1(%arg0: i32) -> (i32, i32, i32) {
    %c0_i32 = arith.constant 0 : i32
    %c0_i32_0 = arith.constant 0 : i32
    %c0_i32_1 = arith.constant 0 : i32
    return %arg0, %c0_i32, %c0_i32_0 : i32, i32, i32
  }
  func.func @transform_2(%arg0: i32) -> (i32, i32, i32) {
    %c0_i32 = arith.constant 0 : i32
    %c0_i32_0 = arith.constant 0 : i32
    %c0_i32_1 = arith.constant 0 : i32
    %c0_i32_2 = arith.constant 0 : i32
    return %c0_i32, %c0_i32_0, %c0_i32_1 : i32, i32, i32
  }
  func.func @transform_3(%arg0: i32) -> (i32, i32) {
    %c0_i32 = arith.constant 0 : i32
    %c0_i32_0 = arith.constant 0 : i32
    %c0_i32_1 = arith.constant 0 : i32
    return %c0_i32, %c0_i32_0 : i32, i32
  }
  func.func @transform_4(%arg0: i32) -> (i32, i32) {
    %c0_i32 = arith.constant 0 : i32
    %c0_i32_0 = arith.constant 0 : i32
    %c0_i32_1 = arith.constant 0 : i32
    return %c0_i32, %c0_i32_0 : i32, i32
  }
  func.func @transform_5(%arg0: i32) -> (i32, i32) {
    %c0_i32 = arith.constant 0 : i32
    %c0_i32_0 = arith.constant 0 : i32
    %c0_i32_1 = arith.constant 0 : i32
    return %c0_i32, %c0_i32_0 : i32, i32
  }
  func.func @transform_6(%arg0: i32) -> (i32, i32) {
    %c0_i32 = arith.constant 0 : i32
    %c0_i32_0 = arith.constant 0 : i32
    %c0_i32_1 = arith.constant 0 : i32
    return %c0_i32, %c0_i32_0 : i32, i32
  }
  func.func @transform_7(%arg0: i32) -> (i32, i32) {
    %c0_i32 = arith.constant 0 : i32
    %c0_i32_0 = arith.constant 0 : i32
    %c0_i32_1 = arith.constant 0 : i32
    return %c0_i32, %c0_i32_0 : i32, i32
  }
  func.func @transform_8(%arg0: i32) -> (i32, i32, i32) {
    %c0_i32 = arith.constant 0 : i32
    %c0_i32_0 = arith.constant 0 : i32
    %c0_i32_1 = arith.constant 0 : i32
    return %arg0, %c0_i32, %c0_i32_0 : i32, i32, i32
  }
}

</mosaic_0001>

<bundles_post_ra>
// kernel: conditional_decoder_forward.37
= control target key start
LH: loop header
LB: loop body
LE: loop exit
PB: predicated region body
PF: predicated region fallthrough
CT: control target
= control target key end

     0   :  { %v117_v0 = vmov 0.0   ;;  %vm118_vm0 = vmmov 0   ;;  %vm38_vm1 = vcmask 261120   ;;  %v22_v4 = vlaneseq  ;;  %s154_s1 = inlined_call_operand.vmem [shape: bf16[32,128], index: 1, kind: input, shape index: {}]   ;;  %s155_s0 = inlined_call_operand.vmem [shape: bf16[2,32], index: 0, kind: input, shape index: {}]   ;;  %s156_s2 = inlined_call_operand.vmem [shape: bf16[1,128], index: 2, kind: input, shape index: {}]   ;;  %s157_s3 = inlined_call_operand.vmem [shape: bf16[2,128], index: 3, kind: output, shape index: {}]  }
   0x1   :  { %101 = vmatprep.subr.bf16.mxu0 %v117_v0  ;;  %v111_v1 = vld [vmem:[%s154_s1] sm:$0xff]   ;;  %105 = vmatprep.mubr.msk.bf16.mxu0 %vm118_vm0, %v117_v0  ;;  %v112_v2 = vld [vmem:[%s154_s1 + $0x8] sm:$0xff]  }
   0x2   :  { %102 = vmatpush3.bf16.msra.mxu0 %v111_v1  ;;  %v15_v3 = vld [vmem:[%s155_s0] sm:$0x1]  ;;  %v23_v5 = vshrl.u32 %v22_v4, 7 }
   0x3   :  { %103 = vmatprep.subr.bf16.mxu0 %v117_v0  ;;  %v20_v6 = vld [vmem:[%s156_s2] sm:$0x1] }
   0x4   :  { %v21_v7 = vunpack.c.l.bf16 %v20_v6  ;;  %v24_v8 = vsub.s32 0, %v23_v5 }
   0x6   :  { %104 = vmatpush3.bf16.msra.mxu0 %v112_v2  ;;  %v25_v9 = vrot.slane %v21_v7, %v24_v8 }
   0x9   :  { %106 = vmatmul.mubr.msk.bf16.vlgmr.msra.gmra.mrb[0].mxu0 %vm38_vm1, %v15_v3 }
  0xdc   :  { %v76_v10 = vpop.f32.mrb[0].mxu0 }
  0xdd   :  { %v77_v11 = vadd.f32 %v76_v10, %v25_v9  ;;  %v107_v12 = vpop.f32.mrb[1].mxu0 }
  0xde   :  { %v79_v13 = vpop.f32.mrb[2].mxu0 }
  0xdf   :  { %v82_v14 = vsub.f32 0.0, %v77_v11  ;;  %v108_v15 = vpop.f32.mrb[3].mxu0 }
  0xe1   :  { %v83_v16 = vmul.f32 1.442695, %v82_v14 }
  0xe3   :  { %113 = vpow2.f32 %v83_v16 }
  0xed   :  { %v114_v17 = vpop.eup %113 }
  0xee   :  { %v85_v18 = vadd.f32 1.0, %v114_v17 }
  0xf0   :  { %115 = vrcp.f32 %v85_v18 }
  0xfa   :  { %v116_v19 = vpop.eup %115 }
  0xfb   :  { %v88_v20 = vmul.f32 %v116_v19, %v77_v11 }
  0xfd   :  { %v89_v21 = vpack.c.bf16 %v88_v20, %v88_v20 }
  0xff   :  { %90 = vst [vmem:[%s157_s3] sm:$0x1] %v89_v21 }

// kernel: conditional_decoder_forward.38
= control target key start
LH: loop header
LB: loop body
LE: loop exit
PB: predicated region body
PF: predicated region fallthrough
CT: control target
= control target key end

     0   :  { %v196_v0 = vmov 0.0   ;;  %vm197_vm0 = vmmov 0   ;;  %v34_v10 = vlaneseq  ;;  %s251_s1 = inlined_call_operand.vmem [shape: bf16[128,128], index: 1, kind: input, shape index: {}]   ;;  %s252_s0 = inlined_call_operand.vmem [shape: bf16[2,128], index: 0, kind: input, shape index: {}]   ;;  %s253_s2 = inlined_call_operand.vmem [shape: bf16[1,128], index: 2, kind: input, shape index: {}]   ;;  %s254_s3 = inlined_call_operand.vmem [shape: bf16[2,128], index: 3, kind: output, shape index: {}]  }
   0x1   :  { %160 = vmatprep.subr.bf16.mxu0 %v196_v0  ;;  %v182_v1 = vld [vmem:[%s251_s1] sm:$0xff]   ;;  %176 = vmatprep.mubr.msk.bf16.mxu0 %vm197_vm0, %v196_v0  ;;  %v183_v2 = vld [vmem:[%s251_s1 + $0x8] sm:$0xff]   ;;  %v184_v3 = vld [vmem:[%s251_s1 + $0x10] sm:$0xff]  }
   0x2   :  { %161 = vmatpush3.bf16.msra.mxu0 %v182_v1  ;;  %v185_v4 = vld [vmem:[%s251_s1 + $0x18] sm:$0xff]   ;;  %v186_v5 = vld [vmem:[%s251_s1 + $0x20] sm:$0xff]   ;;  %v187_v6 = vld [vmem:[%s251_s1 + $0x28] sm:$0xff]   ;;  %v35_v11 = vshrl.u32 %v34_v10, 7 }
   0x3   :  { %162 = vmatprep.subr.bf16.mxu0 %v196_v0  ;;  %v188_v7 = vld [vmem:[%s251_s1 + $0x30] sm:$0xff]   ;;  %v189_v8 = vld [vmem:[%s251_s1 + $0x38] sm:$0xff]   ;;  %v15_v9 = vld [vmem:[%s252_s0] sm:$0x1] }
   0x4   :  { %v32_v12 = vld [vmem:[%s253_s2] sm:$0x1]  ;;  %v36_v14 = vsub.s32 0, %v35_v11 }
   0x5   :  { %v33_v13 = vunpack.c.l.bf16 %v32_v12 }
   0x6   :  { %163 = vmatpush3.bf16.msra.mxu0 %v183_v2 }
   0x7   :  { %164 = vmatprep.subr.bf16.mxu0 %v196_v0  ;;  %v37_v15 = vrot.slane %v33_v13, %v36_v14 }
   0xa   :  { %165 = vmatpush3.bf16.msra.mxu0 %v184_v3 }
   0xb   :  { %166 = vmatprep.subr.bf16.mxu0 %v196_v0 }
   0xe   :  { %167 = vmatpush3.bf16.msra.mxu0 %v185_v4 }
   0xf   :  { %168 = vmatprep.subr.bf16.mxu0 %v196_v0 }
  0x12   :  { %169 = vmatpush3.bf16.msra.mxu0 %v186_v5 }
  0x13   :  { %170 = vmatprep.subr.bf16.mxu0 %v196_v0 }
  0x16   :  { %171 = vmatpush3.bf16.msra.mxu0 %v187_v6 }
  0x17   :  { %172 = vmatprep.subr.bf16.mxu0 %v196_v0 }
  0x1a   :  { %173 = vmatpush3.bf16.msra.mxu0 %v188_v7 }
  0x1b   :  { %174 = vmatprep.subr.bf16.mxu0 %v196_v0 }
  0x1e   :  { %175 = vmatpush3.bf16.msra.mxu0 %v189_v8 }
  0x21   :  { %177 = vmatmul.mubr.bf16.vlgmr.msra.gmra.mrb[0].mxu0 %v15_v9 }
  0xf4   :  { %v120_v16 = vpop.f32.mrb[0].mxu0 }
  0xf5   :  { %v121_v17 = vadd.f32 %v120_v16, %v37_v15  ;;  %v178_v18 = vpop.f32.mrb[1].mxu0 }
  0xf6   :  { %v123_v19 = vpop.f32.mrb[2].mxu0 }
  0xf7   :  { %v127_v20 = vand.u32 2147483647, %v121_v17  ;;  %v179_v21 = vpop.f32.mrb[3].mxu0  ;;  %v126_v27 = vmax.f32 %v121_v17, 0.0 }
  0xf9   :  { %v128_v22 = vsub.f32 0.0, %v127_v20 }
  0xfb   :  { %v129_v23 = vmul.f32 1.442695, %v128_v22 }
  0xfd   :  { %190 = vpow2.f32 %v129_v23 }
 0x107   :  { %v191_v24 = vpop.eup %190 }
 0x108   :  { %v131_v25 = vadd.f32 1.0, %v191_v24 }
 0x10a   :  { %192 = vlog2.f32 %v131_v25 }
 0x114   :  { %v193_v26 = vpop.eup %192 }
 0x115   :  { %v133_v28 = vmul.f32 0.6931472, %v193_v26 }
 0x117   :  { %v134_v29 = vadd.f32 %v133_v28, %v126_v27 }
 0x119   :  { %194 = vtanh.f32 %v134_v29 }
 0x123   :  { %v195_v30 = vpop.eup %194 }
 0x124   :  { %v136_v31 = vmul.f32 %v195_v30, %v121_v17 }
 0x126   :  { %v137_v32 = vpack.c.bf16 %v136_v31, %v136_v31 }
 0x128   :  { %138 = vst [vmem:[%s254_s3] sm:$0x1] %v137_v32 }

// kernel: conditional_decoder_forward.39
= control target key start
LH: loop header
LB: loop body
LE: loop exit
PB: predicated region body
PF: predicated region fallthrough
CT: control target
= control target key end

     0   :  { %v180_v0 = vmov 0.0   ;;  %vm181_vm0 = vmmov 0   ;;  %v34_v10 = vlaneseq  ;;  %vm127_vm1 = vcmask 253952   ;;  %s235_s1 = inlined_call_operand.vmem [shape: bf16[128,32], index: 1, kind: input, shape index: {}]   ;;  %s236_s0 = inlined_call_operand.vmem [shape: bf16[2,128], index: 0, kind: input, shape index: {}]   ;;  %s237_s2 = inlined_call_operand.vmem [shape: bf16[1,32], index: 2, kind: input, shape index: {}]   ;;  %s238_s3 = inlined_call_operand.vmem [shape: bf16[2,32], index: 3, kind: output, shape index: {}]  }
   0x1   :  { %150 = vmatprep.subr.bf16.mxu0 %v180_v0  ;;  %v172_v1 = vld [vmem:[%s235_s1] sm:$0xff]   ;;  %166 = vmatprep.mubr.msk.bf16.mxu0 %vm181_vm0, %v180_v0  ;;  %v173_v2 = vld [vmem:[%s235_s1 + $0x8] sm:$0xff]   ;;  %v174_v3 = vld [vmem:[%s235_s1 + $0x10] sm:$0xff]  }
   0x2   :  { %151 = vmatpush3.bf16.msra.mxu0 %v172_v1  ;;  %v175_v4 = vld [vmem:[%s235_s1 + $0x18] sm:$0xff]   ;;  %v176_v5 = vld [vmem:[%s235_s1 + $0x20] sm:$0xff]   ;;  %v177_v6 = vld [vmem:[%s235_s1 + $0x28] sm:$0xff]   ;;  %v35_v11 = vshrl.u32 %v34_v10, 7 }
   0x3   :  { %152 = vmatprep.subr.bf16.mxu0 %v180_v0  ;;  %v178_v7 = vld [vmem:[%s235_s1 + $0x30] sm:$0xff]   ;;  %v179_v8 = vld [vmem:[%s235_s1 + $0x38] sm:$0xff]   ;;  %v15_v9 = vld [vmem:[%s236_s0] sm:$0x1] }
   0x4   :  { %v32_v12 = vld [vmem:[%s237_s2] sm:$0x1]  ;;  %v36_v14 = vsub.s32 0, %v35_v11 }
   0x5   :  { %v33_v13 = vunpack.c.l.bf16 %v32_v12 }
   0x6   :  { %153 = vmatpush3.bf16.msra.mxu0 %v173_v2 }
   0x7   :  { %154 = vmatprep.subr.bf16.mxu0 %v180_v0  ;;  %v37_v15 = vrot.slane %v33_v13, %v36_v14 }
   0xa   :  { %155 = vmatpush3.bf16.msra.mxu0 %v174_v3 }
   0xb   :  { %156 = vmatprep.subr.bf16.mxu0 %v180_v0 }
   0xe   :  { %157 = vmatpush3.bf16.msra.mxu0 %v175_v4 }
   0xf   :  { %158 = vmatprep.subr.bf16.mxu0 %v180_v0 }
  0x12   :  { %159 = vmatpush3.bf16.msra.mxu0 %v176_v5 }
  0x13   :  { %160 = vmatprep.subr.bf16.mxu0 %v180_v0 }
  0x16   :  { %161 = vmatpush3.bf16.msra.mxu0 %v177_v6 }
  0x17   :  { %162 = vmatprep.subr.bf16.mxu0 %v180_v0 }
  0x1a   :  { %163 = vmatpush3.bf16.msra.mxu0 %v178_v7 }
  0x1b   :  { %164 = vmatprep.subr.bf16.mxu0 %v180_v0 }
  0x1e   :  { %165 = vmatpush3.bf16.msra.mxu0 %v179_v8 }
  0x21   :  { %167 = vmatmul.mubr.bf16.vlgmr.msra.gmra.mrb[0].mxu0 %v15_v9 }
  0xf4   :  { %v120_v16 = vpop.f32.mrb[0].mxu0 }
  0xf5   :  { %v121_v17 = vadd.f32 %v120_v16, %v37_v15  ;;  %v168_v18 = vpop.f32.mrb[1].mxu0 }
  0xf6   :  { %v123_v19 = vpop.f32.mrb[2].mxu0 }
  0xf7   :  { %v126_v20 = vpack.c.bf16 %v121_v17, %v121_v17  ;;  %v169_v21 = vpop.f32.mrb[3].mxu0 }
  0xf9   :  { %128 = vst.msk [vmem:[%s238_s3] sm:$0x1] %vm127_vm1, %v126_v20 }

// kernel: conditional_decoder_forward.40
= control target key start
LH: loop header
LB: loop body
LE: loop exit
PB: predicated region body
PF: predicated region fallthrough
CT: control target
= control target key end

     0   :  { %s1170_s13 = smov 0   ;;  %s1288_s0 = inlined_call_operand.vmem [shape: bf16[2,16,32], index: 0, kind: input, shape index: {}]   ;;  %s1289_s1 = inlined_call_operand.vmem [shape: bf16[2,16,1], index: 1, kind: input, shape index: {}]   ;;  %s1290_s2 = inlined_call_operand.vmem [shape: bf16[3,32,32], index: 2, kind: input, shape index: {}]   ;;  %s1291_s3 = inlined_call_operand.vmem [shape: bf16[1,32], index: 3, kind: input, shape index: {}]   ;;  %s1292_s4 = inlined_call_operand.vmem [shape: bf16[1,32], index: 4, kind: input, shape index: {}]   ;;  %s1293_s5 = inlined_call_operand.vmem [shape: bf16[1,32], index: 5, kind: input, shape index: {}]   ;;  %s1294_s6 = inlined_call_operand.vmem [shape: bf16[32,32], index: 6, kind: input, shape index: {}]   ;;  %s1295_s7 = inlined_call_operand.vmem [shape: bf16[1,32], index: 7, kind: input, shape index: {}]   ;;  %s1296_s8 = inlined_call_operand.vmem [shape: bf16[2,1,32], index: 8, kind: input, shape index: {}]   ;;  %s1297_s9 = inlined_call_operand.vmem [shape: bf16[2,16,32], index: 9, kind: output, shape index: {0}]   ;;  %s1298_s10 = inlined_call_operand.vmem [shape: bf16[2,16,32], index: 10, kind: output, shape index: {1}]  }
   0x1 LB: > { %s960_s14 = sadd.s32 4294967295, %s1109_s13   ;;  %p964_p0 = scmp.ge.s32.totalorder %s1109_s13, 1  ;;  %s1109_s13 = sphi %s1170_s13, %s21_s13  }
   0x2   : > { %p333_p1 = scmp.lt.s32.totalorder %s1109_s13, 3 }
   0x4   : > { %p334_p2 = pnand %p964_p0, %p333_p1 }
   0x5   : > { %vm438_vm0 = vcmask (!%p334_p2), 257024   ;;  %p384_p3 = scmp.lt.s32.totalorder (!%p334_p2), %s960_s14, 1  ;;  %v1111_v0 = vmov (!%p334_p2), 0   ;;  %v1075_v3 = vld [vmem:[%s1294_s6] sm:$0xff] (!%p334_p2)   ;;  %v1112_v4 = vmov (!%p334_p2), 0.0   ;;  %v1076_v5 = vld [vmem:[%s1294_s6 + $0x8] sm:$0xff] (!%p334_p2)   ;;  %v420_v10 = vlaneseq (!%p334_p2) }
   0x6   : > { %337 = sbr.rel (%p334_p2) target bundleno = 766 (0x2fe), region = 56  ;;  %1068 = vset.pattern.permute.xlu0 (!%p334_p2), %v1111_v0  ;;  %439 = vst.msk [vmem:[#allocation2] sm:$0xf] (!%p334_p2), %vm438_vm0, %v1111_v0  ;;  %1069 = vset.pattern.permute.xlu1 (!%p334_p2), %v1111_v0  ;;  %vm1113_vm1 = vmmov (!%p334_p2), 0   ;;  %v1078_v6 = vld [vmem:[%s1290_s2 + $0x10] sm:$0xff] (!%p334_p2)   ;;  %v1080_v7 = vld [vmem:[%s1290_s2 + $0x18] sm:$0xff] (!%p334_p2)  }
   0x7   : > { %1024 = vmatprep.subr.bf16.mxu0 (!%p334_p2), %v1112_v4  ;;  %1032 = vmatprep.subr.bf16.mxu1 (!%p334_p2), %v1112_v4  ;;  %v1114_v8 = vmov (!%p334_p2), 839922192   ;;  %v421_v12 = vshrl.u32 (!%p334_p2), %v420_v10, 7  ;;  %vm469_vm2 = vcmask (!%p334_p2), 261120   ;;  %v1077_v22 = vld [vmem:[%s1290_s2] sm:$0xff] (!%p334_p2)   ;;  %v1079_v25 = vld [vmem:[%s1290_s2 + $0x8] sm:$0xff] (!%p334_p2)  }
   0x8   : > { %1025 = vmatpush3.bf16.msra.mxu0 (!%p334_p2), %v1075_v3  ;;  %1028 = vmatprep.mubr.msk.bf16.mxu0 (!%p334_p2), %vm1113_vm1, %v1112_v4  ;;  %v418_v9 = vunpack.c.l.s4 (!%p334_p2), %v1114_v8  ;;  %vm622_vm3 = vcmask (!%p334_p2), 1044480   ;;  %vm545_vm4 = vsmask.f32 (!%p334_p2), 4352  ;;  %v1084_v44 = vld [vmem:[%s1290_s2 + $0x20] sm:$0xff] (!%p334_p2)   ;;  %v1085_v46 = vld [vmem:[%s1290_s2 + $0x28] sm:$0xff] (!%p334_p2)  }
   0x9   : > { %1026 = vmatprep.subr.bf16.mxu0 (!%p334_p2), %v1112_v4  ;;  %1036 = vmatprep.mubr.msk.bf16.mxu1 (!%p334_p2), %vm1113_vm1, %v1112_v4  ;;  %v446_v48 = vld [vmem:[%s1295_s7] sm:$0x1] (!%p334_p2)  ;;  %v1247_v49 = vsub.s32 (!%p334_p2), 0, %v421_v12 }
   0xa   : > { %1033 = vmatpush3.bf16.msra.mxu1 (!%p334_p2), %v1078_v6  ;;  %v419_v11 = vunpack.c.0.s8 (!%p334_p2), %v418_v9  ;;  %v447_v50 = vunpack.c.l.bf16 (!%p334_p2), %v446_v48  ;;  %v746_v3 = vld [vmem:[%s1291_s3] sm:$0x1] (!%p334_p2) }
   0xb   : > { %1034 = vmatprep.subr.bf16.mxu1 (!%p334_p2), %v1112_v4  ;;  %v747_v9 = vunpack.c.l.bf16 (!%p334_p2), %v746_v3 }
   0xc   : > { %1027 = vmatpush3.bf16.msra.mxu0 (!%p334_p2), %v1076_v5  ;;  %v422_v13 = vsub.s32 (!%p334_p2), %v419_v11, %v421_v12  ;;  %v451_v51 = vrot.slane (!%p334_p2), %v447_v50, %v1247_v49 }
   0xd   : > { %s1300_s14 = smov (!%p384_p3, %s960_s14), 1  ;;  %1040 = vmatprep.subr.bf16.mxu0 %v1112_v4  ;;  %v524_v24 = vld [vmem:[#allocation2] sm:$0x8]  ;;  %v751_v10 = vrot.slane %v747_v9, %v1247_v49 }
   0xe   : > { %s1182_s15 = sshll.u32 %s1300_s14, 3  ;;  %1035 = vmatpush3.bf16.msra.mxu1 %v1080_v7  ;;  %s396_s17 = scalar_lea.vmem %s1296_s8, %s1300_s14 }
   0xf   : > { %s393_s18 = scalar_lea.vmem %s1289_s1, %s1182_s15  ;;  %1048 = vmatprep.subr.bf16.mxu1 %v1112_v4  ;;  %s388_s29 = scalar_lea.vmem %s1288_s0, %s1182_s15  ;;  %v833_v9 = vld [vmem:[%s396_s17] sm:$0x1] }
  0x10   : > { %v1188_v1 = vld [vmem:[%s393_s18] sm:$0xf]  ;;  %v1191_v2 = vld [vmem:[%s393_s18 + $0x4] sm:$0xf]  ;;  %s406_s25 = scalar_lea.vmem %s1298_s10, %s1182_s15  ;;  %s401_s20 = scalar_lea.vmem %s1297_s9, %s1182_s15 }
  0x11   : > { %414 = vperm.xlu0 %1068, %v1188_v1   ;;  %v410_v15 = vld [vmem:[%s388_s29] sm:$0xf]  ;;  %v411_v19 = vld [vmem:[%s388_s29 + $0x4] sm:$0xf] }
  0x15   : > { %426 = vperm.xlu0 %1068, %v1191_v2  }
  0x90   : > { %v415_v14 = vpop.permute.xlu0 %414 }
  0x91   : > { %v423_v16 = vrot.slane %v415_v14, %v422_v13 }
  0x93   : > { %v436_v17 = vmul.bf16 %v423_v16, %v410_v15 }
  0x94   : > { %v427_v18 = vpop.permute.xlu0 %426 }
  0x95   : > { %440 = vst.msk [vmem:[#allocation2 + $0x4] sm:$0xf] %vm438_vm0, %v436_v17  ;;  %v435_v20 = vrot.slane %v427_v18, %v422_v13 }
  0x97   : > { %v437_v21 = vmul.bf16 %v435_v20, %v411_v19 }
  0x99   : > { %441 = vst.msk [vmem:[#allocation2 + $0x8] sm:$0xf] %vm438_vm0, %v437_v21  ;;  %v973_v23 = vcombine.low %v436_v17, %v437_v21  ;;  %v819_v21 = vunpack.c.l.bf16 %v1188_v1 }
  0x9b   : > { %1029 = vmatmul.mubr.msk.bf16.vlgmr.msra.gmra.mrb[0].mxu0 %vm469_vm2, %v973_v23 }
  0x9c   : > { %1041 = vmatpush3.bf16.msra.mxu0 %v1077_v22  ;;  %1044 = vmatprep.mubr.msk.bf16.mxu0 %vm1113_vm1, %v1112_v4  ;;  %v525_v26 = vld [vmem:[#allocation2 + $0x4] sm:$0xf]  ;;  %v820_v22 = vunpack.c.l.bf16 %v1191_v2 }
  0x9d   : > { %1042 = vmatprep.subr.bf16.mxu0 %v1112_v4  ;;  %v983_v27 = vcombine.low %v524_v24, %v525_v26 }
  0x9e   : > { %v1070_v23 = vpack.i.bf16 %v820_v22, %v819_v21 }
  0x9f   : > { %v547_v28 = vshrl.u32 %v983_v27, 16  ;;  %v550_v30 = vshll.u32 %v983_v27, 16  ;;  %v623_v32 = vrot.slane %v983_v27, 3 }
  0xa0   : > { %1043 = vmatpush3.bf16.msra.mxu0 %v1079_v25  ;;  %v1082_v29 = vld [vmem:[#allocation2 + $0x8] ss:$0 sps:$4 sm:$0x77]  }
  0xa1   : > { %v531_v31 = vld [vmem:[#allocation2 + $0x8] sm:$0xf]  ;;  %v624_v33 = vrot.slane %v1082_v29, 3  ;;  %v549_v35 = vrot.slane %v547_v28, 3  ;;  %v552_v37 = vrot.slane %v550_v30, 4 }
  0xa2   : > { %v984_v34 = vcombine.low %v531_v31, %v531_v31  ;;  %v996_v47 = vcombine.low %v525_v26, %v531_v31 }
  0xa3   : > { %v625_v36 = vsel %vm622_vm3, %v623_v32, %v624_v33  ;;  %v553_v42 = vor.u32 %v552_v37, %v549_v35 }
  0xa4   : > { %v555_v38 = vshrl.u32 %v984_v34, 16  ;;  %v558_v39 = vshll.u32 %v984_v34, 16  ;;  %1045 = vmatmul.mubr.msk.bf16.vlgmr.msra.gmra.mrb[4].mxu0 %vm469_vm2, %v625_v36 }
  0xa6   : > { %v557_v40 = vrot.slane %v555_v38, 3  ;;  %v560_v41 = vrot.slane %v558_v39, 4  ;;  %v754_v38 = vld [vmem:[%s1292_s4] sm:$0x1] }
  0xa7   : > { %v756_v39 = vld [vmem:[%s1293_s5] sm:$0x1] }
  0xa8   : > { %v561_v43 = vor.u32 %v560_v41, %v557_v40  ;;  %v755_v40 = vunpack.c.l.bf16 %v754_v38  ;;  %v757_v41 = vunpack.c.l.bf16 %v756_v39 }
  0xaa   : > { %v562_v45 = vsel %vm545_vm4, %v553_v42, %v561_v43  ;;  %v788_v42 = vrot.slane %v755_v40, %v1247_v49 }
  0xab   : > { %1037 = vmatmul.mubr.msk.bf16.vlgmr.msra.gmra.mrb[0].mxu1 %vm469_vm2, %v562_v45  ;;  %v794_v45 = vrot.slane %v757_v41, %v1247_v49 }
  0xac   : > { %1049 = vmatpush3.bf16.msra.mxu1 %v1084_v44  ;;  %1052 = vmatprep.mubr.msk.bf16.mxu1 %vm1113_vm1, %v1112_v4 }
  0xad   : > { %1050 = vmatprep.subr.bf16.mxu1 %v1112_v4 }
  0xb0   : > { %1051 = vmatpush3.bf16.msra.mxu1 %v1085_v46 }
  0xb3   : > { %1053 = vmatmul.mubr.msk.bf16.vlgmr.msra.gmra.mrb[4].mxu1 %vm469_vm2, %v996_v47 }
 0x16e   : > { %v507_v52 = vpop.f32.mrb[0].mxu0 }
 0x16f   : > { %v508_v53 = vadd.f32 %v507_v52, %v451_v51  ;;  %v1030_v54 = vpop.f32.mrb[1].mxu0 }
 0x170   : > { %v510_v55 = vpop.f32.mrb[2].mxu0 }
 0x171   : > { %v1008_v56 = vpack.c.bf16 %v508_v53, %v508_v53  ;;  %v511_v57 = vadd.f32 %v510_v55, %v451_v51  ;;  %v1031_v58 = vpop.f32.mrb[3].mxu0 }
 0x173   : > { %522 = vst.msk [vmem:[%s406_s25] sm:$0xf] %vm438_vm0, %v1008_v56  ;;  %v1009_v59 = vpack.c.bf16 %v511_v57, %v511_v57 }
 0x175   : > { %523 = vst.msk [vmem:[%s406_s25 + $0x4] sm:$0xf] %vm438_vm0, %v1009_v59 }
 0x177   : > { %v675_v60 = vpop.f32.mrb[4].mxu0 }
 0x178   : > { %v1046_v61 = vpop.f32.mrb[5].mxu0 }
 0x179   : > { %v678_v62 = vpop.f32.mrb[6].mxu0 }
 0x17a   : > { %v1047_v63 = vpop.f32.mrb[7].mxu0 }
 0x17e   : > { %v612_v0 = vpop.f32.mrb[0].mxu1 }
 0x17f   : > { %v676_v4 = vadd.f32 %v675_v60, %v612_v0  ;;  %v1038_v5 = vpop.f32.mrb[1].mxu1 }
 0x180   : > { %v615_v6 = vpop.f32.mrb[2].mxu1 }
 0x181   : > { %v679_v7 = vadd.f32 %v678_v62, %v615_v6  ;;  %v1039_v8 = vpop.f32.mrb[3].mxu1 }
 0x186   : > { %v737_v11 = vpop.f32.mrb[4].mxu1 }
 0x187   : > { %v744_v12 = vadd.f32 %v737_v11, %v676_v4  ;;  %v1054_v13 = vpop.f32.mrb[5].mxu1  ;;  %v834_v11 = vunpack.c.l.bf16 %v833_v9 }
 0x188   : > { %v740_v14 = vpop.f32.mrb[6].mxu1 }
 0x189   : > { %v745_v15 = vadd.f32 %v740_v14, %v679_v7  ;;  %v1055_v16 = vpop.f32.mrb[7].mxu1  ;;  %v752_v17 = vadd.f32 %v751_v10, %v744_v12 }
 0x18b   : > { %v758_v18 = vsel %vm469_vm2, %v752_v17, 0.0  ;;  %v753_v19 = vadd.f32 %v751_v10, %v745_v15  ;;  %v838_v15 = vrot.slane %v834_v11, %v1247_v49 }
 0x18c   : > { %759 = vadd.xlane.f32.xlu1 %v758_v18 }
 0x18d   : > { %v761_v20 = vsel %vm469_vm2, %v753_v19, 0.0 }
 0x190   : > { %762 = vadd.xlane.f32.xlu1 %v761_v20 }
 0x219   : > { %v760_v24 = vpop.xlane.xlu1 %759 }
 0x21a   : > { %v765_v25 = vmul.f32 0.03125, %v760_v24 }
 0x21c   : > { %v767_v26 = vsub.f32 %v752_v17, %v765_v25 }
 0x21d   : > { %v763_v27 = vpop.xlane.xlu1 %762 }
 0x21e   : > { %v766_v28 = vmul.f32 0.03125, %v763_v27  ;;  %v769_v29 = vmul.f32 %v767_v26, %v767_v26 }
 0x220   : > { %v768_v30 = vsub.f32 %v753_v19, %v766_v28  ;;  %v771_v31 = vsel %vm469_vm2, %v769_v29, 0.0 }
 0x221   : > { %772 = vadd.xlane.f32.xlu0 %v771_v31 }
 0x222   : > { %v770_v32 = vmul.f32 %v768_v30, %v768_v30 }
 0x224   : > { %v774_v33 = vsel %vm469_vm2, %v770_v32, 0.0 }
 0x225   : > { %775 = vadd.xlane.f32.xlu1 %v774_v33 }
 0x236   : > { %1071 = vperm.xlu1 %1069, %v1070_v23  }
 0x2ae   : > { %v773_v34 = vpop.xlane.xlu0 %772 }
 0x2af   : > { %v777_v1 = vmul.f32 0.03125, %v773_v34 }
 0x2b1   : > { %v779_v35 = vadd.f32 1e-05, %v777_v1 }
 0x2b2   : > { %v776_v2 = vpop.xlane.xlu1 %775 }
 0x2b3   : > { %1087 = vrsqrt.f32 %v779_v35  ;;  %v778_v36 = vmul.f32 0.03125, %v776_v2 }
 0x2b5   : > { %v780_v37 = vadd.f32 1e-05, %v778_v36 }
 0x2b6   : > { %v1072_v10 = vpop.permute.xlu1 %1071 }
 0x2b7   : > { %1089 = vrsqrt.f32 %v780_v37  ;;  %v1073_v12 = vunpack.i.l.bf16 %v1072_v10  ;;  %v1074_v16 = vunpack.i.h.bf16 %v1072_v10 }
 0x2bd   : > { %v1088_v43 = vpop.eup %1087 }
 0x2be   : > { %v783_v44 = vmul.f32 %v1088_v43, %v767_v26 }
 0x2c0   : > { %v789_v46 = vmul.f32 %v788_v42, %v783_v44 }
 0x2c1   : > { %v1090_v47 = vpop.eup %1089 }
 0x2c2   : > { %v784_v48 = vmul.f32 %v1090_v47, %v768_v30  ;;  %v795_v50 = vadd.f32 %v794_v45, %v789_v46 }
 0x2c4   : > { %v790_v51 = vmul.f32 %v788_v42, %v784_v48  ;;  %v799_v52 = vand.u32 2147483647, %v795_v50  ;;  %v797_v0 = vmax.f32 %v795_v50, 0.0 }
 0x2c6   : > { %v796_v53 = vadd.f32 %v794_v45, %v790_v51  ;;  %v801_v54 = vsub.f32 0.0, %v799_v52 }
 0x2c8   : > { %v800_v55 = vand.u32 2147483647, %v796_v53  ;;  %v803_v56 = vmul.f32 1.442695, %v801_v54  ;;  %v798_v6 = vmax.f32 %v796_v53, 0.0 }
 0x2ca   : > { %v802_v57 = vsub.f32 0.0, %v800_v55  ;;  %1091 = vpow2.f32 %v803_v56 }
 0x2cc   : > { %v805_v58 = vmul.f32 1.442695, %v802_v57 }
 0x2ce   : > { %1093 = vpow2.f32 %v805_v58 }
 0x2d4   : > { %v1092_v59 = vpop.eup %1091 }
 0x2d5   : > { %v807_v60 = vadd.f32 1.0, %v1092_v59 }
 0x2d7   : > { %1095 = vlog2.f32 %v807_v60 }
 0x2d8   : > { %v1094_v61 = vpop.eup %1093 }
 0x2d9   : > { %v808_v62 = vadd.f32 1.0, %v1094_v61 }
 0x2db   : > { %1097 = vlog2.f32 %v808_v62 }
 0x2e1   : > { %v1096_v63 = vpop.eup %1095 }
 0x2e2   : > { %v810_v3 = vmul.f32 0.6931472, %v1096_v63 }
 0x2e4   : > { %v813_v4 = vadd.f32 %v810_v3, %v797_v0 }
 0x2e5   : > { %v1098_v5 = vpop.eup %1097 }
 0x2e6   : > { %v812_v7 = vmul.f32 0.6931472, %v1098_v5  ;;  %1099 = vtanh.f32 %v813_v4 }
 0x2e8   : > { %v814_v8 = vadd.f32 %v812_v7, %v798_v6 }
 0x2ea   : > { %1101 = vtanh.f32 %v814_v8 }
 0x2f0   : > { %v1100_v13 = vpop.eup %1099 }
 0x2f1   : > { %v817_v14 = vmul.f32 %v1100_v13, %v795_v50 }
 0x2f3   : > { %v831_v17 = vmul.f32 %v1073_v12, %v817_v14 }
 0x2f4   : > { %v1102_v18 = vpop.eup %1101 }
 0x2f5   : > { %v818_v19 = vmul.f32 %v1102_v18, %v796_v53  ;;  %v839_v20 = vadd.f32 %v838_v15, %v831_v17 }
 0x2f7   : > { %v832_v21 = vmul.f32 %v1074_v16, %v818_v19  ;;  %v1010_v22 = vpack.c.bf16 %v839_v20, %v839_v20 }
 0x2f9   : > { %v840_v23 = vadd.f32 %v838_v15, %v832_v21  ;;  %849 = vst.msk [vmem:[%s401_s20] sm:$0xf] %vm438_vm0, %v1010_v22 }
 0x2fb   : > { %v1011_v24 = vpack.c.bf16 %v840_v23, %v840_v23 }
 0x2fd   : > { %850 = vst.msk [vmem:[%s401_s20 + $0x4] sm:$0xf] %vm438_vm0, %v1011_v24 }
 0x2fe PF: > { %s21_s13 = sadd.s32 1, %s1109_s13  }
 0x2ff   : > { %p18_p4 = scmp.ge.s32.totalorder %s21_s13, 4  }
 0x301   :  { %20 = sbr.rel (!%p18_p4) target bundleno = 1 (0x1), region = 106 }

// kernel: conditional_decoder_forward.42
= control target key start
LH: loop header
LB: loop body
LE: loop exit
PB: predicated region body
PF: predicated region fallthrough
CT: control target
= control target key end

     0   :  { %vm36_vm0 = vcmask 261120   ;;  %v90_v37 = vlaneseq  ;;  %vm201_vm1 = vcmask 257024   ;;  %s296_s19 = smov 64   ;;  %s416_s0 = inlined_call_operand.vmem [shape: bf16[32,32], index: 0, kind: input, shape index: {}]   ;;  %s417_s3 = inlined_call_operand.vmem [shape: bf16[32,96], index: 3, kind: input, shape index: {}]   ;;  %s418_s1 = inlined_call_operand.vmem [shape: bf16[1,32], index: 1, kind: input, shape index: {}]   ;;  %s419_s2 = inlined_call_operand.vmem [shape: bf16[1,32], index: 2, kind: input, shape index: {}]   ;;  %s420_s4 = inlined_call_operand.vmem [shape: bf16[1,96], index: 4, kind: input, shape index: {}]   ;;  %s421_s5 = inlined_call_operand.vmem [shape: bf16[32,32], index: 5, kind: output, shape index: {0}]   ;;  %s422_s6 = inlined_call_operand.vmem [shape: bf16[32,32], index: 6, kind: output, shape index: {1}]   ;;  %s423_s7 = inlined_call_operand.vmem [shape: bf16[32,32], index: 7, kind: output, shape index: {2}]  }
   0x1   :  { %v263_v0 = vld [vmem:[%s416_s0] sm:$0xff]   ;;  %v270_v1 = vld [vmem:[%s416_s0 + $0x8] sm:$0xff]  }
   0x2   :  { %v264_v2 = vunpack.c.l.bf16 %v263_v0  ;;  %v268_v3 = vunpack.c.l.bf16 %v270_v1  ;;  %v265_v4 = vunpack.c.h.bf16 %v263_v0  ;;  %v269_v5 = vunpack.c.h.bf16 %v270_v1  ;;  %v285_v30 = vld [vmem:[%s417_s3] sm:$0xff]   ;;  %v286_v31 = vld [vmem:[%s417_s3 + $0x8] sm:$0xff]  }
   0x3   :  { %275 = vmatprep.subr.bf16.mxu0 %v285_v30  ;;  %v91_v43 = vshrl.u32 %v90_v37, 7  ;;  %v32_v45 = vld [vmem:[%s418_s1] sm:$0x1] }
   0x4   :  { %v37_v6 = vsel %vm36_vm0, %v264_v2, 0.0  ;;  %v43_v7 = vsel %vm36_vm0, %v268_v3, 0.0  ;;  %v40_v8 = vsel %vm36_vm0, %v265_v4, 0.0  ;;  %v46_v9 = vsel %vm36_vm0, %v269_v5, 0.0  ;;  %276 = vmatpush3.bf16.msra.mxu0 %v285_v30  ;;  %v34_v49 = vld [vmem:[%s419_s2] sm:$0x1] }
   0x5   :  { %38 = vadd.xlane.f32.xlu0 %v37_v6  ;;  %44 = vadd.xlane.f32.xlu1 %v43_v7  ;;  %v33_v47 = vunpack.c.l.bf16 %v32_v45  ;;  %v92_v48 = vsub.s32 0, %v91_v43  ;;  %v35_v51 = vunpack.c.l.bf16 %v34_v49  ;;  %v112_v7 = vld [vmem:[%s420_s4] sm:$0x1]  ;;  %s295_s4 = smov 96  }
   0x6   :  { %277 = vmatprep.subr.bf16.mxu0 %v286_v31 }
   0x7   :  { %v93_v53 = vrot.slane %v33_v47, %v92_v48  ;;  %v101_v58 = vrot.slane %v35_v51, %v92_v48 }
   0x8   :  { %278 = vmatpush3.bf16.msra.mxu0 %v286_v31 }
   0x9   :  { %41 = vadd.xlane.f32.xlu0 %v40_v8  ;;  %47 = vadd.xlane.f32.xlu1 %v46_v9  ;;  %v113_v8 = vunpack.c.l.bf16 %v112_v7 }
   0xb   :  { %v117_v9 = vrot.slane %v113_v8, %v92_v48 }
  0x92   :  { %v39_v10 = vpop.xlane.xlu0 %38  ;;  %v45_v11 = vpop.xlane.xlu1 %44 }
  0x93   :  { %v50_v12 = vmul.f32 0.03125, %v39_v10  ;;  %v52_v13 = vmul.f32 0.03125, %v45_v11 }
  0x95   :  { %v54_v14 = vsub.f32 %v264_v2, %v50_v12  ;;  %v56_v15 = vsub.f32 %v268_v3, %v52_v13 }
  0x96   :  { %v42_v16 = vpop.xlane.xlu0 %41  ;;  %v48_v17 = vpop.xlane.xlu1 %47 }
  0x97   :  { %v51_v18 = vmul.f32 0.03125, %v42_v16  ;;  %v53_v19 = vmul.f32 0.03125, %v48_v17  ;;  %v58_v20 = vmul.f32 %v54_v14, %v54_v14  ;;  %v60_v21 = vmul.f32 %v56_v15, %v56_v15 }
  0x99   :  { %v55_v22 = vsub.f32 %v265_v4, %v51_v18  ;;  %v57_v23 = vsub.f32 %v269_v5, %v53_v19  ;;  %v62_v24 = vsel %vm36_vm0, %v58_v20, 0.0  ;;  %v68_v25 = vsel %vm36_vm0, %v60_v21, 0.0 }
  0x9a   :  { %63 = vadd.xlane.f32.xlu0 %v62_v24 }
  0x9b   :  { %v59_v26 = vmul.f32 %v55_v22, %v55_v22  ;;  %v61_v27 = vmul.f32 %v57_v23, %v57_v23 }
  0x9d   :  { %v65_v28 = vsel %vm36_vm0, %v59_v26, 0.0  ;;  %v71_v29 = vsel %vm36_vm0, %v61_v27, 0.0 }
  0x9e   :  { %69 = vadd.xlane.f32.xlu0 %v68_v25  ;;  %66 = vadd.xlane.f32.xlu1 %v65_v28 }
  0xa2   :  { %72 = vadd.xlane.f32.xlu1 %v71_v29 }
 0x127   :  { %v64_v32 = vpop.xlane.xlu0 %63 }
 0x128   :  { %v74_v33 = vmul.f32 0.03125, %v64_v32 }
 0x12a   :  { %v78_v34 = vadd.f32 1e-05, %v74_v33 }
 0x12b   :  { %v67_v35 = vpop.xlane.xlu1 %66  ;;  %v70_v36 = vpop.xlane.xlu0 %69 }
 0x12c   :  { %287 = vrsqrt.f32 %v78_v34  ;;  %v75_v38 = vmul.f32 0.03125, %v67_v35  ;;  %v76_v39 = vmul.f32 0.03125, %v70_v36 }
 0x12e   :  { %v79_v40 = vadd.f32 1e-05, %v75_v38  ;;  %v80_v41 = vadd.f32 1e-05, %v76_v39 }
 0x12f   :  { %v73_v42 = vpop.xlane.xlu1 %72 }
 0x130   :  { %289 = vrsqrt.f32 %v79_v40  ;;  %v77_v44 = vmul.f32 0.03125, %v73_v42 }
 0x131   :  { %291 = vrsqrt.f32 %v80_v41 }
 0x132   :  { %v81_v46 = vadd.f32 1e-05, %v77_v44 }
 0x134   :  { %293 = vrsqrt.f32 %v81_v46 }
 0x136   :  { %v288_v50 = vpop.eup %287 }
 0x137   :  { %v86_v52 = vmul.f32 %v288_v50, %v54_v14 }
 0x139   :  { %v94_v57 = vmul.f32 %v93_v53, %v86_v52 }
 0x13a   :  { %v290_v54 = vpop.eup %289 }
 0x13b   :  { %v292_v55 = vpop.eup %291  ;;  %v87_v56 = vmul.f32 %v290_v54, %v55_v22  ;;  %v102_v63 = vadd.f32 %v101_v58, %v94_v57 }
 0x13c   :  { %v88_v59 = vmul.f32 %v292_v55, %v56_v15 }
 0x13d   :  { %v95_v60 = vmul.f32 %v93_v53, %v87_v56 }
 0x13e   :  { %v294_v61 = vpop.eup %293  ;;  %v96_v1 = vmul.f32 %v93_v53, %v88_v59 }
 0x13f   :  { %v89_v62 = vmul.f32 %v294_v61, %v57_v23  ;;  %v103_v0 = vadd.f32 %v101_v58, %v95_v60 }
 0x140   :  { %v104_v4 = vadd.f32 %v101_v58, %v96_v1 }
 0x141   :  { %v106_v2 = vpack.c.bf16 %v103_v0, %v102_v63  ;;  %v97_v3 = vmul.f32 %v93_v53, %v89_v62 }
 0x143   :  { %279 = vmatprep.mubr.msk.bf16.mxu0 %vm36_vm0, %v106_v2  ;;  %v105_v5 = vadd.f32 %v101_v58, %v97_v3 }
 0x145   :  { %v107_v6 = vpack.c.bf16 %v105_v5, %v104_v4 }
 0x147   :  { %280 = vmatmul.mubr.msk.bf16.vlgmr.msra.gmra.mrb[0].mxu0 %vm36_vm0, %v107_v6 }
 0x21a   :  { %v281_v10 = vpop.f32.mrb[0].mxu0 }
 0x21b   :  { %v179_v11 = vadd.f32 %v281_v10, %v117_v9  ;;  %v170_v12 = vpop.f32.mrb[1].mxu0 }
 0x21c   :  { %v171_v13 = vadd.f32 %v170_v12, %v117_v9  ;;  %v282_v14 = vpop.f32.mrb[2].mxu0 }
 0x21d   :  { %v260_v15 = vpack.c.bf16 %v179_v11, %v179_v11  ;;  %v182_v16 = vadd.f32 %v282_v14, %v117_v9  ;;  %v173_v17 = vpop.f32.mrb[3].mxu0 }
 0x21e   :  { %v258_v18 = vpack.c.bf16 %v171_v13, %v171_v13  ;;  %v174_v19 = vadd.f32 %v173_v17, %v117_v9 }
 0x21f   :  { %204 = vst.msk [vmem:[%s421_s5 + $0x8] sm:$0xf] %vm201_vm1, %v260_v15  ;;  %v261_v20 = vpack.c.bf16 %v182_v16, %v182_v16  ;;  %210 = vrot.lane.b32.xlu1 %v260_v15, %s295_s4 }
 0x220   :  { %202 = vst.msk [vmem:[%s421_s5] sm:$0xf] %vm201_vm1, %v258_v18  ;;  %v259_v21 = vpack.c.bf16 %v174_v19, %v174_v19  ;;  %206 = vrot.lane.b32.xlu0 %v258_v18, %s295_s4 }
 0x221   :  { %205 = vst.msk [vmem:[%s421_s5 + $0xc] sm:$0xf] %vm201_vm1, %v261_v20 }
 0x222   :  { %203 = vst.msk [vmem:[%s421_s5 + $0x4] sm:$0xf] %vm201_vm1, %v259_v21 }
 0x223   :  { %212 = vrot.lane.b32.xlu1 %v261_v20, %s295_s4 }
 0x224   :  { %222 = vrot.lane.b32.xlu0 %v258_v18, %s296_s19 }
 0x227   :  { %208 = vrot.lane.b32.xlu1 %v259_v21, %s295_s4 }
 0x228   :  { %226 = vrot.lane.b32.xlu0 %v260_v15, %s296_s19 }
 0x22b   :  { %224 = vrot.lane.b32.xlu1 %v259_v21, %s296_s19 }
 0x22f   :  { %228 = vrot.lane.b32.xlu1 %v261_v20, %s296_s19 }
 0x291   :  { %v211_v22 = vpop.permute.xlu1 %210 }
 0x292   :  { %220 = vst.msk [vmem:[%s422_s6 + $0x8] sm:$0xf] %vm201_vm1, %v211_v22  ;;  %v207_v23 = vpop.permute.xlu0 %206 }
 0x293   :  { %218 = vst.msk [vmem:[%s422_s6] sm:$0xf] %vm201_vm1, %v207_v23 }
 0x295   :  { %v213_v24 = vpop.permute.xlu1 %212 }
 0x296   :  { %221 = vst.msk [vmem:[%s422_s6 + $0xc] sm:$0xf] %vm201_vm1, %v213_v24  ;;  %v223_v25 = vpop.permute.xlu0 %222 }
 0x297   :  { %234 = vst.msk [vmem:[%s423_s7] sm:$0xf] %vm201_vm1, %v223_v25 }
 0x299   :  { %v209_v26 = vpop.permute.xlu1 %208 }
 0x29a   :  { %219 = vst.msk [vmem:[%s422_s6 + $0x4] sm:$0xf] %vm201_vm1, %v209_v26  ;;  %v227_v27 = vpop.permute.xlu0 %226 }
 0x29b   :  { %236 = vst.msk [vmem:[%s423_s7 + $0x8] sm:$0xf] %vm201_vm1, %v227_v27 }
 0x29d   :  { %v225_v28 = vpop.permute.xlu1 %224 }
 0x29e   :  { %235 = vst.msk [vmem:[%s423_s7 + $0x4] sm:$0xf] %vm201_vm1, %v225_v28 }
 0x2a1   :  { %v229_v29 = vpop.permute.xlu1 %228 }
 0x2a2   :  { %237 = vst.msk [vmem:[%s423_s7 + $0xc] sm:$0xf] %vm201_vm1, %v229_v29 }

// kernel: conditional_decoder_forward.41
= control target key start
LH: loop header
LB: loop body
LE: loop exit
PB: predicated region body
PF: predicated region fallthrough
CT: control target
= control target key end

     0   :  { %s937_s24 = smov 0   ;;  %s1016_s0 = inlined_call_operand.vmem [shape: bf16[2,16,32], index: 0, kind: input, shape index: {}]   ;;  %s1017_s1 = inlined_call_operand.vmem [shape: bf16[2,16,1], index: 1, kind: input, shape index: {}]   ;;  %s1018_s2 = inlined_call_operand.vmem [shape: bf16[3,32,32], index: 2, kind: input, shape index: {}]   ;;  %s1019_s3 = inlined_call_operand.vmem [shape: bf16[1,32], index: 3, kind: input, shape index: {}]   ;;  %s1020_s4 = inlined_call_operand.vmem [shape: bf16[1,32], index: 4, kind: input, shape index: {}]   ;;  %s1021_s5 = inlined_call_operand.vmem [shape: bf16[1,32], index: 5, kind: input, shape index: {}]   ;;  %s1022_s6 = inlined_call_operand.vmem [shape: bf16[2,16,32], index: 6, kind: input, shape index: {}]   ;;  %s1023_s7 = inlined_call_operand.vmem [shape: bf16[2,16,32], index: 7, kind: output, shape index: {}]  }
   0x1 LB: > { %s759_s25 = sadd.s32 4294967295, %s891_s24   ;;  %p763_p0 = scmp.ge.s32.totalorder %s891_s24, 1  ;;  %s891_s24 = sphi %s937_s24, %s17_s24  }
   0x2   : > { %p257_p1 = scmp.lt.s32.totalorder %s891_s24, 3 }
   0x4   : > { %p258_p2 = pnand %p763_p0, %p257_p1 }
   0x5   : > { %vm350_vm0 = vcmask (!%p258_p2), 257024   ;;  %p299_p3 = scmp.lt.s32.totalorder (!%p258_p2), %s759_s25, 1  ;;  %v893_v0 = vmov (!%p258_p2), 0   ;;  %v859_v3 = vld [vmem:[%s1018_s2] sm:$0xff] (!%p258_p2)   ;;  %v860_v4 = vld [vmem:[%s1018_s2 + $0x10] sm:$0xff] (!%p258_p2)   ;;  %v894_v5 = vmov (!%p258_p2), 0.0   ;;  %v332_v10 = vlaneseq (!%p258_p2) }
   0x6   : > { %261 = sbr.rel (%p258_p2) target bundleno = 766 (0x2fe), region = 48  ;;  %852 = vset.pattern.permute.xlu0 (!%p258_p2), %v893_v0  ;;  %351 = vst.msk [vmem:[#allocation2] sm:$0xf] (!%p258_p2), %vm350_vm0, %v893_v0  ;;  %853 = vset.pattern.permute.xlu1 (!%p258_p2), %v893_v0  ;;  %v861_v6 = vld [vmem:[%s1018_s2 + $0x8] sm:$0xff] (!%p258_p2)   ;;  %v862_v7 = vld [vmem:[%s1018_s2 + $0x18] sm:$0xff] (!%p258_p2)   ;;  %vm895_vm1 = vmmov (!%p258_p2), 0  }
   0x7   : > { %824 = vmatprep.subr.bf16.mxu1 (!%p258_p2), %v894_v5  ;;  %816 = vmatprep.subr.bf16.mxu0 (!%p258_p2), %v894_v5  ;;  %v896_v8 = vmov (!%p258_p2), 839922192   ;;  %v333_v12 = vshrl.u32 (!%p258_p2), %v332_v10, 7  ;;  %vm453_vm2 = vcmask (!%p258_p2), 1044480   ;;  %vm405_vm3 = vcmask (!%p258_p2), 261120   ;;  %v866_v41 = vld [vmem:[%s1018_s2 + $0x20] sm:$0xff] (!%p258_p2)  }
   0x8   : > { %825 = vmatpush3.bf16.msra.mxu1 (!%p258_p2), %v859_v3  ;;  %817 = vmatpush3.bf16.msra.mxu0 (!%p258_p2), %v860_v4  ;;  %v330_v9 = vunpack.c.l.s4 (!%p258_p2), %v896_v8  ;;  %vm375_vm4 = vsmask.f32 (!%p258_p2), 4352  ;;  %v867_v43 = vld [vmem:[%s1018_s2 + $0x28] sm:$0xff] (!%p258_p2)   ;;  %v577_v50 = vld [vmem:[%s1019_s3] sm:$0x1] (!%p258_p2) }
   0x9   : > { %826 = vmatprep.subr.bf16.mxu1 (!%p258_p2), %v894_v5  ;;  %818 = vmatprep.subr.bf16.mxu0 (!%p258_p2), %v894_v5  ;;  %v581_v54 = vsub.s32 (!%p258_p2), 0, %v333_v12  ;;  %v578_v57 = vunpack.c.l.bf16 (!%p258_p2), %v577_v50 }
   0xa   : > { %828 = vmatprep.mubr.msk.bf16.mxu1 (!%p258_p2), %vm895_vm1, %v894_v5  ;;  %820 = vmatprep.mubr.msk.bf16.mxu0 (!%p258_p2), %vm895_vm1, %v894_v5  ;;  %v331_v11 = vunpack.c.0.s8 (!%p258_p2), %v330_v9 }
   0xb   : > { %v582_v58 = vrot.slane (!%p258_p2), %v578_v57, %v581_v54 }
   0xc   : > { %827 = vmatpush3.bf16.msra.mxu1 (!%p258_p2), %v861_v6  ;;  %819 = vmatpush3.bf16.msra.mxu0 (!%p258_p2), %v862_v7  ;;  %v334_v13 = vsub.s32 (!%p258_p2), %v331_v11, %v333_v12 }
   0xd   : > { %s1025_s25 = smov (!%p299_p3, %s759_s25), 1  ;;  %832 = vmatprep.subr.bf16.mxu0 %v894_v5  ;;  %v354_v22 = vld [vmem:[#allocation2] sm:$0x8] }
   0xe   : > { %s946_s26 = sshll.u32 %s1025_s25, 3 }
   0xf   : > { %s308_s29 = scalar_lea.vmem %s1017_s1, %s946_s26  ;;  %s303_s17 = scalar_lea.vmem %s1016_s0, %s946_s26 }
  0x10   : > { %v952_v1 = vld [vmem:[%s308_s29] sm:$0xf]  ;;  %v955_v2 = vld [vmem:[%s308_s29 + $0x4] sm:$0xf]  ;;  %s313_s9 = scalar_lea.vmem %s1022_s6, %s946_s26  ;;  %s318_s12 = scalar_lea.vmem %s1023_s7, %s946_s26 }
  0x11   : > { %326 = vperm.xlu0 %852, %v952_v1   ;;  %v322_v15 = vld [vmem:[%s303_s17] sm:$0xf]  ;;  %v323_v19 = vld [vmem:[%s303_s17 + $0x4] sm:$0xf]  ;;  %v650_v7 = vunpack.c.l.bf16 %v952_v1  ;;  %v651_v8 = vunpack.c.l.bf16 %v955_v2 }
  0x12   : > { %v804_v57 = vld [vmem:[%s313_s9] sm:$0xff]  }
  0x13   : > { %v854_v9 = vpack.i.bf16 %v651_v8, %v650_v7 }
  0x15   : > { %338 = vperm.xlu0 %852, %v955_v2  }
  0x90   : > { %v327_v14 = vpop.permute.xlu0 %326 }
  0x91   : > { %v335_v16 = vrot.slane %v327_v14, %v334_v13 }
  0x93   : > { %v348_v17 = vmul.bf16 %v335_v16, %v322_v15 }
  0x94   : > { %v339_v18 = vpop.permute.xlu0 %338 }
  0x95   : > { %352 = vst.msk [vmem:[#allocation2 + $0x4] sm:$0xf] %vm350_vm0, %v348_v17  ;;  %v347_v20 = vrot.slane %v339_v18, %v334_v13 }
  0x97   : > { %v349_v21 = vmul.bf16 %v347_v20, %v323_v19 }
  0x99   : > { %353 = vst.msk [vmem:[#allocation2 + $0x8] sm:$0xf] %vm350_vm0, %v349_v21 }
  0x9c   : > { %v355_v23 = vld [vmem:[#allocation2 + $0x4] sm:$0xf] }
  0x9d   : > { %v776_v24 = vcombine.low %v354_v22, %v355_v23 }
  0x9f   : > { %v377_v25 = vshrl.u32 %v776_v24, 16  ;;  %v380_v27 = vshll.u32 %v776_v24, 16  ;;  %v454_v29 = vrot.slane %v776_v24, 3 }
  0xa0   : > { %v864_v26 = vld [vmem:[#allocation2 + $0x8] ss:$0 sps:$4 sm:$0x77]  }
  0xa1   : > { %v361_v28 = vld [vmem:[#allocation2 + $0x8] sm:$0xf]  ;;  %v455_v30 = vrot.slane %v864_v26, 3  ;;  %v379_v32 = vrot.slane %v377_v25, 3  ;;  %v382_v34 = vrot.slane %v380_v27, 4 }
  0xa2   : > { %v777_v31 = vcombine.low %v361_v28, %v361_v28  ;;  %v789_v44 = vcombine.low %v355_v23, %v361_v28  ;;  %v585_v23 = vld [vmem:[%s1020_s4] sm:$0x1] }
  0xa3   : > { %v456_v33 = vsel %vm453_vm2, %v454_v29, %v455_v30  ;;  %v383_v39 = vor.u32 %v382_v34, %v379_v32  ;;  %v587_v25 = vld [vmem:[%s1021_s5] sm:$0x1]  ;;  %v586_v26 = vunpack.c.l.bf16 %v585_v23 }
  0xa4   : > { %v385_v35 = vshrl.u32 %v777_v31, 16  ;;  %v388_v36 = vshll.u32 %v777_v31, 16  ;;  %829 = vmatmul.mubr.msk.bf16.vlgmr.msra.gmra.mrb[0].mxu1 %vm405_vm3, %v456_v33  ;;  %v588_v27 = vunpack.c.l.bf16 %v587_v25 }
  0xa5   : > { %v619_v28 = vrot.slane %v586_v26, %v581_v54 }
  0xa6   : > { %v387_v37 = vrot.slane %v385_v35, 3  ;;  %v390_v38 = vrot.slane %v388_v36, 4  ;;  %v625_v31 = vrot.slane %v588_v27, %v581_v54 }
  0xa8   : > { %v391_v40 = vor.u32 %v390_v38, %v387_v37 }
  0xaa   : > { %v392_v42 = vsel %vm375_vm4, %v383_v39, %v391_v40 }
  0xab   : > { %821 = vmatmul.mubr.msk.bf16.vlgmr.msra.gmra.mrb[0].mxu0 %vm405_vm3, %v392_v42 }
  0xac   : > { %833 = vmatpush3.bf16.msra.mxu0 %v866_v41  ;;  %836 = vmatprep.mubr.msk.bf16.mxu0 %vm895_vm1, %v894_v5 }
  0xad   : > { %834 = vmatprep.subr.bf16.mxu0 %v894_v5 }
  0xb0   : > { %835 = vmatpush3.bf16.msra.mxu0 %v867_v43 }
  0xb3   : > { %837 = vmatmul.mubr.msk.bf16.vlgmr.msra.gmra.mrb[4].mxu0 %vm405_vm3, %v789_v44 }
 0x177   : > { %v506_v45 = vpop.f32.mrb[0].mxu1 }
 0x178   : > { %v830_v46 = vpop.f32.mrb[1].mxu1 }
 0x179   : > { %v509_v47 = vpop.f32.mrb[2].mxu1 }
 0x17a   : > { %v831_v48 = vpop.f32.mrb[3].mxu1 }
 0x17e   : > { %v443_v49 = vpop.f32.mrb[0].mxu0 }
 0x17f   : > { %v507_v51 = vadd.f32 %v506_v45, %v443_v49  ;;  %v822_v52 = vpop.f32.mrb[1].mxu0 }
 0x180   : > { %v446_v53 = vpop.f32.mrb[2].mxu0 }
 0x181   : > { %v510_v55 = vadd.f32 %v509_v47, %v446_v53  ;;  %v823_v56 = vpop.f32.mrb[3].mxu0 }
 0x186   : > { %v568_v59 = vpop.f32.mrb[4].mxu0 }
 0x187   : > { %v575_v60 = vadd.f32 %v568_v59, %v507_v51  ;;  %v838_v61 = vpop.f32.mrb[5].mxu0 }
 0x188   : > { %v571_v62 = vpop.f32.mrb[6].mxu0  ;;  %v805_v61 = vunpack.c.l.bf16 %v804_v57 }
 0x189   : > { %v576_v63 = vadd.f32 %v571_v62, %v510_v55  ;;  %v839_v0 = vpop.f32.mrb[7].mxu0  ;;  %v583_v3 = vadd.f32 %v582_v58, %v575_v60 }
 0x18b   : > { %v589_v4 = vsel %vm405_vm3, %v583_v3, 0.0  ;;  %v584_v5 = vadd.f32 %v582_v58, %v576_v63 }
 0x18c   : > { %590 = vadd.xlane.f32.xlu1 %v589_v4  ;;  %v806_v4 = vunpack.c.h.bf16 %v804_v57 }
 0x18d   : > { %v592_v6 = vsel %vm405_vm3, %v584_v5, 0.0 }
 0x190   : > { %593 = vadd.xlane.f32.xlu1 %v592_v6 }
 0x219   : > { %v591_v10 = vpop.xlane.xlu1 %590 }
 0x21a   : > { %v596_v11 = vmul.f32 0.03125, %v591_v10 }
 0x21c   : > { %v598_v12 = vsub.f32 %v583_v3, %v596_v11 }
 0x21d   : > { %v594_v13 = vpop.xlane.xlu1 %593 }
 0x21e   : > { %v597_v14 = vmul.f32 0.03125, %v594_v13  ;;  %v600_v15 = vmul.f32 %v598_v12, %v598_v12 }
 0x220   : > { %v599_v16 = vsub.f32 %v584_v5, %v597_v14  ;;  %v602_v17 = vsel %vm405_vm3, %v600_v15, 0.0 }
 0x221   : > { %603 = vadd.xlane.f32.xlu0 %v602_v17 }
 0x222   : > { %v601_v18 = vmul.f32 %v599_v16, %v599_v16 }
 0x224   : > { %v605_v19 = vsel %vm405_vm3, %v601_v18, 0.0 }
 0x225   : > { %606 = vadd.xlane.f32.xlu1 %v605_v19 }
 0x236   : > { %855 = vperm.xlu1 %853, %v854_v9  }
 0x2ae   : > { %v604_v20 = vpop.xlane.xlu0 %603 }
 0x2af   : > { %v608_v1 = vmul.f32 0.03125, %v604_v20 }
 0x2b1   : > { %v610_v21 = vadd.f32 1e-05, %v608_v1 }
 0x2b2   : > { %v607_v2 = vpop.xlane.xlu1 %606 }
 0x2b3   : > { %869 = vrsqrt.f32 %v610_v21  ;;  %v609_v22 = vmul.f32 0.03125, %v607_v2 }
 0x2b5   : > { %v611_v24 = vadd.f32 1e-05, %v609_v22 }
 0x2b6   : > { %v856_v56 = vpop.permute.xlu1 %855 }
 0x2b7   : > { %871 = vrsqrt.f32 %v611_v24  ;;  %v857_v58 = vunpack.i.l.bf16 %v856_v56  ;;  %v858_v62 = vunpack.i.h.bf16 %v856_v56 }
 0x2bd   : > { %v870_v29 = vpop.eup %869 }
 0x2be   : > { %v614_v30 = vmul.f32 %v870_v29, %v598_v12 }
 0x2c0   : > { %v620_v32 = vmul.f32 %v619_v28, %v614_v30 }
 0x2c1   : > { %v872_v33 = vpop.eup %871 }
 0x2c2   : > { %v615_v34 = vmul.f32 %v872_v33, %v599_v16  ;;  %v626_v35 = vadd.f32 %v625_v31, %v620_v32 }
 0x2c4   : > { %v621_v36 = vmul.f32 %v619_v28, %v615_v34  ;;  %v630_v37 = vand.u32 2147483647, %v626_v35  ;;  %v628_v49 = vmax.f32 %v626_v35, 0.0 }
 0x2c6   : > { %v627_v38 = vadd.f32 %v625_v31, %v621_v36  ;;  %v632_v39 = vsub.f32 0.0, %v630_v37 }
 0x2c8   : > { %v631_v40 = vand.u32 2147483647, %v627_v38  ;;  %v634_v41 = vmul.f32 1.442695, %v632_v39  ;;  %v629_v53 = vmax.f32 %v627_v38, 0.0 }
 0x2ca   : > { %v633_v42 = vsub.f32 0.0, %v631_v40  ;;  %873 = vpow2.f32 %v634_v41 }
 0x2cc   : > { %v636_v43 = vmul.f32 1.442695, %v633_v42 }
 0x2ce   : > { %875 = vpow2.f32 %v636_v43 }
 0x2d4   : > { %v874_v44 = vpop.eup %873 }
 0x2d5   : > { %v638_v45 = vadd.f32 1.0, %v874_v44 }
 0x2d7   : > { %877 = vlog2.f32 %v638_v45 }
 0x2d8   : > { %v876_v46 = vpop.eup %875 }
 0x2d9   : > { %v639_v47 = vadd.f32 1.0, %v876_v46 }
 0x2db   : > { %879 = vlog2.f32 %v639_v47 }
 0x2e1   : > { %v878_v48 = vpop.eup %877 }
 0x2e2   : > { %v641_v50 = vmul.f32 0.6931472, %v878_v48 }
 0x2e4   : > { %v644_v51 = vadd.f32 %v641_v50, %v628_v49 }
 0x2e5   : > { %v880_v52 = vpop.eup %879 }
 0x2e6   : > { %v643_v54 = vmul.f32 0.6931472, %v880_v52  ;;  %881 = vtanh.f32 %v644_v51 }
 0x2e8   : > { %v645_v55 = vadd.f32 %v643_v54, %v629_v53 }
 0x2ea   : > { %883 = vtanh.f32 %v645_v55 }
 0x2f0   : > { %v882_v59 = vpop.eup %881 }
 0x2f1   : > { %v648_v60 = vmul.f32 %v882_v59, %v626_v35 }
 0x2f3   : > { %v662_v63 = vmul.f32 %v857_v58, %v648_v60 }
 0x2f4   : > { %v884_v0 = vpop.eup %883 }
 0x2f5   : > { %v649_v3 = vmul.f32 %v884_v0, %v627_v38  ;;  %v668_v5 = vadd.f32 %v805_v61, %v662_v63 }
 0x2f7   : > { %v663_v6 = vmul.f32 %v858_v62, %v649_v3  ;;  %v801_v7 = vpack.c.bf16 %v668_v5, %v668_v5 }
 0x2f9   : > { %v669_v8 = vadd.f32 %v806_v4, %v663_v6  ;;  %678 = vst.msk [vmem:[%s318_s12] sm:$0xf] %vm350_vm0, %v801_v7 }
 0x2fb   : > { %v802_v9 = vpack.c.bf16 %v669_v8, %v669_v8 }
 0x2fd   : > { %679 = vst.msk [vmem:[%s318_s12 + $0x4] sm:$0xf] %vm350_vm0, %v802_v9 }
 0x2fe PF: > { %s17_s24 = sadd.s32 1, %s891_s24  }
 0x2ff   : > { %p14_p4 = scmp.ge.s32.totalorder %s17_s24, 4  }
 0x301   :  { %16 = sbr.rel (!%p14_p4) target bundleno = 1 (0x1), region = 86 }

// kernel: conditional_decoder_forward.43
= control target key start
LH: loop header
LB: loop body
LE: loop exit
PB: predicated region body
PF: predicated region fallthrough
CT: control target
= control target key end

     0   :  { %s1222_s15 = smov 0   ;;  %s1224_s16 = smov 0   ;;  %s1357_s0 = inlined_call_operand.vmem [shape: bf16[2,16,32], index: 0, kind: input, shape index: {}]   ;;  %s1358_s1 = inlined_call_operand.vmem [shape: bf16[2,16,32], index: 1, kind: input, shape index: {}]   ;;  %s1359_s2 = inlined_call_operand.vmem [shape: bf16[2,16,32], index: 2, kind: input, shape index: {}]   ;;  %s1360_s3 = inlined_call_operand.vmem [shape: bf16[2,1,16], index: 3, kind: input, shape index: {}]   ;;  %s1361_s4 = inlined_call_operand.vmem [shape: bf16[2,16,32], index: 4, kind: output, shape index: {}]  }
   0x1   :  { %s1226_s17 = smov 0  }
   0x2 LB: > { %s26_s18 = sadd.s32 1, %s1183_s16  ;;  %p989_p0 = scmp.ge.s32.totalorder %s1187_s17, 1  ;;  %s1187_s17 = sphi %s1226_s17, %s14_s17   ;;  %s1183_s16 = sphi %s1224_s16, %s1363_s16   ;;  %s1179_s15 = sphi %s1222_s15, %s1362_s15  }
   0x3   : > { %p28_p1 = scmp.ge.s32.totalorder %s26_s18, 2  ;;  %p211_p2 = scmp.lt.s32.totalorder %s1187_s17, 3 }
   0x5   : > { %s1365_s18 = smov (%p28_p1, %s26_s18), 0  ;;  %p212_p3 = pnand %p989_p0, %p211_p2 }
   0x6   : > { %p259_p4 = scmp.lt.s32.totalorder (!%p212_p3), %s1179_s15, 1  ;;  %v1189_v0 = vmov (!%p212_p3), 0.0   ;;  %vm1190_vm0 = vmmov (!%p212_p3), 0   ;;  %vm310_vm1 = vcmask (!%p212_p3), 64512   ;;  %v360_v4 = vlaneseq (!%p212_p3)  ;;  %s1191_s29 = smov (!%p212_p3), 120  }
   0x7   : > { %215 = sbr.rel (%p212_p3) target bundleno = 1504 (0x5e0), region = 36  ;;  %1035 = vmatprep.subr.bf16.mxu0 (!%p212_p3), %v1189_v0  ;;  %1037 = vmatprep.mubr.msk.bf16.mxu0 (!%p212_p3), %vm1190_vm0, %v1189_v0  ;;  %vm366_vm2 = vcmask (!%p212_p3), 130048   ;;  %s1192_s30 = smov (!%p212_p3), 104   ;;  %vm851_vm3 = vcmask (!%p212_p3), 195584   ;;  %vm862_vm4 = vcmask (!%p212_p3), 257024  }
   0x8   : > { %1041 = vmatprep.subr.bf16.mxu1 (!%p212_p3), %v1189_v0  ;;  %1043 = vmatprep.mubr.msk.bf16.mxu1 (!%p212_p3), %vm1190_vm0, %v1189_v0  ;;  %v361_v5 = vshrl.u32 (!%p212_p3), %v360_v4, 7  ;;  %s1193_s8 = smov (!%p212_p3), 112   ;;  %s1194_s9 = smov (!%p212_p3), 8  }
   0x9   : > { %s1195_s10 = smov (!%p212_p3), 16   ;;  %s1196_s11 = smov (!%p212_p3), 24  }
   0xa   : > { %v362_v8 = vsub.s32 (!%p212_p3), 0, %v361_v5 }
   0xe   : > { %s1367_s15 = smov (!%p259_p4, %s1179_s15), 1 }
   0xf   : > { %s1246_s19 = sshll.u32 %s1367_s15, 3  ;;  %s280_s28 = scalar_lea.vmem %s1360_s3, %s1367_s15 }
  0x10   : > { %s272_s22 = scalar_lea.vmem %s1358_s1, %s1246_s19  ;;  %s266_s25 = scalar_lea.vmem %s1357_s0, %s1246_s19  ;;  %v292_v6 = vld [vmem:[%s280_s28] sm:$0x1] }
  0x11   : > { %v1130_v1 = vld [vmem:[%s272_s22] sm:$0xff]   ;;  %v293_v7 = vunpack.c.l.bf16 %v292_v6  ;;  %s277_s7 = scalar_lea.vmem %s1359_s2, %s1246_s19  ;;  %s289_s14 = scalar_lea.vmem %s1361_s4, %s1246_s19 }
  0x12   : > { %v315_v2 = vsel %vm310_vm1, %v1130_v1, 0  ;;  %v1131_v3 = vld [vmem:[%s266_s25] sm:$0xff]  }
  0x13   : > { %1036 = vmatpush3.bf16.xpose.msra.mxu0 %v315_v2  ;;  %v1264_v9 = vrot.slane %v293_v7, %v362_v8  ;;  %v1278_v30 = vld [vmem:[%s277_s7] sm:$0xff]  }
  0x14   : > { %1053 = vmatprep.subr.bf16.mxu0 %v1189_v0  ;;  %1042 = vmatpush3.bf16.msra.mxu1 %v1278_v30 }
  0x15   : > { %1047 = vmatprep.subr.bf16.mxu1 %v1189_v0 }
  0x1a   : > { %1038 = vmatmul.mubr.msk.bf16.vlgmr.msra.gmra.mrb[0].mxu0 %vm310_vm1, %v1131_v3 }
  0x1b   : > { %1055 = vmatprep.mubr.msk.bf16.mxu0 %vm1190_vm0, %v1189_v0 }
  0xed   : > { %v351_v10 = vpop.f32.mrb[0].mxu0 }
  0xee   : > { %v358_v11 = vmul.f32 0.35355338, %v351_v10  ;;  %v1039_v12 = vpop.f32.mrb[1].mxu0 }
  0xef   : > { %v354_v13 = vpop.f32.mrb[2].mxu0 }
  0xf0   : > { %v359_v14 = vmul.f32 0.35355338, %v354_v13  ;;  %v1040_v15 = vpop.f32.mrb[3].mxu0  ;;  %v364_v16 = vadd.f32 %v1264_v9, %v358_v11 }
  0xf2   : > { %v367_v17 = vsel %vm366_vm2, %v364_v16, -inf  ;;  %v365_v18 = vadd.f32 %v1264_v9, %v359_v14 }
  0xf3   : > { %368 = vmax.xlane.f32.xlu0 %v367_v17 }
  0xf4   : > { %v370_v19 = vsel %vm366_vm2, %v365_v18, -inf }
  0xf7   : > { %371 = vmax.xlane.f32.xlu0 %v370_v19 }
 0x10d   : > { %444 = vrot.lane.b32.xlu0 %v1130_v1, %s1191_s29 }
 0x111   : > { %698 = vrot.lane.b32.xlu0 %v1130_v1, %s1192_s30 }
 0x180   : > { %v369_v20 = vpop.xlane.xlu0 %368 }
 0x181   : > { %v373_v21 = vsub.f32 %v364_v16, %v369_v20 }
 0x183   : > { %v375_v22 = vmul.f32 1.442695, %v373_v21 }
 0x184   : > { %v372_v23 = vpop.xlane.xlu0 %371 }
 0x185   : > { %1133 = vpow2.f32 %v375_v22  ;;  %v374_v24 = vsub.f32 %v365_v18, %v372_v23 }
 0x187   : > { %v377_v25 = vmul.f32 1.442695, %v374_v24 }
 0x188   : > { %v445_v35 = vpop.permute.xlu0 %444 }
 0x189   : > { %1135 = vpow2.f32 %v377_v25  ;;  %v450_v39 = vsel %vm310_vm1, %v445_v35, 0 }
 0x18c   : > { %v699_v43 = vpop.permute.xlu0 %698 }
 0x18d   : > { %v704_v45 = vsel %vm310_vm1, %v699_v43, 0 }
 0x18f   : > { %v1134_v26 = vpop.eup %1133 }
 0x190   : > { %v379_v27 = vsel %vm366_vm2, %v1134_v26, 0.0 }
 0x191   : > { %380 = vadd.xlane.f32.xlu1 %v379_v27 }
 0x193   : > { %v1136_v28 = vpop.eup %1135 }
 0x194   : > { %v382_v29 = vsel %vm366_vm2, %v1136_v28, 0.0 }
 0x195   : > { %383 = vadd.xlane.f32.xlu1 %v382_v29 }
 0x1a6   : > { %442 = vrot.lane.b32.xlu1 %v1131_v3, %s1191_s29 }
 0x1aa   : > { %571 = vrot.lane.b32.xlu1 %v1130_v1, %s1193_s8 }
 0x1ae   : > { %569 = vrot.lane.b32.xlu1 %v1131_v3, %s1193_s8 }
 0x1b2   : > { %696 = vrot.lane.b32.xlu1 %v1131_v3, %s1192_s30 }
 0x21e   : > { %v381_v31 = vpop.xlane.xlu1 %380 }
 0x21f   : > { %1137 = vrcp.f32 %v381_v31 }
 0x222   : > { %v384_v32 = vpop.xlane.xlu1 %383 }
 0x223   : > { %1139 = vrcp.f32 %v384_v32 }
 0x226   : > { %v443_v38 = vpop.permute.xlu1 %442 }
 0x229   : > { %v1138_v33 = vpop.eup %1137 }
 0x22a   : > { %v389_v36 = vmul.f32 %v1138_v33, %v1134_v26  ;;  %v572_v41 = vpop.permute.xlu1 %571 }
 0x22b   : > { %v577_v42 = vsel %vm310_vm1, %v572_v41, 0 }
 0x22d   : > { %v1140_v34 = vpop.eup %1139 }
 0x22e   : > { %v390_v37 = vmul.f32 %v1140_v34, %v1136_v28  ;;  %v570_v44 = vpop.permute.xlu1 %569 }
 0x230   : > { %v391_v40 = vpack.c.bf16 %v390_v37, %v389_v36 }
 0x232   : > { %1044 = vmatmul.mubr.msk.bf16.vlgmr.msra.gmra.mrb[0].mxu1 %vm366_vm2, %v391_v40  ;;  %v697_v46 = vpop.permute.xlu1 %696 }
 0x233   : > { %1048 = vmatpush3.bf16.xpose.msra.mxu1 %v450_v39  ;;  %1049 = vmatprep.mubr.msk.bf16.mxu1 %vm1190_vm0, %v1189_v0 }
 0x234   : > { %1059 = vmatprep.subr.bf16.mxu1 %v1189_v0 }
 0x23a   : > { %1050 = vmatmul.mubr.msk.bf16.vlgmr.msra.gmra.mrb[4].mxu1 %vm310_vm1, %v443_v38 }
 0x23b   : > { %1060 = vmatpush3.bf16.xpose.msra.mxu1 %v577_v42  ;;  %1061 = vmatprep.mubr.msk.bf16.mxu1 %vm1190_vm0, %v1189_v0 }
 0x23c   : > { %1071 = vmatprep.subr.bf16.mxu1 %v1189_v0 }
 0x242   : > { %1062 = vmatmul.mubr.msk.bf16.vlgmr.msra.gmra.mrb[8].mxu1 %vm310_vm1, %v570_v44 }
 0x243   : > { %1072 = vmatpush3.bf16.xpose.msra.mxu1 %v704_v45  ;;  %1073 = vmatprep.mubr.msk.bf16.mxu1 %vm1190_vm0, %v1189_v0 }
 0x24a   : > { %1074 = vmatmul.mubr.msk.bf16.vlgmr.msra.gmra.mrb[12].mxu1 %vm310_vm1, %v697_v46 }
 0x305   : > { %v1301_v47 = vpop.f32.mrb[0].mxu1 }
 0x306   : > { %v1045_v48 = vpop.f32.mrb[1].mxu1 }
 0x307   : > { %v1303_v49 = vpop.f32.mrb[2].mxu1 }
 0x308   : > { %v1046_v50 = vpop.f32.mrb[3].mxu1 }
 0x30d   : > { %v486_v51 = vpop.f32.mrb[4].mxu1 }
 0x30e   : > { %v493_v52 = vmul.f32 0.35355338, %v486_v51  ;;  %v1051_v53 = vpop.f32.mrb[5].mxu1 }
 0x30f   : > { %v489_v54 = vpop.f32.mrb[6].mxu1 }
 0x310   : > { %v494_v55 = vmul.f32 0.35355338, %v489_v54  ;;  %v1052_v56 = vpop.f32.mrb[7].mxu1  ;;  %v495_v57 = vadd.f32 %v493_v52, %v1264_v9 }
 0x312   : > { %v497_v58 = vsel %vm366_vm2, %v495_v57, -inf  ;;  %v496_v59 = vadd.f32 %v494_v55, %v1264_v9 }
 0x313   : > { %498 = vmax.xlane.f32.xlu0 %v497_v58 }
 0x314   : > { %v500_v60 = vsel %vm366_vm2, %v496_v59, -inf }
 0x315   : > { %501 = vmax.xlane.f32.xlu1 %v500_v60  ;;  %v613_v61 = vpop.f32.mrb[8].mxu1 }
 0x316   : > { %v620_v62 = vmul.f32 0.35355338, %v613_v61  ;;  %v1063_v63 = vpop.f32.mrb[9].mxu1 }
 0x317   : > { %v616_v1 = vpop.f32.mrb[10].mxu1 }
 0x318   : > { %v621_v2 = vmul.f32 0.35355338, %v616_v1  ;;  %v1064_v3 = vpop.f32.mrb[11].mxu1  ;;  %v622_v4 = vadd.f32 %v620_v62, %v1264_v9 }
 0x31a   : > { %v624_v5 = vsel %vm366_vm2, %v622_v4, -inf  ;;  %v623_v6 = vadd.f32 %v621_v2, %v1264_v9 }
 0x31b   : > { %625 = vmax.xlane.f32.xlu0 %v624_v5 }
 0x31c   : > { %v627_v11 = vsel %vm366_vm2, %v623_v6, -inf }
 0x31d   : > { %v740_v7 = vpop.f32.mrb[12].mxu1 }
 0x31e   : > { %v747_v8 = vmul.f32 0.35355338, %v740_v7  ;;  %v1075_v10 = vpop.f32.mrb[13].mxu1 }
 0x31f   : > { %628 = vmax.xlane.f32.xlu0 %v627_v11  ;;  %v743_v12 = vpop.f32.mrb[14].mxu1 }
 0x320   : > { %v748_v13 = vmul.f32 0.35355338, %v743_v12  ;;  %v749_v14 = vadd.f32 %v747_v8, %v1264_v9  ;;  %v1076_v15 = vpop.f32.mrb[15].mxu1 }
 0x322   : > { %v751_v16 = vsel %vm366_vm2, %v749_v14, -inf  ;;  %v750_v17 = vadd.f32 %v748_v13, %v1264_v9 }
 0x323   : > { %752 = vmax.xlane.f32.xlu0 %v751_v16 }
 0x324   : > { %v754_v18 = vsel %vm366_vm2, %v750_v17, -inf }
 0x325   : > { %755 = vmax.xlane.f32.xlu1 %v754_v18 }
 0x3a0   : > { %v499_v19 = vpop.xlane.xlu0 %498 }
 0x3a1   : > { %v503_v20 = vsub.f32 %v495_v57, %v499_v19 }
 0x3a2   : > { %v502_v21 = vpop.xlane.xlu1 %501 }
 0x3a3   : > { %v505_v22 = vmul.f32 1.442695, %v503_v20  ;;  %v504_v23 = vsub.f32 %v496_v59, %v502_v21 }
 0x3a5   : > { %1141 = vpow2.f32 %v505_v22  ;;  %v507_v24 = vmul.f32 1.442695, %v504_v23 }
 0x3a7   : > { %1143 = vpow2.f32 %v507_v24 }
 0x3a8   : > { %v626_v25 = vpop.xlane.xlu0 %625 }
 0x3a9   : > { %v630_v26 = vsub.f32 %v622_v4, %v626_v25 }
 0x3ab   : > { %v632_v27 = vmul.f32 1.442695, %v630_v26 }
 0x3ac   : > { %v629_v28 = vpop.xlane.xlu0 %628 }
 0x3ad   : > { %1145 = vpow2.f32 %v632_v27  ;;  %v631_v29 = vsub.f32 %v623_v6, %v629_v28 }
 0x3af   : > { %v1142_v31 = vpop.eup %1141  ;;  %v634_v9 = vmul.f32 1.442695, %v631_v29 }
 0x3b0   : > { %v753_v32 = vpop.xlane.xlu0 %752  ;;  %v509_v33 = vsel %vm366_vm2, %v1142_v31, 0.0 }
 0x3b1   : > { %v1144_v34 = vpop.eup %1143  ;;  %1147 = vpow2.f32 %v634_v9  ;;  %v757_v35 = vsub.f32 %v749_v14, %v753_v32  ;;  %510 = vadd.xlane.f32.xlu0 %v509_v33 }
 0x3b2   : > { %v512_v36 = vsel %vm366_vm2, %v1144_v34, 0.0  ;;  %v756_v44 = vpop.xlane.xlu1 %755 }
 0x3b3   : > { %v759_v37 = vmul.f32 1.442695, %v757_v35  ;;  %513 = vadd.xlane.f32.xlu1 %v512_v36  ;;  %v758_v45 = vsub.f32 %v750_v17, %v756_v44 }
 0x3b5   : > { %1149 = vpow2.f32 %v759_v37  ;;  %v761_v46 = vmul.f32 1.442695, %v758_v45 }
 0x3b7   : > { %v1146_v38 = vpop.eup %1145  ;;  %1151 = vpow2.f32 %v761_v46 }
 0x3b8   : > { %v636_v39 = vsel %vm366_vm2, %v1146_v38, 0.0 }
 0x3b9   : > { %637 = vadd.xlane.f32.xlu0 %v636_v39 }
 0x3bb   : > { %v1148_v40 = vpop.eup %1147 }
 0x3bc   : > { %v639_v41 = vsel %vm366_vm2, %v1148_v40, 0.0 }
 0x3bd   : > { %640 = vadd.xlane.f32.xlu1 %v639_v41 }
 0x3bf   : > { %v1150_v42 = vpop.eup %1149 }
 0x3c0   : > { %v763_v43 = vsel %vm366_vm2, %v1150_v42, 0.0 }
 0x3c1   : > { %764 = vadd.xlane.f32.xlu0 %v763_v43  ;;  %v1152_v48 = vpop.eup %1151 }
 0x3c2   : > { %v766_v50 = vsel %vm366_vm2, %v1152_v48, 0.0 }
 0x3ce   : > { %649 = vrot.lane.b32.xlu1 %v1278_v30, %s1193_s8 }
 0x3d7   : > { %522 = vrot.lane.b32.xlu0 %v1278_v30, %s1191_s29 }
 0x3f2   : > { %767 = vadd.xlane.f32.xlu1 %v766_v50 }
 0x403   : > { %776 = vrot.lane.b32.xlu1 %v1278_v30, %s1192_s30 }
 0x43e   : > { %v511_v52 = vpop.xlane.xlu0 %510 }
 0x440   : > { %v514_v51 = vpop.xlane.xlu1 %513 }
 0x441   : > { %1153 = vrcp.f32 %v514_v51 }
 0x442   : > { %1155 = vrcp.f32 %v511_v52 }
 0x446   : > { %v638_v53 = vpop.xlane.xlu0 %637 }
 0x44a   : > { %v641_v54 = vpop.xlane.xlu1 %640 }
 0x44b   : > { %1157 = vrcp.f32 %v641_v54  ;;  %v1154_v55 = vpop.eup %1153 }
 0x44c   : > { %1159 = vrcp.f32 %v638_v53  ;;  %v1156_v57 = vpop.eup %1155  ;;  %v520_v58 = vmul.f32 %v1154_v55, %v1144_v34 }
 0x44d   : > { %v519_v59 = vmul.f32 %v1156_v57, %v1142_v31 }
 0x44e   : > { %v765_v56 = vpop.xlane.xlu0 %764  ;;  %v650_v30 = vpop.permute.xlu1 %649 }
 0x44f   : > { %v521_v61 = vpack.c.bf16 %v520_v58, %v519_v59  ;;  %1161 = vrcp.f32 %v765_v56 }
 0x452   : > { %v523_v60 = vpop.permute.xlu0 %522 }
 0x453   : > { %1054 = vmatpush3.bf16.msra.mxu0 %v523_v60 }
 0x454   : > { %1065 = vmatprep.subr.bf16.mxu0 %v1189_v0 }
 0x455   : > { %v1158_v62 = vpop.eup %1157 }
 0x456   : > { %1056 = vmatmul.mubr.msk.bf16.vlgmr.msra.gmra.mrb[4].mxu0 %vm366_vm2, %v521_v61  ;;  %v1160_v63 = vpop.eup %1159  ;;  %v647_v1 = vmul.f32 %v1158_v62, %v1148_v40 }
 0x457   : > { %1066 = vmatpush3.bf16.msra.mxu0 %v650_v30  ;;  %1067 = vmatprep.mubr.msk.bf16.mxu0 %vm1190_vm0, %v1189_v0  ;;  %v646_v2 = vmul.f32 %v1160_v63, %v1146_v38 }
 0x458   : > { %1077 = vmatprep.subr.bf16.mxu0 %v1189_v0 }
 0x459   : > { %v648_v3 = vpack.c.bf16 %v647_v1, %v646_v2  ;;  %v1162_v6 = vpop.eup %1161 }
 0x45a   : > { %v773_v8 = vmul.f32 %v1162_v6, %v1150_v42 }
 0x45e   : > { %1068 = vmatmul.mubr.msk.bf16.vlgmr.msra.gmra.mrb[8].mxu0 %vm366_vm2, %v648_v3 }
 0x45f   : > { %1079 = vmatprep.mubr.msk.bf16.mxu0 %vm1190_vm0, %v1189_v0 }
 0x47f   : > { %v768_v4 = vpop.xlane.xlu1 %767 }
 0x480   : > { %1163 = vrcp.f32 %v768_v4 }
 0x483   : > { %v777_v5 = vpop.permute.xlu1 %776 }
 0x484   : > { %1078 = vmatpush3.bf16.msra.mxu0 %v777_v5 }
 0x48a   : > { %v1164_v7 = vpop.eup %1163 }
 0x48b   : > { %v774_v10 = vmul.f32 %v1164_v7, %v1152_v48 }
 0x48d   : > { %v775_v11 = vpack.c.bf16 %v774_v10, %v773_v8 }
 0x48f   : > { %1080 = vmatmul.mubr.msk.bf16.vlgmr.msra.gmra.mrb[12].mxu0 %vm366_vm2, %v775_v11 }
 0x529   : > { %v562_v12 = vpop.f32.mrb[4].mxu0 }
 0x52a   : > { %v1057_v13 = vpop.f32.mrb[5].mxu0 }
 0x52b   : > { %v565_v14 = vpop.f32.mrb[6].mxu0 }
 0x52c   : > { %v1115_v15 = vpack.i.bf16 %v565_v14, %v562_v12  ;;  %v1058_v16 = vpop.f32.mrb[7].mxu0 }
 0x52e   : > { %1116 = vrot.lane.b32.xlu1 %v1115_v15, %s1194_s9 }
 0x531   : > { %v689_v0 = vpop.f32.mrb[8].mxu0 }
 0x532   : > { %v1069_v17 = vpop.f32.mrb[9].mxu0 }
 0x533   : > { %v692_v18 = vpop.f32.mrb[10].mxu0 }
 0x534   : > { %v1120_v19 = vpack.i.bf16 %v692_v18, %v689_v0  ;;  %v1070_v20 = vpop.f32.mrb[11].mxu0 }
 0x536   : > { %1121 = vrot.lane.b32.xlu0 %v1120_v19, %s1195_s10 }
 0x562   : > { %v816_v21 = vpop.f32.mrb[12].mxu0 }
 0x563   : > { %v1081_v22 = vpop.f32.mrb[13].mxu0 }
 0x564   : > { %v819_v23 = vpop.f32.mrb[14].mxu0 }
 0x565   : > { %v1125_v24 = vpack.i.bf16 %v819_v23, %v816_v21  ;;  %v1082_v25 = vpop.f32.mrb[15].mxu0 }
 0x567   : > { %1126 = vrot.lane.b32.xlu1 %v1125_v24, %s1196_s11 }
 0x5a0   : > { %v1117_v26 = vpop.permute.xlu1 %1116 }
 0x5a1   : > { %v1119_v28 = vunpack.i.h.bf16 %v1117_v26  ;;  %v1118_v29 = vunpack.i.l.bf16 %v1117_v26 }
 0x5a3   : > { %v848_v33 = vsel %vm310_vm1, %v1303_v49, %v1119_v28  ;;  %v847_v34 = vsel %vm310_vm1, %v1301_v47, %v1118_v29 }
 0x5a8   : > { %v1122_v27 = vpop.permute.xlu0 %1121 }
 0x5a9   : > { %v1124_v31 = vunpack.i.h.bf16 %v1122_v27  ;;  %v1123_v9 = vunpack.i.l.bf16 %v1122_v27 }
 0x5ab   : > { %v850_v37 = vsel %vm366_vm2, %v848_v33, %v1124_v31  ;;  %v849_v38 = vsel %vm366_vm2, %v847_v34, %v1123_v9 }
 0x5d9   : > { %v1127_v32 = vpop.permute.xlu1 %1126 }
 0x5da   : > { %v1129_v35 = vunpack.i.h.bf16 %v1127_v32  ;;  %v1128_v36 = vunpack.i.l.bf16 %v1127_v32 }
 0x5dc   : > { %v853_v39 = vsel %vm851_vm3, %v850_v37, %v1129_v35  ;;  %v852_v40 = vsel %vm851_vm3, %v849_v38, %v1128_v36 }
 0x5dd   : > { %v1018_v41 = vpack.c.bf16 %v853_v39, %v853_v39  ;;  %v1017_v42 = vpack.c.bf16 %v852_v40, %v852_v40 }
 0x5df   : > { %864 = vst.msk [vmem:[%s289_s14 + $0x4] sm:$0xf] %vm862_vm4, %v1018_v41  ;;  %863 = vst.msk [vmem:[%s289_s14] sm:$0xf] %vm862_vm4, %v1017_v42 }
 0x5e0 PF: > { %s14_s17 = sadd.s32 1, %s1187_s17   ;;  %s1362_s15 = smov %s1183_s16 }
 0x5e1   : > { %p11_p5 = scmp.ge.s32.totalorder %s14_s17, 4   ;;  %s1363_s16 = smov %s1365_s18 }
 0x5e3   :  { %13 = sbr.rel (!%p11_p5) target bundleno = 2 (0x2), region = 75 }

// kernel: conditional_decoder_forward.44
= control target key start
LH: loop header
LB: loop body
LE: loop exit
PB: predicated region body
PF: predicated region fallthrough
CT: control target
= control target key end

     0   :  { %vm54_vm0 = vcmask 261120   ;;  %v28_v4 = vlaneseq  ;;  %vm138_vm1 = vcmask 257024   ;;  %s244_s1 = inlined_call_operand.vmem [shape: bf16[32,32], index: 1, kind: input, shape index: {}]   ;;  %s245_s0 = inlined_call_operand.vmem [shape: bf16[32,32], index: 0, kind: input, shape index: {}]   ;;  %s246_s2 = inlined_call_operand.vmem [shape: bf16[1,32], index: 2, kind: input, shape index: {}]   ;;  %s247_s3 = inlined_call_operand.vmem [shape: bf16[32,32], index: 3, kind: input, shape index: {}]   ;;  %s248_s4 = inlined_call_operand.vmem [shape: bf16[32,32], index: 4, kind: output, shape index: {}]  }
   0x1   :  { %v182_v0 = vld [vmem:[%s244_s1] sm:$0xff]   ;;  %v183_v1 = vld [vmem:[%s244_s1 + $0x8] sm:$0xff]  }
   0x2   :  { %174 = vmatprep.subr.bf16.mxu0 %v182_v0  ;;  %v184_v2 = vld [vmem:[%s245_s0] sm:$0xff]   ;;  %v185_v3 = vld [vmem:[%s245_s0 + $0x8] sm:$0xff]   ;;  %v29_v5 = vshrl.u32 %v28_v4, 7 }
   0x3   :  { %175 = vmatpush3.bf16.msra.mxu0 %v182_v0  ;;  %178 = vmatprep.mubr.msk.bf16.mxu0 %vm54_vm0, %v184_v2  ;;  %v26_v6 = vld [vmem:[%s246_s2] sm:$0x1]  ;;  %v169_v9 = vld [vmem:[%s247_s3 + $0x8] sm:$0xff]  }
   0x4   :  { %176 = vmatprep.subr.bf16.mxu0 %v183_v1  ;;  %v27_v7 = vunpack.c.l.bf16 %v26_v6  ;;  %v30_v8 = vsub.s32 0, %v29_v5  ;;  %v162_v11 = vld [vmem:[%s247_s3] sm:$0xff]   ;;  %v167_v12 = vunpack.c.l.bf16 %v169_v9  ;;  %v168_v17 = vunpack.c.h.bf16 %v169_v9 }
   0x5   :  { %v163_v14 = vunpack.c.l.bf16 %v162_v11  ;;  %v164_v20 = vunpack.c.h.bf16 %v162_v11 }
   0x6   :  { %v31_v10 = vrot.slane %v27_v7, %v30_v8 }
   0x7   :  { %177 = vmatpush3.bf16.msra.mxu0 %v183_v1 }
   0xa   :  { %179 = vmatmul.mubr.msk.bf16.vlgmr.msra.gmra.mrb[0].mxu0 %vm54_vm0, %v185_v3 }
  0xdd   :  { %v180_v13 = vpop.f32.mrb[0].mxu0 }
  0xde   :  { %v104_v15 = vadd.f32 %v180_v13, %v31_v10  ;;  %v95_v16 = vpop.f32.mrb[1].mxu0 }
  0xdf   :  { %v96_v18 = vadd.f32 %v95_v16, %v31_v10  ;;  %v181_v19 = vpop.f32.mrb[2].mxu0 }
  0xe0   :  { %v120_v21 = vadd.f32 %v167_v12, %v104_v15  ;;  %v107_v22 = vadd.f32 %v181_v19, %v31_v10  ;;  %v98_v23 = vpop.f32.mrb[3].mxu0 }
  0xe1   :  { %v118_v24 = vadd.f32 %v163_v14, %v96_v18  ;;  %v99_v25 = vadd.f32 %v98_v23, %v31_v10 }
  0xe2   :  { %v159_v26 = vpack.c.bf16 %v120_v21, %v120_v21  ;;  %v121_v27 = vadd.f32 %v168_v17, %v107_v22 }
  0xe3   :  { %v157_v28 = vpack.c.bf16 %v118_v24, %v118_v24  ;;  %v119_v29 = vadd.f32 %v164_v20, %v99_v25 }
  0xe4   :  { %141 = vst.msk [vmem:[%s248_s4 + $0x8] sm:$0xf] %vm138_vm1, %v159_v26  ;;  %v160_v30 = vpack.c.bf16 %v121_v27, %v121_v27 }
  0xe5   :  { %139 = vst.msk [vmem:[%s248_s4] sm:$0xf] %vm138_vm1, %v157_v28  ;;  %v158_v31 = vpack.c.bf16 %v119_v29, %v119_v29 }
  0xe6   :  { %142 = vst.msk [vmem:[%s248_s4 + $0xc] sm:$0xf] %vm138_vm1, %v160_v30 }
  0xe7   :  { %140 = vst.msk [vmem:[%s248_s4 + $0x4] sm:$0xf] %vm138_vm1, %v158_v31 }

// kernel: conditional_decoder_forward.45
= control target key start
LH: loop header
LB: loop body
LE: loop exit
PB: predicated region body
PF: predicated region fallthrough
CT: control target
= control target key end

     0   :  { %vm33_vm0 = vcmask 261120   ;;  %v87_v37 = vlaneseq  ;;  %s371_s0 = inlined_call_operand.vmem [shape: bf16[32,32], index: 0, kind: input, shape index: {}]   ;;  %s372_s3 = inlined_call_operand.vmem [shape: bf16[32,128], index: 3, kind: input, shape index: {}]   ;;  %s373_s1 = inlined_call_operand.vmem [shape: bf16[1,32], index: 1, kind: input, shape index: {}]   ;;  %s374_s2 = inlined_call_operand.vmem [shape: bf16[1,32], index: 2, kind: input, shape index: {}]   ;;  %s375_s4 = inlined_call_operand.vmem [shape: bf16[1,128], index: 4, kind: input, shape index: {}]   ;;  %s376_s5 = inlined_call_operand.vmem [shape: bf16[32,128], index: 5, kind: output, shape index: {}]  }
   0x1   :  { %v255_v0 = vld [vmem:[%s371_s0] sm:$0xff]   ;;  %v272_v1 = vld [vmem:[%s371_s0 + $0x8] sm:$0xff]  }
   0x2   :  { %v256_v2 = vunpack.c.l.bf16 %v255_v0  ;;  %v260_v3 = vunpack.c.l.bf16 %v272_v1  ;;  %v257_v4 = vunpack.c.h.bf16 %v255_v0  ;;  %v261_v5 = vunpack.c.h.bf16 %v272_v1  ;;  %v286_v30 = vld [vmem:[%s372_s3] sm:$0xff]   ;;  %v287_v31 = vld [vmem:[%s372_s3 + $0x8] sm:$0xff]  }
   0x3   :  { %278 = vmatprep.subr.bf16.mxu0 %v286_v30  ;;  %v88_v43 = vshrl.u32 %v87_v37, 7  ;;  %v29_v45 = vld [vmem:[%s373_s1] sm:$0x1] }
   0x4   :  { %v34_v6 = vsel %vm33_vm0, %v256_v2, 0.0  ;;  %v40_v7 = vsel %vm33_vm0, %v260_v3, 0.0  ;;  %v37_v8 = vsel %vm33_vm0, %v257_v4, 0.0  ;;  %v43_v9 = vsel %vm33_vm0, %v261_v5, 0.0  ;;  %279 = vmatpush3.bf16.msra.mxu0 %v286_v30  ;;  %v31_v49 = vld [vmem:[%s374_s2] sm:$0x1] }
   0x5   :  { %35 = vadd.xlane.f32.xlu0 %v34_v6  ;;  %41 = vadd.xlane.f32.xlu1 %v40_v7  ;;  %v30_v47 = vunpack.c.l.bf16 %v29_v45  ;;  %v89_v48 = vsub.s32 0, %v88_v43  ;;  %v32_v51 = vunpack.c.l.bf16 %v31_v49  ;;  %v109_v7 = vld [vmem:[%s375_s4] sm:$0x1] }
   0x6   :  { %280 = vmatprep.subr.bf16.mxu0 %v287_v31 }
   0x7   :  { %v90_v53 = vrot.slane %v30_v47, %v89_v48  ;;  %v98_v58 = vrot.slane %v32_v51, %v89_v48 }
   0x8   :  { %281 = vmatpush3.bf16.msra.mxu0 %v287_v31 }
   0x9   :  { %38 = vadd.xlane.f32.xlu0 %v37_v8  ;;  %44 = vadd.xlane.f32.xlu1 %v43_v9  ;;  %v110_v8 = vunpack.c.l.bf16 %v109_v7 }
   0xb   :  { %v114_v9 = vrot.slane %v110_v8, %v89_v48 }
  0x92   :  { %v36_v10 = vpop.xlane.xlu0 %35  ;;  %v42_v11 = vpop.xlane.xlu1 %41 }
  0x93   :  { %v47_v12 = vmul.f32 0.03125, %v36_v10  ;;  %v49_v13 = vmul.f32 0.03125, %v42_v11 }
  0x95   :  { %v51_v14 = vsub.f32 %v256_v2, %v47_v12  ;;  %v53_v15 = vsub.f32 %v260_v3, %v49_v13 }
  0x96   :  { %v39_v16 = vpop.xlane.xlu0 %38  ;;  %v45_v17 = vpop.xlane.xlu1 %44 }
  0x97   :  { %v48_v18 = vmul.f32 0.03125, %v39_v16  ;;  %v50_v19 = vmul.f32 0.03125, %v45_v17  ;;  %v55_v20 = vmul.f32 %v51_v14, %v51_v14  ;;  %v57_v21 = vmul.f32 %v53_v15, %v53_v15 }
  0x99   :  { %v52_v22 = vsub.f32 %v257_v4, %v48_v18  ;;  %v54_v23 = vsub.f32 %v261_v5, %v50_v19  ;;  %v59_v24 = vsel %vm33_vm0, %v55_v20, 0.0  ;;  %v65_v25 = vsel %vm33_vm0, %v57_v21, 0.0 }
  0x9a   :  { %60 = vadd.xlane.f32.xlu0 %v59_v24 }
  0x9b   :  { %v56_v26 = vmul.f32 %v52_v22, %v52_v22  ;;  %v58_v27 = vmul.f32 %v54_v23, %v54_v23 }
  0x9d   :  { %v62_v28 = vsel %vm33_vm0, %v56_v26, 0.0  ;;  %v68_v29 = vsel %vm33_vm0, %v58_v27, 0.0 }
  0x9e   :  { %66 = vadd.xlane.f32.xlu0 %v65_v25  ;;  %63 = vadd.xlane.f32.xlu1 %v62_v28 }
  0xa2   :  { %69 = vadd.xlane.f32.xlu1 %v68_v29 }
 0x127   :  { %v61_v32 = vpop.xlane.xlu0 %60 }
 0x128   :  { %v71_v33 = vmul.f32 0.03125, %v61_v32 }
 0x12a   :  { %v75_v34 = vadd.f32 1e-05, %v71_v33 }
 0x12b   :  { %v64_v35 = vpop.xlane.xlu1 %63  ;;  %v67_v36 = vpop.xlane.xlu0 %66 }
 0x12c   :  { %288 = vrsqrt.f32 %v75_v34  ;;  %v72_v38 = vmul.f32 0.03125, %v64_v35  ;;  %v73_v39 = vmul.f32 0.03125, %v67_v36 }
 0x12e   :  { %v76_v40 = vadd.f32 1e-05, %v72_v38  ;;  %v77_v41 = vadd.f32 1e-05, %v73_v39 }
 0x12f   :  { %v70_v42 = vpop.xlane.xlu1 %69 }
 0x130   :  { %290 = vrsqrt.f32 %v76_v40  ;;  %v74_v44 = vmul.f32 0.03125, %v70_v42 }
 0x131   :  { %292 = vrsqrt.f32 %v77_v41 }
 0x132   :  { %v78_v46 = vadd.f32 1e-05, %v74_v44 }
 0x134   :  { %294 = vrsqrt.f32 %v78_v46 }
 0x136   :  { %v289_v50 = vpop.eup %288 }
 0x137   :  { %v83_v52 = vmul.f32 %v289_v50, %v51_v14 }
 0x139   :  { %v91_v57 = vmul.f32 %v90_v53, %v83_v52 }
 0x13a   :  { %v291_v54 = vpop.eup %290 }
 0x13b   :  { %v293_v55 = vpop.eup %292  ;;  %v84_v56 = vmul.f32 %v291_v54, %v52_v22  ;;  %v99_v63 = vadd.f32 %v98_v58, %v91_v57 }
 0x13c   :  { %v85_v59 = vmul.f32 %v293_v55, %v53_v15 }
 0x13d   :  { %v92_v60 = vmul.f32 %v90_v53, %v84_v56 }
 0x13e   :  { %v295_v61 = vpop.eup %294  ;;  %v93_v1 = vmul.f32 %v90_v53, %v85_v59 }
 0x13f   :  { %v86_v62 = vmul.f32 %v295_v61, %v54_v23  ;;  %v100_v0 = vadd.f32 %v98_v58, %v92_v60 }
 0x140   :  { %v101_v4 = vadd.f32 %v98_v58, %v93_v1 }
 0x141   :  { %v103_v2 = vpack.c.bf16 %v100_v0, %v99_v63  ;;  %v94_v3 = vmul.f32 %v90_v53, %v86_v62 }
 0x143   :  { %282 = vmatprep.mubr.msk.bf16.mxu0 %vm33_vm0, %v103_v2  ;;  %v102_v5 = vadd.f32 %v98_v58, %v94_v3 }
 0x145   :  { %v104_v6 = vpack.c.bf16 %v102_v5, %v101_v4 }
 0x147   :  { %283 = vmatmul.mubr.msk.bf16.vlgmr.msra.gmra.mrb[0].mxu0 %vm33_vm0, %v104_v6 }
 0x21a   :  { %v284_v10 = vpop.f32.mrb[0].mxu0 }
 0x21b   :  { %v176_v11 = vadd.f32 %v284_v10, %v114_v9  ;;  %v167_v12 = vpop.f32.mrb[1].mxu0 }
 0x21c   :  { %v168_v13 = vadd.f32 %v167_v12, %v114_v9  ;;  %v285_v14 = vpop.f32.mrb[2].mxu0 }
 0x21d   :  { %v184_v15 = vmul.f32 %v176_v11, %v176_v11  ;;  %v179_v16 = vadd.f32 %v285_v14, %v114_v9  ;;  %v170_v17 = vpop.f32.mrb[3].mxu0 }
 0x21e   :  { %v182_v18 = vmul.f32 %v168_v13, %v168_v13  ;;  %v171_v19 = vadd.f32 %v170_v17, %v114_v9 }
 0x21f   :  { %v188_v20 = vmul.f32 %v184_v15, %v176_v11  ;;  %v185_v21 = vmul.f32 %v179_v16, %v179_v16 }
 0x220   :  { %v186_v22 = vmul.f32 %v182_v18, %v168_v13  ;;  %v183_v23 = vmul.f32 %v171_v19, %v171_v19 }
 0x221   :  { %v192_v24 = vmul.f32 0.044715, %v188_v20  ;;  %v189_v25 = vmul.f32 %v185_v21, %v179_v16 }
 0x222   :  { %v190_v26 = vmul.f32 0.044715, %v186_v22  ;;  %v187_v27 = vmul.f32 %v183_v23, %v171_v19 }
 0x223   :  { %v196_v28 = vadd.f32 %v192_v24, %v176_v11  ;;  %v193_v29 = vmul.f32 0.044715, %v189_v25 }
 0x224   :  { %v194_v30 = vadd.f32 %v190_v26, %v168_v13  ;;  %v191_v31 = vmul.f32 0.044715, %v187_v27 }
 0x225   :  { %v200_v32 = vmul.f32 0.7978846, %v196_v28  ;;  %v197_v33 = vadd.f32 %v193_v29, %v179_v16 }
 0x226   :  { %v198_v34 = vmul.f32 0.7978846, %v194_v30  ;;  %v195_v35 = vadd.f32 %v191_v31, %v171_v19 }
 0x227   :  { %296 = vtanh.f32 %v200_v32  ;;  %v201_v36 = vmul.f32 0.7978846, %v197_v33 }
 0x228   :  { %298 = vtanh.f32 %v198_v34  ;;  %v199_v37 = vmul.f32 0.7978846, %v195_v35 }
 0x229   :  { %300 = vtanh.f32 %v201_v36 }
 0x22a   :  { %302 = vtanh.f32 %v199_v37 }
 0x231   :  { %v297_v38 = vpop.eup %296 }
 0x232   :  { %v299_v39 = vpop.eup %298  ;;  %v208_v40 = vadd.f32 1.0, %v297_v38 }
 0x233   :  { %v301_v41 = vpop.eup %300  ;;  %v206_v42 = vadd.f32 1.0, %v299_v39 }
 0x234   :  { %v303_v43 = vpop.eup %302  ;;  %v212_v44 = vmul.f32 0.5, %v208_v40  ;;  %v209_v45 = vadd.f32 1.0, %v301_v41 }
 0x235   :  { %v210_v46 = vmul.f32 0.5, %v206_v42  ;;  %v207_v47 = vadd.f32 1.0, %v303_v43 }
 0x236   :  { %v213_v48 = vmul.f32 0.5, %v209_v45  ;;  %v216_v50 = vmul.f32 %v212_v44, %v176_v11 }
 0x237   :  { %v211_v49 = vmul.f32 0.5, %v207_v47  ;;  %v214_v52 = vmul.f32 %v210_v46, %v168_v13 }
 0x238   :  { %v217_v51 = vmul.f32 %v213_v48, %v179_v16 }
 0x239   :  { %v215_v53 = vmul.f32 %v211_v49, %v171_v19 }
 0x23a   :  { %v270_v54 = vpack.c.bf16 %v217_v51, %v216_v50 }
 0x23b   :  { %v265_v55 = vpack.c.bf16 %v215_v53, %v214_v52 }
 0x23c   :  { %273 = vst [vmem:[%s376_s5 + $0x8] sm:$0xff] %v270_v54  }
 0x23d   :  { %266 = vst [vmem:[%s376_s5] sm:$0xff] %v265_v55  }

// kernel: conditional_decoder_forward.46
= control target key start
LH: loop header
LB: loop body
LE: loop exit
PB: predicated region body
PF: predicated region fallthrough
CT: control target
= control target key end

     0   :  { %v40_v10 = vlaneseq  ;;  %vm181_vm0 = vcmask 257024   ;;  %s333_s1 = inlined_call_operand.vmem [shape: bf16[128,32], index: 1, kind: input, shape index: {}]   ;;  %s334_s0 = inlined_call_operand.vmem [shape: bf16[32,128], index: 0, kind: input, shape index: {}]   ;;  %s335_s2 = inlined_call_operand.vmem [shape: bf16[1,32], index: 2, kind: input, shape index: {}]   ;;  %s336_s3 = inlined_call_operand.vmem [shape: bf16[32,32], index: 3, kind: input, shape index: {}]   ;;  %s337_s4 = inlined_call_operand.vmem [shape: bf16[32,32], index: 4, kind: output, shape index: {}]  }
   0x1   :  { %v247_v0 = vld [vmem:[%s333_s1] sm:$0xff]   ;;  %v248_v1 = vld [vmem:[%s333_s1 + $0x8] sm:$0xff]   ;;  %v249_v2 = vld [vmem:[%s333_s1 + $0x10] sm:$0xff]  }
   0x2   :  { %227 = vmatprep.subr.bf16.mxu0 %v247_v0  ;;  %v250_v3 = vld [vmem:[%s333_s1 + $0x18] sm:$0xff]   ;;  %v255_v4 = vld [vmem:[%s334_s0] sm:$0xff]   ;;  %v252_v6 = vld [vmem:[%s333_s1 + $0x28] sm:$0xff]   ;;  %v41_v11 = vshrl.u32 %v40_v10, 7 }
   0x3   :  { %228 = vmatpush3.bf16.msra.mxu0 %v247_v0  ;;  %243 = vmatprep.mubr.bf16.mxu0 %v255_v4  ;;  %v251_v5 = vld [vmem:[%s333_s1 + $0x20] sm:$0xff]   ;;  %v253_v7 = vld [vmem:[%s333_s1 + $0x30] sm:$0xff]   ;;  %v254_v8 = vld [vmem:[%s333_s1 + $0x38] sm:$0xff]  }
   0x4   :  { %229 = vmatprep.subr.bf16.mxu0 %v248_v1  ;;  %v256_v9 = vld [vmem:[%s334_s0 + $0x8] sm:$0xff]   ;;  %v38_v12 = vld [vmem:[%s335_s2] sm:$0x1]  ;;  %v42_v14 = vsub.s32 0, %v41_v11 }
   0x5   :  { %v39_v13 = vunpack.c.l.bf16 %v38_v12  ;;  %v216_v15 = vld [vmem:[%s336_s3 + $0x8] sm:$0xff]   ;;  %v209_v17 = vld [vmem:[%s336_s3] sm:$0xff]  }
   0x6   :  { %v214_v18 = vunpack.c.l.bf16 %v216_v15  ;;  %v210_v20 = vunpack.c.l.bf16 %v209_v17  ;;  %v215_v23 = vunpack.c.h.bf16 %v216_v15  ;;  %v211_v26 = vunpack.c.h.bf16 %v209_v17 }
   0x7   :  { %230 = vmatpush3.bf16.msra.mxu0 %v248_v1  ;;  %v43_v16 = vrot.slane %v39_v13, %v42_v14 }
   0x8   :  { %231 = vmatprep.subr.bf16.mxu0 %v249_v2 }
   0xb   :  { %232 = vmatpush3.bf16.msra.mxu0 %v249_v2 }
   0xc   :  { %233 = vmatprep.subr.bf16.mxu0 %v250_v3 }
   0xf   :  { %234 = vmatpush3.bf16.msra.mxu0 %v250_v3 }
  0x10   :  { %235 = vmatprep.subr.bf16.mxu0 %v251_v5 }
  0x13   :  { %236 = vmatpush3.bf16.msra.mxu0 %v251_v5 }
  0x14   :  { %237 = vmatprep.subr.bf16.mxu0 %v252_v6 }
  0x17   :  { %238 = vmatpush3.bf16.msra.mxu0 %v252_v6 }
  0x18   :  { %239 = vmatprep.subr.bf16.mxu0 %v253_v7 }
  0x1b   :  { %240 = vmatpush3.bf16.msra.mxu0 %v253_v7 }
  0x1c   :  { %241 = vmatprep.subr.bf16.mxu0 %v254_v8 }
  0x1f   :  { %242 = vmatpush3.bf16.msra.mxu0 %v254_v8 }
  0x22   :  { %244 = vmatmul.mubr.bf16.vlgmr.msra.gmra.mrb[0].mxu0 %v256_v9 }
  0xf5   :  { %v245_v19 = vpop.f32.mrb[0].mxu0 }
  0xf6   :  { %v147_v21 = vadd.f32 %v245_v19, %v43_v16  ;;  %v138_v22 = vpop.f32.mrb[1].mxu0 }
  0xf7   :  { %v139_v24 = vadd.f32 %v138_v22, %v43_v16  ;;  %v246_v25 = vpop.f32.mrb[2].mxu0 }
  0xf8   :  { %v163_v27 = vadd.f32 %v214_v18, %v147_v21  ;;  %v150_v28 = vadd.f32 %v246_v25, %v43_v16  ;;  %v141_v29 = vpop.f32.mrb[3].mxu0 }
  0xf9   :  { %v161_v30 = vadd.f32 %v210_v20, %v139_v24  ;;  %v142_v31 = vadd.f32 %v141_v29, %v43_v16 }
  0xfa   :  { %v206_v32 = vpack.c.bf16 %v163_v27, %v163_v27  ;;  %v164_v33 = vadd.f32 %v215_v23, %v150_v28 }
  0xfb   :  { %v204_v34 = vpack.c.bf16 %v161_v30, %v161_v30  ;;  %v162_v35 = vadd.f32 %v211_v26, %v142_v31 }
  0xfc   :  { %184 = vst.msk [vmem:[%s337_s4 + $0x8] sm:$0xf] %vm181_vm0, %v206_v32  ;;  %v207_v36 = vpack.c.bf16 %v164_v33, %v164_v33 }
  0xfd   :  { %182 = vst.msk [vmem:[%s337_s4] sm:$0xf] %vm181_vm0, %v204_v34  ;;  %v205_v37 = vpack.c.bf16 %v162_v35, %v162_v35 }
  0xfe   :  { %185 = vst.msk [vmem:[%s337_s4 + $0xc] sm:$0xf] %vm181_vm0, %v207_v36 }
  0xff   :  { %183 = vst.msk [vmem:[%s337_s4 + $0x4] sm:$0xf] %vm181_vm0, %v205_v37 }

// kernel: conditional_decoder_forward.47
= control target key start
LH: loop header
LB: loop body
LE: loop exit
PB: predicated region body
PF: predicated region fallthrough
CT: control target
= control target key end

     0   :  { %s695_s15 = smov 0   ;;  %s752_s0 = inlined_call_operand.vmem [shape: bf16[2,16,32], index: 0, kind: input, shape index: {}]   ;;  %s753_s1 = inlined_call_operand.vmem [shape: bf16[2,16,1], index: 1, kind: input, shape index: {}]   ;;  %s754_s2 = inlined_call_operand.vmem [shape: bf16[3,32,32], index: 2, kind: input, shape index: {}]   ;;  %s755_s3 = inlined_call_operand.vmem [shape: bf16[1,32], index: 3, kind: input, shape index: {}]   ;;  %s756_s4 = inlined_call_operand.vmem [shape: bf16[2,16,32], index: 4, kind: output, shape index: {}]  }
   0x1 LB: > { %s561_s16 = sadd.s32 4294967295, %s664_s15   ;;  %p565_p0 = scmp.ge.s32.totalorder %s664_s15, 1  ;;  %s664_s15 = sphi %s695_s15, %s14_s15  }
   0x2   : > { %p172_p1 = scmp.lt.s32.totalorder %s664_s15, 3 }
   0x4   : > { %p173_p2 = pnand %p565_p0, %p172_p1 }
   0x5   : > { %vm249_vm0 = vcmask (!%p173_p2), 257024   ;;  %p203_p3 = scmp.lt.s32.totalorder (!%p173_p2), %s561_s16, 1  ;;  %v666_v0 = vmov (!%p173_p2), 0   ;;  %v648_v3 = vld [vmem:[%s754_s2] sm:$0xff] (!%p173_p2)   ;;  %v649_v4 = vld [vmem:[%s754_s2 + $0x10] sm:$0xff] (!%p173_p2)   ;;  %v667_v5 = vmov (!%p173_p2), 0.0   ;;  %v231_v10 = vlaneseq (!%p173_p2) }
   0x6   : > { %176 = sbr.rel (%p173_p2) target bundleno = 400 (0x190), region = 36  ;;  %647 = vset.pattern.permute.xlu0 (!%p173_p2), %v666_v0  ;;  %250 = vst.msk [vmem:[#allocation2] sm:$0xf] (!%p173_p2), %vm249_vm0, %v666_v0  ;;  %619 = vmatprep.subr.bf16.mxu1 (!%p173_p2), %v667_v5  ;;  %v650_v6 = vld [vmem:[%s754_s2 + $0x8] sm:$0xff] (!%p173_p2)   ;;  %v651_v7 = vld [vmem:[%s754_s2 + $0x18] sm:$0xff] (!%p173_p2)   ;;  %vm668_vm1 = vmmov (!%p173_p2), 0  }
   0x7   : > { %611 = vmatprep.subr.bf16.mxu0 (!%p173_p2), %v667_v5  ;;  %620 = vmatpush3.bf16.msra.mxu1 (!%p173_p2), %v648_v3  ;;  %v669_v8 = vmov (!%p173_p2), 839922192   ;;  %v232_v12 = vshrl.u32 (!%p173_p2), %v231_v10, 7  ;;  %vm352_vm2 = vcmask (!%p173_p2), 1044480   ;;  %vm304_vm3 = vcmask (!%p173_p2), 261120   ;;  %v655_v41 = vld [vmem:[%s754_s2 + $0x20] sm:$0xff] (!%p173_p2)  }
   0x8   : > { %612 = vmatpush3.bf16.msra.mxu0 (!%p173_p2), %v649_v4  ;;  %621 = vmatprep.subr.bf16.mxu1 (!%p173_p2), %v667_v5  ;;  %v229_v9 = vunpack.c.l.s4 (!%p173_p2), %v669_v8  ;;  %vm274_vm4 = vsmask.f32 (!%p173_p2), 4352  ;;  %v656_v43 = vld [vmem:[%s754_s2 + $0x28] sm:$0xff] (!%p173_p2)   ;;  %v476_v50 = vld [vmem:[%s755_s3] sm:$0x1] (!%p173_p2) }
   0x9   : > { %613 = vmatprep.subr.bf16.mxu0 (!%p173_p2), %v667_v5  ;;  %623 = vmatprep.mubr.msk.bf16.mxu1 (!%p173_p2), %vm668_vm1, %v667_v5  ;;  %v477_v56 = vunpack.c.l.bf16 (!%p173_p2), %v476_v50  ;;  %v480_v57 = vsub.s32 (!%p173_p2), 0, %v232_v12 }
   0xa   : > { %615 = vmatprep.mubr.msk.bf16.mxu0 (!%p173_p2), %vm668_vm1, %v667_v5  ;;  %v230_v11 = vunpack.c.0.s8 (!%p173_p2), %v229_v9 }
   0xb   : > { %622 = vmatpush3.bf16.msra.mxu1 (!%p173_p2), %v650_v6  ;;  %v481_v58 = vrot.slane (!%p173_p2), %v477_v56, %v480_v57 }
   0xc   : > { %614 = vmatpush3.bf16.msra.mxu0 (!%p173_p2), %v651_v7  ;;  %v233_v13 = vsub.s32 (!%p173_p2), %v230_v11, %v232_v12 }
   0xd   : > { %s758_s16 = smov (!%p203_p3, %s561_s16), 1  ;;  %627 = vmatprep.subr.bf16.mxu0 %v667_v5  ;;  %v253_v22 = vld [vmem:[#allocation2] sm:$0x8] }
   0xe   : > { %s704_s17 = sshll.u32 %s758_s16, 3 }
   0xf   : > { %s212_s20 = scalar_lea.vmem %s753_s1, %s704_s17  ;;  %s207_s5 = scalar_lea.vmem %s752_s0, %s704_s17 }
  0x10   : > { %v221_v1 = vld [vmem:[%s212_s20] sm:$0xf]  ;;  %v222_v2 = vld [vmem:[%s212_s20 + $0x4] sm:$0xf]  ;;  %s217_s14 = scalar_lea.vmem %s756_s4, %s704_s17 }
  0x11   : > { %225 = vperm.xlu0 %647, %v221_v1   ;;  %v219_v15 = vld [vmem:[%s207_s5] sm:$0xf]  ;;  %v220_v19 = vld [vmem:[%s207_s5 + $0x4] sm:$0xf] }
  0x15   : > { %237 = vperm.xlu0 %647, %v222_v2  }
  0x90   : > { %v226_v14 = vpop.permute.xlu0 %225 }
  0x91   : > { %v234_v16 = vrot.slane %v226_v14, %v233_v13 }
  0x93   : > { %v247_v17 = vmul.bf16 %v234_v16, %v219_v15 }
  0x94   : > { %v238_v18 = vpop.permute.xlu0 %237 }
  0x95   : > { %251 = vst.msk [vmem:[#allocation2 + $0x4] sm:$0xf] %vm249_vm0, %v247_v17  ;;  %v246_v20 = vrot.slane %v238_v18, %v233_v13 }
  0x97   : > { %v248_v21 = vmul.bf16 %v246_v20, %v220_v19 }
  0x99   : > { %252 = vst.msk [vmem:[#allocation2 + $0x8] sm:$0xf] %vm249_vm0, %v248_v21 }
  0x9c   : > { %v254_v23 = vld [vmem:[#allocation2 + $0x4] sm:$0xf] }
  0x9d   : > { %v576_v24 = vcombine.low %v253_v22, %v254_v23 }
  0x9f   : > { %v276_v25 = vshrl.u32 %v576_v24, 16  ;;  %v279_v27 = vshll.u32 %v576_v24, 16  ;;  %v353_v29 = vrot.slane %v576_v24, 3 }
  0xa0   : > { %v653_v26 = vld [vmem:[#allocation2 + $0x8] ss:$0 sps:$4 sm:$0x77]  }
  0xa1   : > { %v260_v28 = vld [vmem:[#allocation2 + $0x8] sm:$0xf]  ;;  %v354_v30 = vrot.slane %v653_v26, 3  ;;  %v278_v32 = vrot.slane %v276_v25, 3  ;;  %v281_v34 = vrot.slane %v279_v27, 4 }
  0xa2   : > { %v577_v31 = vcombine.low %v260_v28, %v260_v28  ;;  %v589_v44 = vcombine.low %v254_v23, %v260_v28 }
  0xa3   : > { %v355_v33 = vsel %vm352_vm2, %v353_v29, %v354_v30  ;;  %v282_v39 = vor.u32 %v281_v34, %v278_v32 }
  0xa4   : > { %v284_v35 = vshrl.u32 %v577_v31, 16  ;;  %v287_v36 = vshll.u32 %v577_v31, 16  ;;  %624 = vmatmul.mubr.msk.bf16.vlgmr.msra.gmra.mrb[0].mxu1 %vm304_vm3, %v355_v33 }
  0xa6   : > { %v286_v37 = vrot.slane %v284_v35, 3  ;;  %v289_v38 = vrot.slane %v287_v36, 4 }
  0xa8   : > { %v290_v40 = vor.u32 %v289_v38, %v286_v37 }
  0xaa   : > { %v291_v42 = vsel %vm274_vm4, %v282_v39, %v290_v40 }
  0xab   : > { %616 = vmatmul.mubr.msk.bf16.vlgmr.msra.gmra.mrb[0].mxu0 %vm304_vm3, %v291_v42 }
  0xac   : > { %628 = vmatpush3.bf16.msra.mxu0 %v655_v41  ;;  %631 = vmatprep.mubr.msk.bf16.mxu0 %vm668_vm1, %v667_v5 }
  0xad   : > { %629 = vmatprep.subr.bf16.mxu0 %v667_v5 }
  0xb0   : > { %630 = vmatpush3.bf16.msra.mxu0 %v656_v43 }
  0xb3   : > { %632 = vmatmul.mubr.msk.bf16.vlgmr.msra.gmra.mrb[4].mxu0 %vm304_vm3, %v589_v44 }
 0x177   : > { %v405_v45 = vpop.f32.mrb[0].mxu1 }
 0x178   : > { %v625_v46 = vpop.f32.mrb[1].mxu1 }
 0x179   : > { %v408_v47 = vpop.f32.mrb[2].mxu1 }
 0x17a   : > { %v626_v48 = vpop.f32.mrb[3].mxu1 }
 0x17e   : > { %v342_v49 = vpop.f32.mrb[0].mxu0 }
 0x17f   : > { %v406_v51 = vadd.f32 %v405_v45, %v342_v49  ;;  %v617_v52 = vpop.f32.mrb[1].mxu0 }
 0x180   : > { %v345_v53 = vpop.f32.mrb[2].mxu0 }
 0x181   : > { %v409_v54 = vadd.f32 %v408_v47, %v345_v53  ;;  %v618_v55 = vpop.f32.mrb[3].mxu0 }
 0x186   : > { %v467_v59 = vpop.f32.mrb[4].mxu0 }
 0x187   : > { %v474_v60 = vadd.f32 %v467_v59, %v406_v51  ;;  %v633_v61 = vpop.f32.mrb[5].mxu0 }
 0x188   : > { %v470_v62 = vpop.f32.mrb[6].mxu0 }
 0x189   : > { %v482_v63 = vadd.f32 %v481_v58, %v474_v60  ;;  %v475_v0 = vadd.f32 %v470_v62, %v409_v54  ;;  %v634_v1 = vpop.f32.mrb[7].mxu0 }
 0x18b   : > { %v600_v2 = vpack.c.bf16 %v482_v63, %v482_v63  ;;  %v483_v3 = vadd.f32 %v481_v58, %v475_v0 }
 0x18d   : > { %492 = vst.msk [vmem:[%s217_s14] sm:$0xf] %vm249_vm0, %v600_v2  ;;  %v601_v4 = vpack.c.bf16 %v483_v3, %v483_v3 }
 0x18f   : > { %493 = vst.msk [vmem:[%s217_s14 + $0x4] sm:$0xf] %vm249_vm0, %v601_v4 }
 0x190 PF: > { %s14_s15 = sadd.s32 1, %s664_s15  }
 0x191   : > { %p11_p4 = scmp.ge.s32.totalorder %s14_s15, 4  }
 0x193   :  { %13 = sbr.rel (!%p11_p4) target bundleno = 1 (0x1), region = 71 }

// kernel: conditional_decoder_forward.65
= control target key start
LH: loop header
LB: loop body
LE: loop exit
PB: predicated region body
PF: predicated region fallthrough
CT: control target
= control target key end

     0   :  { %s1424_s17 = smov 0   ;;  %s1584_s0 = inlined_call_operand.vmem [shape: bf16[2,16,32], index: 0, kind: input, shape index: {}]   ;;  %s1585_s1 = inlined_call_operand.vmem [shape: bf16[2,16,32], index: 1, kind: input, shape index: {}]   ;;  %s1586_s2 = inlined_call_operand.vmem [shape: bf16[2,16,1], index: 2, kind: input, shape index: {}]   ;;  %s1587_s3 = inlined_call_operand.vmem [shape: bf16[3,64,32], index: 3, kind: input, shape index: {}]   ;;  %s1588_s4 = inlined_call_operand.vmem [shape: bf16[1,32], index: 4, kind: input, shape index: {}]   ;;  %s1589_s5 = inlined_call_operand.vmem [shape: bf16[1,32], index: 5, kind: input, shape index: {}]   ;;  %s1590_s6 = inlined_call_operand.vmem [shape: bf16[1,32], index: 6, kind: input, shape index: {}]   ;;  %s1591_s7 = inlined_call_operand.vmem [shape: bf16[64,32], index: 7, kind: input, shape index: {}]   ;;  %s1592_s8 = inlined_call_operand.vmem [shape: bf16[1,32], index: 8, kind: input, shape index: {}]   ;;  %s1593_s9 = inlined_call_operand.vmem [shape: bf16[2,1,32], index: 9, kind: input, shape index: {}]   ;;  %s1594_s10 = inlined_call_operand.vmem [shape: bf16[2,16,32], index: 10, kind: output, shape index: {0}]   ;;  %s1595_s11 = inlined_call_operand.vmem [shape: bf16[2,16,32], index: 11, kind: output, shape index: {1}]  }
   0x1 LB: > { %s1149_s18 = sadd.s32 4294967295, %s1357_s17   ;;  %p1153_p0 = scmp.ge.s32.totalorder %s1357_s17, 1  ;;  %s1357_s17 = sphi %s1424_s17, %s22_s17  }
   0x2   : > { %p368_p1 = scmp.lt.s32.totalorder %s1357_s17, 3 }
   0x4   : > { %p369_p2 = pnand %p1153_p0, %p368_p1 }
   0x5   : > { %vm485_vm0 = vcmask (!%p369_p2), 519168   ;;  %p426_p3 = scmp.lt.s32.totalorder (!%p369_p2), %s1149_s18, 1  ;;  %v1359_v0 = vmov (!%p369_p2), 0   ;;  %v1315_v3 = vld [vmem:[%s1591_s7 + $0x10] sm:$0xff] (!%p369_p2)   ;;  %v1360_v4 = vmov (!%p369_p2), 0.0   ;;  %v1316_v5 = vld [vmem:[%s1591_s7 + $0x18] sm:$0xff] (!%p369_p2)   ;;  %v467_v8 = vlaneseq (!%p369_p2) }
   0x6   : > { %372 = sbr.rel (%p369_p2) target bundleno = 889 (0x379), region = 60  ;;  %1308 = vset.pattern.permute.xlu0 (!%p369_p2), %v1359_v0  ;;  %486 = vst.msk [vmem:[#allocation2] sm:$0xf] (!%p369_p2), %vm485_vm0, %v1359_v0  ;;  %1309 = vset.pattern.permute.xlu1 (!%p369_p2), %v1359_v0  ;;  %vm1361_vm1 = vmmov (!%p369_p2), 0   ;;  %v1362_v6 = vmov (!%p369_p2), 839922192  }
   0x7   : > { %1243 = vmatprep.subr.bf16.mxu1 (!%p369_p2), %v1360_v4  ;;  %1259 = vmatprep.subr.bf16.mxu0 (!%p369_p2), %v1360_v4  ;;  %v465_v7 = vunpack.c.l.s4 (!%p369_p2), %v1362_v6  ;;  %v1461_v10 = vshrl.u32 (!%p369_p2), %v467_v8, 7  ;;  %v1320_v11 = vld [vmem:[%s1587_s3 + $0x20] sm:$0xff] (!%p369_p2)   ;;  %v1322_v13 = vld [vmem:[%s1587_s3 + $0x28] sm:$0xff] (!%p369_p2)   ;;  %v1324_v18 = vld [vmem:[%s1587_s3 + $0x30] sm:$0xff] (!%p369_p2)   ;;  %vm487_vm2 = vcmask (!%p369_p2), 257024   ;;  %s1363_s23 = smov (!%p369_p2), 32  }
   0x8   : > { %1244 = vmatpush3.bf16.msra.mxu1 (!%p369_p2), %v1315_v3  ;;  %1247 = vmatprep.mubr.msk.bf16.mxu1 (!%p369_p2), %vm1361_vm1, %v1360_v4  ;;  %v1326_v25 = vld [vmem:[%s1587_s3 + $0x38] sm:$0xff] (!%p369_p2)   ;;  %vm528_vm3 = vcmask (!%p369_p2), 261120   ;;  %v1317_v28 = vld [vmem:[%s1591_s7] sm:$0xff] (!%p369_p2)   ;;  %v1318_v30 = vld [vmem:[%s1591_s7 + $0x8] sm:$0xff] (!%p369_p2)   ;;  %vm506_vm4 = vcmask (!%p369_p2), 519424   ;;  %vm771_vm5 = vcmask (!%p369_p2), 1044480  }
   0x9   : > { %1245 = vmatprep.subr.bf16.mxu1 (!%p369_p2), %v1360_v4  ;;  %1267 = vmatprep.mubr.msk.bf16.mxu0 (!%p369_p2), %vm1361_vm1, %v1360_v4  ;;  %v466_v9 = vunpack.c.0.s8 (!%p369_p2), %v465_v7  ;;  %v1319_v31 = vld [vmem:[%s1587_s3] sm:$0xff] (!%p369_p2)   ;;  %v1321_v33 = vld [vmem:[%s1587_s3 + $0x8] sm:$0xff] (!%p369_p2)   ;;  %v1323_v34 = vld [vmem:[%s1587_s3 + $0x10] sm:$0xff] (!%p369_p2)   ;;  %vm723_vm6 = vcmask (!%p369_p2), 523264   ;;  %vm681_vm7 = vsmask.f32 (!%p369_p2), 4352 }
   0xa   : > { %1260 = vmatpush3.bf16.msra.mxu0 (!%p369_p2), %v1320_v11  ;;  %v1325_v35 = vld [vmem:[%s1587_s3 + $0x18] sm:$0xff] (!%p369_p2)   ;;  %v1330_v57 = vld [vmem:[%s1587_s3 + $0x40] sm:$0xff] (!%p369_p2)   ;;  %v1331_v59 = vld [vmem:[%s1587_s3 + $0x48] sm:$0xff] (!%p369_p2)   ;;  %v1543_v6 = vsub.s32 (!%p369_p2), 0, %v1461_v10 }
   0xb   : > { %v469_v12 = vsub.s32 (!%p369_p2), %v466_v9, %v1461_v10  ;;  %1261 = vmatprep.subr.bf16.mxu0 (!%p369_p2), %v1360_v4  ;;  %v1332_v60 = vld [vmem:[%s1587_s3 + $0x50] sm:$0xff] (!%p369_p2)   ;;  %v1333_v61 = vld [vmem:[%s1587_s3 + $0x58] sm:$0xff] (!%p369_p2)   ;;  %v634_v0 = vld [vmem:[%s1592_s8] sm:$0x1] (!%p369_p2) }
   0xc   : > { %1246 = vmatpush3.bf16.msra.mxu1 (!%p369_p2), %v1316_v5  ;;  %v635_v8 = vunpack.c.l.bf16 (!%p369_p2), %v634_v0 }
   0xd   : > { %s1597_s18 = smov (!%p426_p3, %s1149_s18), 1  ;;  %1251 = vmatprep.subr.bf16.mxu1 %v1360_v4  ;;  %v652_v38 = vld [vmem:[#allocation2] sm:$0x8] }
   0xe   : > { %s1435_s19 = sshll.u32 %s1597_s18, 3  ;;  %1262 = vmatpush3.bf16.msra.mxu0 %v1322_v13  ;;  %v639_v9 = vrot.slane %v635_v8, %v1543_v6  ;;  %s443_s27 = scalar_lea.vmem %s1593_s9, %s1597_s18 }
   0xf   : > { %s440_s22 = scalar_lea.vmem %s1586_s2, %s1435_s19  ;;  %s430_s12 = scalar_lea.vmem %s1584_s0, %s1435_s19  ;;  %1263 = vmatprep.subr.bf16.mxu0 %v1360_v4 }
  0x10   : > { %v1441_v1 = vld [vmem:[%s440_s22] sm:$0xf]  ;;  %v1444_v2 = vld [vmem:[%s440_s22 + $0x4] sm:$0xf]  ;;  %s435_s15 = scalar_lea.vmem %s1585_s1, %s1435_s19  ;;  %s448_s30 = scalar_lea.vmem %s1594_s10, %s1435_s19 }
  0x11   : > { %461 = vperm.xlu0 %1308, %v1441_v1   ;;  %v457_v15 = vld [vmem:[%s430_s12] sm:$0xf]  ;;  %v458_v22 = vld [vmem:[%s430_s12 + $0x4] sm:$0xf] }
  0x12   : > { %v494_v16 = vld [vmem:[%s435_s15] sm:$0xf]  ;;  %v495_v23 = vld [vmem:[%s435_s15 + $0x4] sm:$0xf]  ;;  %1264 = vmatpush3.bf16.msra.mxu0 %v1324_v18  ;;  %s453_s15 = scalar_lea.vmem %s1595_s11, %s1435_s19 }
  0x13   : > { %1265 = vmatprep.subr.bf16.mxu0 %v1360_v4 }
  0x15   : > { %473 = vperm.xlu0 %1308, %v1444_v2  }
  0x16   : > { %1266 = vmatpush3.bf16.msra.mxu0 %v1326_v25 }
  0x17   : > { %1283 = vmatprep.subr.bf16.mxu0 %v1360_v4 }
  0x90   : > { %v462_v14 = vpop.permute.xlu0 %461 }
  0x91   : > { %v470_v17 = vrot.slane %v462_v14, %v469_v12 }
  0x93   : > { %v483_v19 = vmul.bf16 %v470_v17, %v457_v15  ;;  %v496_v20 = vmul.bf16 %v494_v16, %v470_v17 }
  0x94   : > { %v474_v21 = vpop.permute.xlu0 %473 }
  0x95   : > { %v482_v24 = vrot.slane %v474_v21, %v469_v12  ;;  %500 = vrot.lane.b32.xlu1 %v496_v20, %s1363_s23  ;;  %488 = vst.msk [vmem:[#allocation2 + $0x4] sm:$0xf] %vm487_vm2, %v483_v19 }
  0x97   : > { %v484_v26 = vmul.bf16 %v482_v24, %v458_v22  ;;  %v497_v27 = vmul.bf16 %v495_v23, %v482_v24 }
  0x99   : > { %v1164_v29 = vcombine.low %v496_v20, %v497_v27  ;;  %502 = vrot.lane.b32.xlu1 %v497_v27, %s1363_s23  ;;  %489 = vst.msk [vmem:[#allocation2 + $0x8] sm:$0xf] %vm487_vm2, %v484_v26  ;;  %v1168_v32 = vcombine.low %v483_v19, %v484_v26 }
  0x9b   : > { %1248 = vmatmul.mubr.msk.bf16.vlgmr.msra.gmra.mrb[0].mxu1 %vm528_vm3, %v1164_v29  ;;  %v923_v29 = vld [vmem:[%s1588_s4] sm:$0x1] }
  0x9c   : > { %1252 = vmatpush3.bf16.msra.mxu1 %v1317_v28  ;;  %1255 = vmatprep.mubr.msk.bf16.mxu1 %vm1361_vm1, %v1360_v4 }
  0x9d   : > { %1253 = vmatprep.subr.bf16.mxu1 %v1360_v4 }
  0xa0   : > { %1254 = vmatpush3.bf16.msra.mxu1 %v1318_v30  ;;  %v924_v30 = vunpack.c.l.bf16 %v923_v29 }
  0xa1   : > { %1271 = vmatprep.subr.bf16.mxu1 %v1360_v4 }
  0xa3   : > { %1256 = vmatmul.mubr.msk.bf16.vlgmr.msra.gmra.mrb[4].mxu1 %vm528_vm3, %v1168_v32 }
  0xa4   : > { %1272 = vmatpush3.bf16.msra.mxu1 %v1319_v31  ;;  %1279 = vmatprep.mubr.msk.bf16.mxu1 %vm1361_vm1, %v1360_v4  ;;  %v928_v31 = vrot.slane %v924_v30, %v1543_v6  ;;  %v1010_v30 = vld [vmem:[%s443_s27] sm:$0x1] }
  0xa5   : > { %1273 = vmatprep.subr.bf16.mxu1 %v1360_v4 }
  0xa8   : > { %1274 = vmatpush3.bf16.msra.mxu1 %v1321_v33 }
  0xa9   : > { %1275 = vmatprep.subr.bf16.mxu1 %v1360_v4 }
  0xac   : > { %1276 = vmatpush3.bf16.msra.mxu1 %v1323_v34 }
  0xad   : > { %1277 = vmatprep.subr.bf16.mxu1 %v1360_v4 }
  0xb0   : > { %1278 = vmatpush3.bf16.msra.mxu1 %v1325_v35 }
 0x107   : > { %v501_v36 = vpop.permute.xlu1 %500 }
 0x108   : > { %507 = vst.msk [vmem:[#allocation2 + $0x4] sm:$0xf] %vm506_vm4, %v501_v36 }
 0x10b   : > { %v503_v37 = vpop.permute.xlu1 %502 }
 0x10c   : > { %508 = vst.msk [vmem:[#allocation2 + $0x8] sm:$0xf] %vm506_vm4, %v503_v37 }
 0x10f   : > { %v653_v39 = vld [vmem:[#allocation2 + $0x4] sm:$0xf] }
 0x110   : > { %v1182_v40 = vcombine.low %v652_v38, %v653_v39 }
 0x112   : > { %v683_v41 = vshrl.u32 %v1182_v40, 16  ;;  %v686_v43 = vshll.u32 %v1182_v40, 16  ;;  %v772_v45 = vrot.slane %v1182_v40, 3 }
 0x113   : > { %v1328_v42 = vld [vmem:[#allocation2 + $0x8] ss:$0 sps:$4 sm:$0x77]  }
 0x114   : > { %v663_v44 = vld [vmem:[#allocation2 + $0x8] sm:$0xf]  ;;  %v773_v46 = vrot.slane %v1328_v42, 3  ;;  %v685_v48 = vrot.slane %v683_v41, 3  ;;  %v688_v50 = vrot.slane %v686_v43, 4  ;;  %v996_v42 = vunpack.c.l.bf16 %v1441_v1 }
 0x115   : > { %v1183_v47 = vcombine.low %v663_v44, %v663_v44  ;;  %v1203_v62 = vcombine.low %v653_v39, %v663_v44  ;;  %v997_v43 = vunpack.c.l.bf16 %v1444_v2 }
 0x116   : > { %v774_v49 = vsel %vm771_vm5, %v772_v45, %v773_v46  ;;  %v689_v55 = vor.u32 %v688_v50, %v685_v48 }
 0x117   : > { %v691_v51 = vshrl.u32 %v1183_v47, 16  ;;  %v694_v52 = vshll.u32 %v1183_v47, 16  ;;  %1280 = vmatmul.mubr.msk.bf16.vlgmr.msra.gmra.mrb[8].mxu1 %vm723_vm6, %v774_v49  ;;  %v1310_v44 = vpack.i.bf16 %v997_v43, %v996_v42 }
 0x119   : > { %v693_v53 = vrot.slane %v691_v51, 3  ;;  %v696_v54 = vrot.slane %v694_v52, 4 }
 0x11b   : > { %v697_v56 = vor.u32 %v696_v54, %v693_v53 }
 0x11d   : > { %v698_v58 = vsel %vm681_vm7, %v689_v55, %v697_v56 }
 0x11e   : > { %1268 = vmatmul.mubr.msk.bf16.vlgmr.msra.gmra.mrb[0].mxu0 %vm723_vm6, %v698_v58 }
 0x11f   : > { %1284 = vmatpush3.bf16.msra.mxu0 %v1330_v57  ;;  %1291 = vmatprep.mubr.msk.bf16.mxu0 %vm1361_vm1, %v1360_v4 }
 0x120   : > { %1285 = vmatprep.subr.bf16.mxu0 %v1360_v4 }
 0x123   : > { %1286 = vmatpush3.bf16.msra.mxu0 %v1331_v59  ;;  %v931_v59 = vld [vmem:[%s1589_s5] sm:$0x1] }
 0x124   : > { %1287 = vmatprep.subr.bf16.mxu0 %v1360_v4 }
 0x127   : > { %1288 = vmatpush3.bf16.msra.mxu0 %v1332_v60  ;;  %v933_v60 = vld [vmem:[%s1590_s6] sm:$0x1] }
 0x128   : > { %1289 = vmatprep.subr.bf16.mxu0 %v1360_v4 }
 0x12b   : > { %1290 = vmatpush3.bf16.msra.mxu0 %v1333_v61  ;;  %v932_v61 = vunpack.c.l.bf16 %v931_v59 }
 0x12e   : > { %1292 = vmatmul.mubr.msk.bf16.vlgmr.msra.gmra.mrb[4].mxu0 %vm723_vm6, %v1203_v62  ;;  %v934_v62 = vunpack.c.l.bf16 %v933_v60 }
 0x16e   : > { %v566_v63 = vpop.f32.mrb[0].mxu1 }
 0x16f   : > { %v1249_v3 = vpop.f32.mrb[1].mxu1 }
 0x170   : > { %v569_v5 = vpop.f32.mrb[2].mxu1 }
 0x171   : > { %v1250_v7 = vpop.f32.mrb[3].mxu1 }
 0x176   : > { %v627_v4 = vpop.f32.mrb[4].mxu1 }
 0x177   : > { %v628_v11 = vadd.f32 %v627_v4, %v566_v63  ;;  %v1257_v12 = vpop.f32.mrb[5].mxu1  ;;  %v965_v63 = vrot.slane %v932_v61, %v1543_v6 }
 0x178   : > { %v630_v13 = vpop.f32.mrb[6].mxu1 }
 0x179   : > { %v640_v14 = vadd.f32 %v639_v9, %v628_v11  ;;  %v631_v15 = vadd.f32 %v630_v13, %v569_v5  ;;  %v1258_v16 = vpop.f32.mrb[7].mxu1  ;;  %v971_v5 = vrot.slane %v934_v62, %v1543_v6 }
 0x17b   : > { %v1218_v17 = vpack.c.bf16 %v640_v14, %v640_v14  ;;  %v641_v18 = vadd.f32 %v639_v9, %v631_v15 }
 0x17d   : > { %650 = vst.msk [vmem:[%s453_s15] sm:$0xf] %vm487_vm2, %v1218_v17  ;;  %v1219_v10 = vpack.c.bf16 %v641_v18, %v641_v18 }
 0x17f   : > { %651 = vst.msk [vmem:[%s453_s15 + $0x4] sm:$0xf] %vm487_vm2, %v1219_v10 }
 0x1ea   : > { %v836_v19 = vpop.f32.mrb[8].mxu1 }
 0x1eb   : > { %v1281_v20 = vpop.f32.mrb[9].mxu1 }
 0x1ec   : > { %v839_v21 = vpop.f32.mrb[10].mxu1 }
 0x1ed   : > { %v1282_v22 = vpop.f32.mrb[11].mxu1 }
 0x1f1   : > { %v761_v23 = vpop.f32.mrb[0].mxu0 }
 0x1f2   : > { %v837_v24 = vadd.f32 %v836_v19, %v761_v23  ;;  %v1269_v25 = vpop.f32.mrb[1].mxu0 }
 0x1f3   : > { %v764_v26 = vpop.f32.mrb[2].mxu0 }
 0x1f4   : > { %v840_v27 = vadd.f32 %v839_v21, %v764_v26  ;;  %v1270_v28 = vpop.f32.mrb[3].mxu0 }
 0x201   : > { %v914_v32 = vpop.f32.mrb[4].mxu0 }
 0x202   : > { %v921_v33 = vadd.f32 %v914_v32, %v837_v24  ;;  %v1293_v34 = vpop.f32.mrb[5].mxu0  ;;  %v1011_v32 = vunpack.c.l.bf16 %v1010_v30 }
 0x203   : > { %v917_v35 = vpop.f32.mrb[6].mxu0 }
 0x204   : > { %v922_v36 = vadd.f32 %v917_v35, %v840_v27  ;;  %v1294_v37 = vpop.f32.mrb[7].mxu0  ;;  %v929_v38 = vadd.f32 %v928_v31, %v921_v33 }
 0x206   : > { %v935_v39 = vsel %vm528_vm3, %v929_v38, 0.0  ;;  %v930_v40 = vadd.f32 %v928_v31, %v922_v36  ;;  %v1015_v36 = vrot.slane %v1011_v32, %v1543_v6 }
 0x207   : > { %936 = vadd.xlane.f32.xlu0 %v935_v39 }
 0x208   : > { %v938_v41 = vsel %vm528_vm3, %v930_v40, 0.0 }
 0x209   : > { %939 = vadd.xlane.f32.xlu1 %v938_v41 }
 0x21a   : > { %1311 = vperm.xlu1 %1309, %v1310_v44  }
 0x294   : > { %v937_v45 = vpop.xlane.xlu0 %936 }
 0x295   : > { %v942_v46 = vmul.f32 0.03125, %v937_v45 }
 0x296   : > { %v940_v47 = vpop.xlane.xlu1 %939 }
 0x297   : > { %v944_v48 = vsub.f32 %v929_v38, %v942_v46  ;;  %v943_v49 = vmul.f32 0.03125, %v940_v47 }
 0x299   : > { %v945_v50 = vsub.f32 %v930_v40, %v943_v49  ;;  %v946_v51 = vmul.f32 %v944_v48, %v944_v48 }
 0x29a   : > { %v1312_v31 = vpop.permute.xlu1 %1311 }
 0x29b   : > { %v948_v52 = vsel %vm528_vm3, %v946_v51, 0.0  ;;  %v947_v53 = vmul.f32 %v945_v50, %v945_v50  ;;  %v1313_v33 = vunpack.i.l.bf16 %v1312_v31  ;;  %v1314_v37 = vunpack.i.h.bf16 %v1312_v31 }
 0x29c   : > { %949 = vadd.xlane.f32.xlu0 %v948_v52 }
 0x29d   : > { %v951_v54 = vsel %vm528_vm3, %v947_v53, 0.0 }
 0x2a0   : > { %952 = vadd.xlane.f32.xlu0 %v951_v54 }
 0x329   : > { %v950_v55 = vpop.xlane.xlu0 %949 }
 0x32a   : > { %v954_v1 = vmul.f32 0.03125, %v950_v55 }
 0x32c   : > { %v956_v56 = vadd.f32 1e-05, %v954_v1 }
 0x32d   : > { %v953_v2 = vpop.xlane.xlu0 %952 }
 0x32e   : > { %1335 = vrsqrt.f32 %v956_v56  ;;  %v955_v57 = vmul.f32 0.03125, %v953_v2 }
 0x330   : > { %v957_v58 = vadd.f32 1e-05, %v955_v57 }
 0x332   : > { %1337 = vrsqrt.f32 %v957_v58 }
 0x338   : > { %v1336_v0 = vpop.eup %1335 }
 0x339   : > { %v960_v3 = vmul.f32 %v1336_v0, %v944_v48 }
 0x33b   : > { %v966_v7 = vmul.f32 %v965_v63, %v960_v3 }
 0x33c   : > { %v1338_v8 = vpop.eup %1337 }
 0x33d   : > { %v961_v9 = vmul.f32 %v1338_v8, %v945_v50  ;;  %v972_v4 = vadd.f32 %v971_v5, %v966_v7 }
 0x33f   : > { %v967_v11 = vmul.f32 %v965_v63, %v961_v9  ;;  %v976_v12 = vand.u32 2147483647, %v972_v4  ;;  %v974_v23 = vmax.f32 %v972_v4, 0.0 }
 0x341   : > { %v973_v13 = vadd.f32 %v971_v5, %v967_v11  ;;  %v978_v14 = vsub.f32 0.0, %v976_v12 }
 0x343   : > { %v977_v15 = vand.u32 2147483647, %v973_v13  ;;  %v980_v16 = vmul.f32 1.442695, %v978_v14  ;;  %v975_v27 = vmax.f32 %v973_v13, 0.0 }
 0x345   : > { %v979_v17 = vsub.f32 0.0, %v977_v15  ;;  %1339 = vpow2.f32 %v980_v16 }
 0x347   : > { %v982_v18 = vmul.f32 1.442695, %v979_v17 }
 0x349   : > { %1341 = vpow2.f32 %v982_v18 }
 0x34f   : > { %v1340_v10 = vpop.eup %1339 }
 0x350   : > { %v984_v19 = vadd.f32 1.0, %v1340_v10 }
 0x352   : > { %1343 = vlog2.f32 %v984_v19 }
 0x353   : > { %v1342_v20 = vpop.eup %1341 }
 0x354   : > { %v985_v21 = vadd.f32 1.0, %v1342_v20 }
 0x356   : > { %1345 = vlog2.f32 %v985_v21 }
 0x35c   : > { %v1344_v22 = vpop.eup %1343 }
 0x35d   : > { %v987_v24 = vmul.f32 0.6931472, %v1344_v22 }
 0x35f   : > { %v990_v25 = vadd.f32 %v987_v24, %v974_v23 }
 0x360   : > { %v1346_v26 = vpop.eup %1345 }
 0x361   : > { %v989_v28 = vmul.f32 0.6931472, %v1346_v26  ;;  %1347 = vtanh.f32 %v990_v25 }
 0x363   : > { %v991_v29 = vadd.f32 %v989_v28, %v975_v27 }
 0x365   : > { %1349 = vtanh.f32 %v991_v29 }
 0x36b   : > { %v1348_v34 = vpop.eup %1347 }
 0x36c   : > { %v994_v35 = vmul.f32 %v1348_v34, %v972_v4 }
 0x36e   : > { %v1008_v38 = vmul.f32 %v1313_v33, %v994_v35 }
 0x36f   : > { %v1350_v39 = vpop.eup %1349 }
 0x370   : > { %v995_v40 = vmul.f32 %v1350_v39, %v973_v13  ;;  %v1016_v41 = vadd.f32 %v1015_v36, %v1008_v38 }
 0x372   : > { %v1009_v42 = vmul.f32 %v1314_v37, %v995_v40  ;;  %v1220_v43 = vpack.c.bf16 %v1016_v41, %v1016_v41 }
 0x374   : > { %v1017_v44 = vadd.f32 %v1015_v36, %v1009_v42  ;;  %1026 = vst.msk [vmem:[%s448_s30] sm:$0xf] %vm487_vm2, %v1220_v43 }
 0x376   : > { %v1221_v45 = vpack.c.bf16 %v1017_v44, %v1017_v44 }
 0x378   : > { %1027 = vst.msk [vmem:[%s448_s30 + $0x4] sm:$0xf] %vm487_vm2, %v1221_v45 }
 0x379 PF: > { %s22_s17 = sadd.s32 1, %s1357_s17  }
 0x37a   : > { %p19_p4 = scmp.ge.s32.totalorder %s22_s17, 4  }
 0x37c   :  { %21 = sbr.rel (!%p19_p4) target bundleno = 1 (0x1), region = 113 }

// kernel: conditional_decoder_forward.73
= control target key start
LH: loop header
LB: loop body
LE: loop exit
PB: predicated region body
PF: predicated region fallthrough
CT: control target
= control target key end

     0   :  { %s1010_s27 = smov 0   ;;  %s1112_s0 = inlined_call_operand.vmem [shape: bf16[2,16,32], index: 0, kind: input, shape index: {}]   ;;  %s1113_s1 = inlined_call_operand.vmem [shape: bf16[2,16,1], index: 1, kind: input, shape index: {}]   ;;  %s1114_s2 = inlined_call_operand.vmem [shape: bf16[3,32,32], index: 2, kind: input, shape index: {}]   ;;  %s1115_s3 = inlined_call_operand.vmem [shape: bf16[1,32], index: 3, kind: input, shape index: {}]   ;;  %s1116_s4 = inlined_call_operand.vmem [shape: bf16[1,32], index: 4, kind: input, shape index: {}]   ;;  %s1117_s5 = inlined_call_operand.vmem [shape: bf16[1,32], index: 5, kind: input, shape index: {}]   ;;  %s1118_s6 = inlined_call_operand.vmem [shape: bf16[32,8], index: 6, kind: input, shape index: {}]   ;;  %s1119_s7 = inlined_call_operand.vmem [shape: bf16[1,8], index: 7, kind: input, shape index: {}]   ;;  %s1120_s8 = inlined_call_operand.vmem [shape: bf16[2,16,8], index: 8, kind: output, shape index: {}]  }
   0x1 LB: > { %s818_s28 = sadd.s32 4294967295, %s959_s27   ;;  %p822_p0 = scmp.ge.s32.totalorder %s959_s27, 1  ;;  %s959_s27 = sphi %s1010_s27, %s18_s27  }
   0x2   : > { %p272_p1 = scmp.lt.s32.totalorder %s959_s27, 3 }
   0x4   : > { %p273_p2 = pnand %p822_p0, %p272_p1 }
   0x5   : > { %vm359_vm0 = vcmask (!%p273_p2), 257024   ;;  %p311_p3 = scmp.lt.s32.totalorder (!%p273_p2), %s818_s28, 1  ;;  %v961_v0 = vmov (!%p273_p2), 0   ;;  %v925_v3 = vld [vmem:[%s1114_s2] sm:$0xff] (!%p273_p2)   ;;  %v926_v4 = vld [vmem:[%s1114_s2 + $0x10] sm:$0xff] (!%p273_p2)   ;;  %v962_v5 = vmov (!%p273_p2), 0.0   ;;  %v341_v10 = vlaneseq (!%p273_p2) }
   0x6   : > { %276 = sbr.rel (%p273_p2) target bundleno = 984 (0x3d8), region = 52  ;;  %918 = vset.pattern.permute.xlu0 (!%p273_p2), %v961_v0  ;;  %360 = vst.msk [vmem:[#allocation2] sm:$0xf] (!%p273_p2), %vm359_vm0, %v961_v0  ;;  %919 = vset.pattern.permute.xlu1 (!%p273_p2), %v961_v0  ;;  %v927_v6 = vld [vmem:[%s1114_s2 + $0x8] sm:$0xff] (!%p273_p2)   ;;  %v928_v7 = vld [vmem:[%s1114_s2 + $0x18] sm:$0xff] (!%p273_p2)   ;;  %vm963_vm1 = vmmov (!%p273_p2), 0  }
   0x7   : > { %882 = vmatprep.subr.bf16.mxu1 (!%p273_p2), %v962_v5  ;;  %874 = vmatprep.subr.bf16.mxu0 (!%p273_p2), %v962_v5  ;;  %v964_v8 = vmov (!%p273_p2), 839922192   ;;  %v342_v12 = vshrl.u32 (!%p273_p2), %v341_v10, 7  ;;  %vm462_vm2 = vcmask (!%p273_p2), 1044480   ;;  %vm414_vm3 = vcmask (!%p273_p2), 261120   ;;  %v932_v41 = vld [vmem:[%s1114_s2 + $0x20] sm:$0xff] (!%p273_p2)  }
   0x8   : > { %883 = vmatpush3.bf16.msra.mxu1 (!%p273_p2), %v925_v3  ;;  %875 = vmatpush3.bf16.msra.mxu0 (!%p273_p2), %v926_v4  ;;  %v339_v9 = vunpack.c.l.s4 (!%p273_p2), %v964_v8  ;;  %vm384_vm4 = vsmask.f32 (!%p273_p2), 4352  ;;  %v933_v43 = vld [vmem:[%s1114_s2 + $0x28] sm:$0xff] (!%p273_p2)   ;;  %v586_v50 = vld [vmem:[%s1115_s3] sm:$0x1] (!%p273_p2)  ;;  %vm748_vm5 = vcmask (!%p273_p2), 60416  }
   0x9   : > { %884 = vmatprep.subr.bf16.mxu1 (!%p273_p2), %v962_v5  ;;  %876 = vmatprep.subr.bf16.mxu0 (!%p273_p2), %v962_v5  ;;  %v1076_v54 = vsub.s32 (!%p273_p2), 0, %v342_v12  ;;  %v587_v57 = vunpack.c.l.bf16 (!%p273_p2), %v586_v50 }
   0xa   : > { %886 = vmatprep.mubr.msk.bf16.mxu1 (!%p273_p2), %vm963_vm1, %v962_v5  ;;  %878 = vmatprep.mubr.msk.bf16.mxu0 (!%p273_p2), %vm963_vm1, %v962_v5  ;;  %v340_v11 = vunpack.c.0.s8 (!%p273_p2), %v339_v9 }
   0xb   : > { %v591_v58 = vrot.slane (!%p273_p2), %v587_v57, %v1076_v54 }
   0xc   : > { %885 = vmatpush3.bf16.msra.mxu1 (!%p273_p2), %v927_v6  ;;  %877 = vmatpush3.bf16.msra.mxu0 (!%p273_p2), %v928_v7  ;;  %v343_v13 = vsub.s32 (!%p273_p2), %v340_v11, %v342_v12 }
   0xd   : > { %s1122_s28 = smov (!%p311_p3, %s818_s28), 1  ;;  %890 = vmatprep.subr.bf16.mxu0 %v962_v5  ;;  %898 = vmatprep.subr.bf16.mxu1 %v962_v5  ;;  %v363_v22 = vld [vmem:[#allocation2] sm:$0x8] }
   0xe   : > { %s1019_s29 = sshll.u32 %s1122_s28, 3 }
   0xf   : > { %s320_s10 = scalar_lea.vmem %s1113_s1, %s1019_s29  ;;  %s315_s21 = scalar_lea.vmem %s1112_s0, %s1019_s29 }
  0x10   : > { %v1025_v1 = vld [vmem:[%s320_s10] sm:$0xf]  ;;  %v1028_v2 = vld [vmem:[%s320_s10 + $0x4] sm:$0xf]  ;;  %s325_s20 = scalar_lea.vmem %s1120_s8, %s1019_s29 }
  0x11   : > { %335 = vperm.xlu0 %918, %v1025_v1   ;;  %v331_v15 = vld [vmem:[%s315_s21] sm:$0xf]  ;;  %v332_v19 = vld [vmem:[%s315_s21 + $0x4] sm:$0xf]  ;;  %v329_v8 = vunpack.c.l.bf16 %v1025_v1  ;;  %v330_v9 = vunpack.c.l.bf16 %v1028_v2 }
  0x12   : > { %v935_v1 = vld [vmem:[%s1118_s6] sm:$0xff]  }
  0x13   : > { %v920_v10 = vpack.i.bf16 %v330_v9, %v329_v8  ;;  %v676_v8 = vld [vmem:[%s1119_s7] sm:$0x1] }
  0x14   : > { %v677_v9 = vunpack.c.l.bf16 %v676_v8 }
  0x15   : > { %347 = vperm.xlu0 %918, %v1028_v2   ;;  %v936_v2 = vld [vmem:[%s1118_s6 + $0x8] sm:$0xff]  }
  0x90   : > { %v336_v14 = vpop.permute.xlu0 %335 }
  0x91   : > { %v344_v16 = vrot.slane %v336_v14, %v343_v13 }
  0x93   : > { %v357_v17 = vmul.bf16 %v344_v16, %v331_v15 }
  0x94   : > { %v348_v18 = vpop.permute.xlu0 %347 }
  0x95   : > { %361 = vst.msk [vmem:[#allocation2 + $0x4] sm:$0xf] %vm359_vm0, %v357_v17  ;;  %v356_v20 = vrot.slane %v348_v18, %v343_v13 }
  0x97   : > { %v358_v21 = vmul.bf16 %v356_v20, %v332_v19 }
  0x99   : > { %362 = vst.msk [vmem:[#allocation2 + $0x8] sm:$0xf] %vm359_vm0, %v358_v21 }
  0x9c   : > { %v364_v23 = vld [vmem:[#allocation2 + $0x4] sm:$0xf] }
  0x9d   : > { %v833_v24 = vcombine.low %v363_v22, %v364_v23 }
  0x9f   : > { %v386_v25 = vshrl.u32 %v833_v24, 16  ;;  %v389_v27 = vshll.u32 %v833_v24, 16  ;;  %v463_v29 = vrot.slane %v833_v24, 3 }
  0xa0   : > { %v930_v26 = vld [vmem:[#allocation2 + $0x8] ss:$0 sps:$4 sm:$0x77]  }
  0xa1   : > { %v370_v28 = vld [vmem:[#allocation2 + $0x8] sm:$0xf]  ;;  %v464_v30 = vrot.slane %v930_v26, 3  ;;  %v388_v32 = vrot.slane %v386_v25, 3  ;;  %v391_v34 = vrot.slane %v389_v27, 4 }
  0xa2   : > { %v834_v31 = vcombine.low %v370_v28, %v370_v28  ;;  %v846_v44 = vcombine.low %v364_v23, %v370_v28  ;;  %v594_v27 = vld [vmem:[%s1116_s4] sm:$0x1] }
  0xa3   : > { %v465_v33 = vsel %vm462_vm2, %v463_v29, %v464_v30  ;;  %v392_v39 = vor.u32 %v391_v34, %v388_v32  ;;  %v595_v28 = vunpack.c.l.bf16 %v594_v27 }
  0xa4   : > { %v394_v35 = vshrl.u32 %v834_v31, 16  ;;  %v397_v36 = vshll.u32 %v834_v31, 16  ;;  %887 = vmatmul.mubr.msk.bf16.vlgmr.msra.gmra.mrb[0].mxu1 %vm414_vm3, %v465_v33 }
  0xa5   : > { %902 = vmatprep.mubr.msk.bf16.mxu1 %vm963_vm1, %v962_v5  ;;  %899 = vmatpush3.bf16.msra.mxu1 %v935_v1  ;;  %v628_v30 = vrot.slane %v595_v28, %v1076_v54 }
  0xa6   : > { %v396_v37 = vrot.slane %v394_v35, 3  ;;  %v399_v38 = vrot.slane %v397_v36, 4  ;;  %900 = vmatprep.subr.bf16.mxu1 %v962_v5 }
  0xa8   : > { %v400_v40 = vor.u32 %v399_v38, %v396_v37 }
  0xa9   : > { %901 = vmatpush3.bf16.msra.mxu1 %v936_v2 }
  0xaa   : > { %v401_v42 = vsel %vm384_vm4, %v392_v39, %v400_v40 }
  0xab   : > { %879 = vmatmul.mubr.msk.bf16.vlgmr.msra.gmra.mrb[0].mxu0 %vm414_vm3, %v401_v42 }
  0xac   : > { %891 = vmatpush3.bf16.msra.mxu0 %v932_v41  ;;  %894 = vmatprep.mubr.msk.bf16.mxu0 %vm963_vm1, %v962_v5 }
  0xad   : > { %892 = vmatprep.subr.bf16.mxu0 %v962_v5  ;;  %v596_v5 = vld [vmem:[%s1117_s5] sm:$0x1] }
  0xae   : > { %v597_v29 = vunpack.c.l.bf16 %v596_v5 }
  0xb0   : > { %893 = vmatpush3.bf16.msra.mxu0 %v933_v43  ;;  %v634_v33 = vrot.slane %v597_v29, %v1076_v54 }
  0xb3   : > { %895 = vmatmul.mubr.msk.bf16.vlgmr.msra.gmra.mrb[4].mxu0 %vm414_vm3, %v846_v44 }
 0x177   : > { %v515_v45 = vpop.f32.mrb[0].mxu1 }
 0x178   : > { %v888_v46 = vpop.f32.mrb[1].mxu1 }
 0x179   : > { %v518_v47 = vpop.f32.mrb[2].mxu1 }
 0x17a   : > { %v889_v48 = vpop.f32.mrb[3].mxu1 }
 0x17e   : > { %v452_v49 = vpop.f32.mrb[0].mxu0 }
 0x17f   : > { %v516_v51 = vadd.f32 %v515_v45, %v452_v49  ;;  %v880_v52 = vpop.f32.mrb[1].mxu0 }
 0x180   : > { %v455_v53 = vpop.f32.mrb[2].mxu0 }
 0x181   : > { %v519_v55 = vadd.f32 %v518_v47, %v455_v53  ;;  %v881_v56 = vpop.f32.mrb[3].mxu0 }
 0x186   : > { %v577_v59 = vpop.f32.mrb[4].mxu0 }
 0x187   : > { %v584_v60 = vadd.f32 %v577_v59, %v516_v51  ;;  %v896_v61 = vpop.f32.mrb[5].mxu0 }
 0x188   : > { %v580_v62 = vpop.f32.mrb[6].mxu0 }
 0x189   : > { %v585_v63 = vadd.f32 %v580_v62, %v519_v55  ;;  %v897_v0 = vpop.f32.mrb[7].mxu0  ;;  %v592_v3 = vadd.f32 %v591_v58, %v584_v60 }
 0x18b   : > { %v598_v4 = vsel %vm414_vm3, %v592_v3, 0.0  ;;  %v593_v6 = vadd.f32 %v591_v58, %v585_v63 }
 0x18c   : > { %599 = vadd.xlane.f32.xlu1 %v598_v4 }
 0x18d   : > { %v601_v7 = vsel %vm414_vm3, %v593_v6, 0.0 }
 0x190   : > { %602 = vadd.xlane.f32.xlu1 %v601_v7 }
 0x219   : > { %v600_v11 = vpop.xlane.xlu1 %599 }
 0x21a   : > { %v605_v12 = vmul.f32 0.03125, %v600_v11 }
 0x21c   : > { %v607_v13 = vsub.f32 %v592_v3, %v605_v12 }
 0x21d   : > { %v603_v14 = vpop.xlane.xlu1 %602 }
 0x21e   : > { %v606_v15 = vmul.f32 0.03125, %v603_v14  ;;  %v609_v16 = vmul.f32 %v607_v13, %v607_v13 }
 0x220   : > { %v608_v17 = vsub.f32 %v593_v6, %v606_v15  ;;  %v611_v18 = vsel %vm414_vm3, %v609_v16, 0.0 }
 0x221   : > { %612 = vadd.xlane.f32.xlu0 %v611_v18 }
 0x222   : > { %v610_v19 = vmul.f32 %v608_v17, %v608_v17 }
 0x224   : > { %v614_v20 = vsel %vm414_vm3, %v610_v19, 0.0 }
 0x225   : > { %615 = vadd.xlane.f32.xlu1 %v614_v20 }
 0x236   : > { %921 = vperm.xlu1 %919, %v920_v10   ;;  %v681_v10 = vrot.slane %v677_v9, %v1076_v54 }
 0x2ae   : > { %v613_v21 = vpop.xlane.xlu0 %612 }
 0x2af   : > { %v617_v22 = vmul.f32 0.03125, %v613_v21 }
 0x2b1   : > { %v619_v23 = vadd.f32 1e-05, %v617_v22 }
 0x2b2   : > { %v616_v24 = vpop.xlane.xlu1 %615 }
 0x2b3   : > { %937 = vrsqrt.f32 %v619_v23  ;;  %v618_v25 = vmul.f32 0.03125, %v616_v24 }
 0x2b5   : > { %v620_v26 = vadd.f32 1e-05, %v618_v25 }
 0x2b6   : > { %v922_v60 = vpop.permute.xlu1 %921 }
 0x2b7   : > { %939 = vrsqrt.f32 %v620_v26  ;;  %v924_v62 = vunpack.i.h.bf16 %v922_v60  ;;  %v923_v63 = vunpack.i.l.bf16 %v922_v60 }
 0x2bd   : > { %v938_v31 = vpop.eup %937 }
 0x2be   : > { %v623_v32 = vmul.f32 %v938_v31, %v607_v13 }
 0x2c0   : > { %v629_v34 = vmul.f32 %v628_v30, %v623_v32 }
 0x2c1   : > { %v940_v35 = vpop.eup %939 }
 0x2c2   : > { %v624_v36 = vmul.f32 %v940_v35, %v608_v17  ;;  %v635_v37 = vadd.f32 %v634_v33, %v629_v34 }
 0x2c4   : > { %v630_v38 = vmul.f32 %v628_v30, %v624_v36  ;;  %v639_v39 = vand.u32 2147483647, %v635_v37  ;;  %v637_v51 = vmax.f32 %v635_v37, 0.0 }
 0x2c6   : > { %v636_v40 = vadd.f32 %v634_v33, %v630_v38  ;;  %v641_v41 = vsub.f32 0.0, %v639_v39 }
 0x2c8   : > { %v640_v42 = vand.u32 2147483647, %v636_v40  ;;  %v643_v43 = vmul.f32 1.442695, %v641_v41  ;;  %v638_v56 = vmax.f32 %v636_v40, 0.0 }
 0x2ca   : > { %v642_v44 = vsub.f32 0.0, %v640_v42  ;;  %941 = vpow2.f32 %v643_v43 }
 0x2cc   : > { %v645_v45 = vmul.f32 1.442695, %v642_v44 }
 0x2ce   : > { %943 = vpow2.f32 %v645_v45 }
 0x2d4   : > { %v942_v46 = vpop.eup %941 }
 0x2d5   : > { %v647_v47 = vadd.f32 1.0, %v942_v46 }
 0x2d7   : > { %945 = vlog2.f32 %v647_v47 }
 0x2d8   : > { %v944_v48 = vpop.eup %943 }
 0x2d9   : > { %v648_v49 = vadd.f32 1.0, %v944_v48 }
 0x2db   : > { %947 = vlog2.f32 %v648_v49 }
 0x2e1   : > { %v946_v50 = vpop.eup %945 }
 0x2e2   : > { %v650_v52 = vmul.f32 0.6931472, %v946_v50 }
 0x2e4   : > { %v653_v53 = vadd.f32 %v650_v52, %v637_v51 }
 0x2e5   : > { %v948_v55 = vpop.eup %947 }
 0x2e6   : > { %v652_v57 = vmul.f32 0.6931472, %v948_v55  ;;  %949 = vtanh.f32 %v653_v53 }
 0x2e8   : > { %v654_v58 = vadd.f32 %v652_v57, %v638_v56 }
 0x2ea   : > { %951 = vtanh.f32 %v654_v58 }
 0x2f0   : > { %v950_v59 = vpop.eup %949 }
 0x2f1   : > { %v657_v61 = vmul.f32 %v950_v59, %v635_v37 }
 0x2f3   : > { %v669_v6 = vmul.f32 %v923_v63, %v657_v61 }
 0x2f4   : > { %v952_v0 = vpop.eup %951 }
 0x2f5   : > { %v658_v3 = vmul.f32 %v952_v0, %v636_v40 }
 0x2f7   : > { %v670_v4 = vmul.f32 %v924_v62, %v658_v3 }
 0x2f9   : > { %v671_v7 = vpack.c.bf16 %v670_v4, %v669_v6 }
 0x2fb   : > { %903 = vmatmul.mubr.msk.bf16.vlgmr.msra.gmra.mrb[4].mxu1 %vm414_vm3, %v671_v7 }
 0x3ce   : > { %v731_v11 = vpop.f32.mrb[4].mxu1 }
 0x3cf   : > { %v732_v12 = vadd.f32 %v731_v11, %v681_v10  ;;  %v904_v13 = vpop.f32.mrb[5].mxu1 }
 0x3d0   : > { %v734_v14 = vpop.f32.mrb[6].mxu1 }
 0x3d1   : > { %v738_v15 = vmul.f32 %v923_v63, %v732_v12  ;;  %v735_v16 = vadd.f32 %v734_v14, %v681_v10  ;;  %v905_v17 = vpop.f32.mrb[7].mxu1 }
 0x3d3   : > { %v860_v18 = vpack.c.bf16 %v738_v15, %v738_v15  ;;  %v739_v19 = vmul.f32 %v924_v62, %v735_v16 }
 0x3d5   : > { %749 = vst.msk [vmem:[%s325_s20] sm:$0xf] %vm748_vm5, %v860_v18  ;;  %v861_v20 = vpack.c.bf16 %v739_v19, %v739_v19 }
 0x3d7   : > { %750 = vst.msk [vmem:[%s325_s20 + $0x4] sm:$0xf] %vm748_vm5, %v861_v20 }
 0x3d8 PF: > { %s18_s27 = sadd.s32 1, %s959_s27  }
 0x3d9   : > { %p15_p4 = scmp.ge.s32.totalorder %s18_s27, 4  }
 0x3db   :  { %17 = sbr.rel (!%p15_p4) target bundleno = 1 (0x1), region = 87 }

</bundles_post_ra>
